<compile_context>
chip_gen: v6e
topology: v6e:2x2x1
jax: 0.10.0
libtpu: 0.0.40
codegen_flags: <defaults>
</compile_context>

<pallas_src>
import jax
import jax.numpy as jnp
from jax.experimental import pallas as pl
from jax.experimental.pallas import tpu as pltpu

DIM = 300                 # original word-embedding dim
FILTERS = 128             # original filter count (lane-dense: 128)
KSIZES = (1, 3, 5, 7)
TOTAL_TAPS = sum(KSIZES)  # 16 -> packed conv RHS is (DIM, 16*F) = (300, 2048)
HIDDEN = 256              # original fc1 output dim (Linear(512, 256))
BN_EPS = 1e-5
ATT_EPS = 1e-6
COS_EPS = 1e-8

_VMEM = pl.BlockSpec(memory_space=pltpu.MemorySpace.VMEM)


# ---------------------------------------------------------------------------
# Single fused kernel: conv (per-tap matmul + shift-add) + BN + ReLU
#   + Gram-matrix attention + attention pooling + fc1 + cosine similarity.
# ---------------------------------------------------------------------------
def _convtext_kernel(x1_ref, x2_ref, wconv_ref, gamma_ref, beta_ref,
                     fc_w_ref, fc_b_ref, out_ref):
    B, L, D = x1_ref.shape
    F = gamma_ref.shape[-1]
    N = wconv_ref.shape[1]                                   # TOTAL_TAPS * F

    # Stack both questions -> single LHS; all (ksize, tap) planes are packed
    # into a single lane-dense RHS: the whole conv stage is ONE MXU matmul.
    x = jnp.concatenate([x1_ref[...], x2_ref[...]], axis=0)  # (2B, L, D)
    x2d = x.reshape(2 * B * L, D)                            # L % 8 == 0 -> free merge
    y = jnp.dot(x2d, wconv_ref[...], preferred_element_type=jnp.float32)
    y = y.reshape(2 * B, L, N)                               # per-tap partial conv

    gamma = gamma_ref[...].reshape(1, 1, F)
    beta = beta_ref[...].reshape(1, 1, F)

    def bn_relu(c):
        # BatchNorm2d, training mode: biased batch stats over (batch, position).
        mean = jnp.mean(c, axis=(0, 1), keepdims=True)
        var = jnp.mean(jnp.square(c - mean), axis=(0, 1), keepdims=True)
        return jnp.maximum((c - mean) * jax.lax.rsqrt(var + BN_EPS) * gamma + beta,
                           0.0)

    pooled1, pooled2 = [], []
    col = 0
    for ks in KSIZES:
        Lo = L - ks + 1
        # Conv2d(1, F, (ks, DIM), bias=False) == shift-and-add of per-tap matmuls.
        # Lane slices are 128-aligned; sublane shift by t is a cheap XLU op.
        c = y[:, 0:Lo, col:col + F]
        for t in range(1, ks):
            c = c + y[:, t:t + Lo, col + t * F:col + (t + 1) * F]
        col += ks * F

        a1 = bn_relu(c[:B])     # (B, Lo, F); BN stats per question, as in torch
        a2 = bn_relu(c[B:])

        # make_attention via the Gram identity (no (B, Lo, Lo, F) intermediate):
        #   att[b, j, i] = 1 / (sqrt(||a1[b,i] - a2[b,j]||^2 + eps) + 1)
        n1 = jnp.sum(a1 * a1, axis=2)                        # (B, Lo_i)
        n2 = jnp.sum(a2 * a2, axis=2)                        # (B, Lo_j)
        g = jnp.einsum('bjf,bif->bji', a2, a1,
                       preferred_element_type=jnp.float32)   # MXU
        sq = jnp.maximum(n2[:, :, None] + n1[:, None, :] - 2.0 * g, 0.0)
        att = 1.0 / (jnp.sqrt(sq + ATT_EPS) + 1.0)           # (B, j, i)

        # att_pool as a batched matvec on the MXU:
        #   q1[b, f] = sum_i (sum_j att[b,j,i]) * a1[b,i,f]
        #   q2[b, f] = sum_j (sum_i att[b,j,i]) * a2[b,j,f]
        w1 = jnp.sum(att, axis=1)[:, None, :]                # (B, 1, Lo_i)
        w2 = jnp.sum(att, axis=2)[:, None, :]                # (B, 1, Lo_j)
        pooled1.append(jnp.einsum('bui,bif->buf', w1, a1,
                                  preferred_element_type=jnp.float32)[:, 0, :])
        pooled2.append(jnp.einsum('buj,bjf->buf', w2, a2,
                                  preferred_element_type=jnp.float32)[:, 0, :])

    # Shared fc1 on both stacked pooled vectors (one matmul) + cosine similarity.
    q = jnp.concatenate(
        [jnp.concatenate(pooled1, axis=1),                   # (B, 4F) = (B, 512)
         jnp.concatenate(pooled2, axis=1)], axis=0)          # (2B, 512)
    yfc = jnp.dot(q, fc_w_ref[...], preferred_element_type=jnp.float32) + fc_b_ref[...]
    y1, y2 = yfc[:B], yfc[B:]

    w12 = jnp.sum(y1 * y2, axis=1, keepdims=True)
    w11 = jnp.sum(y1 * y1, axis=1, keepdims=True)
    w22 = jnp.sum(y2 * y2, axis=1, keepdims=True)
    # torch CosineSimilarity clamps each norm separately; rsqrt runs on the EUP.
    inv1 = jax.lax.rsqrt(jnp.maximum(w11, COS_EPS * COS_EPS))
    inv2 = jax.lax.rsqrt(jnp.maximum(w22, COS_EPS * COS_EPS))
    out_ref[...] = w12 * inv1 * inv2


def conv_text_forward(x1, x2, params):
    """x1, x2: (B, L, DIM) float32 (== torch (B, 1, L, DIM) with channel dropped)."""
    B = x1.shape[0]
    out = pl.pallas_call(
        _convtext_kernel,
        out_shape=jax.ShapeDtypeStruct((B, 1), jnp.float32),
        in_specs=[_VMEM] * 7,
        out_specs=_VMEM,
        compiler_params=pltpu.CompilerParams(
            vmem_limit_bytes=32 * 1024 * 1024),   # explicit scoped-VMEM budget
    )(x1, x2, params["conv_w"], params["bn_gamma"], params["bn_beta"],
      params["fc1_w"], params["fc1_b"])
    return out[:, 0]                              # (B,) cosine similarity


# ---------------------------------------------------------------------------
# Parameter setup: pack all (ksize, tap) conv planes into one lane-dense RHS.
# ---------------------------------------------------------------------------
def init_params(key):
    keys = jax.random.split(key, len(KSIZES) + 2)
    blocks = []
    for i, ks in enumerate(KSIZES):
        # torch Conv2d weight (F, 1, ks, DIM) -> (F, ks, DIM), fan-in scaling.
        wk = jax.random.normal(keys[i], (FILTERS, ks, DIM), jnp.float32)
        wk = wk * (1.0 / jnp.sqrt(jnp.float32(ks * DIM)))
        for t in range(ks):
            blocks.append(wk[:, t, :].T)          # (DIM, F) plane for tap t
    conv_w = jnp.concatenate(blocks, axis=1)      # (DIM, TOTAL_TAPS*F) = (300, 2048)
    return {
        "conv_w": conv_w,
        "bn_gamma": jnp.ones((1, FILTERS), jnp.float32),   # torch BN defaults
        "bn_beta": jnp.zeros((1, FILTERS), jnp.float32),
        "fc1_w": (jax.random.normal(keys[-2], (4 * FILTERS, HIDDEN), jnp.float32)
                  * (1.0 / jnp.sqrt(jnp.float32(4 * FILTERS)))),
        "fc1_b": jax.random.normal(keys[-1], (1, HIDDEN), jnp.float32) * 0.01,
    }


if __name__ == "__main__":
    key = jax.random.PRNGKey(0)
    k1, k2, kp = jax.random.split(key, 3)
    B, L = 2, 16                                  # small demo shapes; L % 8 == 0
    x1 = jax.random.normal(k1, (B, L, DIM), jnp.float32)
    x2 = jax.random.normal(k2, (B, L, DIM), jnp.float32)
    params = init_params(kp)

    fwd = jax.jit(conv_text_forward)
    out = fwd(x1, x2, params)
    jax.block_until_ready(out)
    assert out.shape == (B,) and out.dtype == jnp.float32
    assert bool(jnp.all(jnp.isfinite(out)))
    print("KERNEL_OK")
</pallas_src>

<mosaic_0001>
module attributes {stable_mosaic.version = 11 : i64} {
  func.func @_convtext_kernel(%arg0: memref<2x16x300xf32, #tpu.memory_space<vmem>>, %arg1: memref<2x16x300xf32, #tpu.memory_space<vmem>>, %arg2: memref<300x2048xf32, #tpu.memory_space<vmem>>, %arg3: memref<1x128xf32, #tpu.memory_space<vmem>>, %arg4: memref<1x128xf32, #tpu.memory_space<vmem>>, %arg5: memref<512x256xf32, #tpu.memory_space<vmem>>, %arg6: memref<1x256xf32, #tpu.memory_space<vmem>>, %arg7: memref<2x1xf32, #tpu.memory_space<vmem>>) attributes {dimension_semantics = [], scalar_prefetch = 0 : i64, scratch_operands = 0 : i64, tpu.core_type = #tpu.core_type<tc>} {
    %c0 = arith.constant 0 : index
    %c0_0 = arith.constant 0 : index
    %c0_1 = arith.constant 0 : index
    %0 = vector.load %arg0[%c0, %c0_0, %c0_1] : memref<2x16x300xf32, #tpu.memory_space<vmem>>, vector<2x16x300xf32>
    %c0_2 = arith.constant 0 : index
    %c0_3 = arith.constant 0 : index
    %c0_4 = arith.constant 0 : index
    %1 = vector.load %arg1[%c0_2, %c0_3, %c0_4] : memref<2x16x300xf32, #tpu.memory_space<vmem>>, vector<2x16x300xf32>
    %2 = tpu.concatenate %0, %1 in 0 : vector<2x16x300xf32>, vector<2x16x300xf32> -> vector<4x16x300xf32>
    %3 = vector.shape_cast %2 : vector<4x16x300xf32> to vector<64x300xf32>
    %c0_5 = arith.constant 0 : index
    %c0_6 = arith.constant 0 : index
    %4 = vector.load %arg2[%c0_5, %c0_6] : memref<300x2048xf32, #tpu.memory_space<vmem>>, vector<300x2048xf32>
    %cst = arith.constant dense<0.000000e+00> : vector<64x2048xf32>
    %5 = tpu.matmul %3, %4, %cst {dimension_numbers = #tpu.dot_dimension_numbers<[1], [0], [0], [1], [0, 0, 1, 1], [], []>} : vector<64x300xf32>, vector<300x2048xf32>, vector<64x2048xf32> -> vector<64x2048xf32>
    %6 = vector.shape_cast %5 : vector<64x2048xf32> to vector<4x16x2048xf32>
    %c0_7 = arith.constant 0 : index
    %c0_8 = arith.constant 0 : index
    %7 = vector.load %arg3[%c0_7, %c0_8] : memref<1x128xf32, #tpu.memory_space<vmem>>, vector<1x128xf32>
    %8 = vector.shape_cast %7 : vector<1x128xf32> to vector<1x1x128xf32>
    %c0_9 = arith.constant 0 : index
    %c0_10 = arith.constant 0 : index
    %9 = vector.load %arg4[%c0_9, %c0_10] : memref<1x128xf32, #tpu.memory_space<vmem>>, vector<1x128xf32>
    %10 = vector.shape_cast %9 : vector<1x128xf32> to vector<1x1x128xf32>
    %11 = vector.extract_strided_slice %6 {offsets = [0, 0, 0], sizes = [4, 16, 128], strides = [1, 1, 1]} : vector<4x16x2048xf32> to vector<4x16x128xf32>
    %12 = vector.extract_strided_slice %11 {offsets = [0, 0, 0], sizes = [2, 16, 128], strides = [1, 1, 1]} : vector<4x16x128xf32> to vector<2x16x128xf32>
    %cst_11 = arith.constant dense<0.000000e+00> : vector<128xf32>
    %13 = vector.multi_reduction <add>, %12, %cst_11 [0, 1] : vector<2x16x128xf32> to vector<128xf32>
    %14 = vector.shape_cast %13 : vector<128xf32> to vector<1x1x128xf32>
    %cst_12 = arith.constant 3.200000e+01 : f32
    %15 = vector.broadcast %cst_12 : f32 to vector<1x1x128xf32>
    %16 = arith.divf %14, %15 : vector<1x1x128xf32>
    %17 = vector.broadcast %16 : vector<1x1x128xf32> to vector<2x16x128xf32>
    %18 = arith.subf %12, %17 : vector<2x16x128xf32>
    %19 = arith.mulf %18, %18 : vector<2x16x128xf32>
    %cst_13 = arith.constant dense<0.000000e+00> : vector<128xf32>
    %20 = vector.multi_reduction <add>, %19, %cst_13 [0, 1] : vector<2x16x128xf32> to vector<128xf32>
    %21 = vector.shape_cast %20 : vector<128xf32> to vector<1x1x128xf32>
    %cst_14 = arith.constant 3.200000e+01 : f32
    %22 = vector.broadcast %cst_14 : f32 to vector<1x1x128xf32>
    %23 = arith.divf %21, %22 : vector<1x1x128xf32>
    %24 = vector.broadcast %16 : vector<1x1x128xf32> to vector<2x16x128xf32>
    %25 = arith.subf %12, %24 : vector<2x16x128xf32>
    %cst_15 = arith.constant 9.99999974E-6 : f32
    %26 = vector.broadcast %cst_15 : f32 to vector<1x1x128xf32>
    %27 = arith.addf %23, %26 : vector<1x1x128xf32>
    %28 = math.rsqrt %27 : vector<1x1x128xf32>
    %29 = vector.broadcast %28 : vector<1x1x128xf32> to vector<2x16x128xf32>
    %30 = arith.mulf %25, %29 : vector<2x16x128xf32>
    %31 = vector.broadcast %8 : vector<1x1x128xf32> to vector<2x16x128xf32>
    %32 = arith.mulf %30, %31 : vector<2x16x128xf32>
    %33 = vector.broadcast %10 : vector<1x1x128xf32> to vector<2x16x128xf32>
    %34 = arith.addf %32, %33 : vector<2x16x128xf32>
    %cst_16 = arith.constant 0.000000e+00 : f32
    %35 = vector.broadcast %cst_16 : f32 to vector<2x16x128xf32>
    %36 = arith.maximumf %34, %35 : vector<2x16x128xf32>
    %37 = vector.extract_strided_slice %11 {offsets = [2, 0, 0], sizes = [2, 16, 128], strides = [1, 1, 1]} : vector<4x16x128xf32> to vector<2x16x128xf32>
    %cst_17 = arith.constant dense<0.000000e+00> : vector<128xf32>
    %38 = vector.multi_reduction <add>, %37, %cst_17 [0, 1] : vector<2x16x128xf32> to vector<128xf32>
    %39 = vector.shape_cast %38 : vector<128xf32> to vector<1x1x128xf32>
    %cst_18 = arith.constant 3.200000e+01 : f32
    %40 = vector.broadcast %cst_18 : f32 to vector<1x1x128xf32>
    %41 = arith.divf %39, %40 : vector<1x1x128xf32>
    %42 = vector.broadcast %41 : vector<1x1x128xf32> to vector<2x16x128xf32>
    %43 = arith.subf %37, %42 : vector<2x16x128xf32>
    %44 = arith.mulf %43, %43 : vector<2x16x128xf32>
    %cst_19 = arith.constant dense<0.000000e+00> : vector<128xf32>
    %45 = vector.multi_reduction <add>, %44, %cst_19 [0, 1] : vector<2x16x128xf32> to vector<128xf32>
    %46 = vector.shape_cast %45 : vector<128xf32> to vector<1x1x128xf32>
    %cst_20 = arith.constant 3.200000e+01 : f32
    %47 = vector.broadcast %cst_20 : f32 to vector<1x1x128xf32>
    %48 = arith.divf %46, %47 : vector<1x1x128xf32>
    %49 = vector.broadcast %41 : vector<1x1x128xf32> to vector<2x16x128xf32>
    %50 = arith.subf %37, %49 : vector<2x16x128xf32>
    %cst_21 = arith.constant 9.99999974E-6 : f32
    %51 = vector.broadcast %cst_21 : f32 to vector<1x1x128xf32>
    %52 = arith.addf %48, %51 : vector<1x1x128xf32>
    %53 = math.rsqrt %52 : vector<1x1x128xf32>
    %54 = vector.broadcast %53 : vector<1x1x128xf32> to vector<2x16x128xf32>
    %55 = arith.mulf %50, %54 : vector<2x16x128xf32>
    %56 = vector.broadcast %8 : vector<1x1x128xf32> to vector<2x16x128xf32>
    %57 = arith.mulf %55, %56 : vector<2x16x128xf32>
    %58 = vector.broadcast %10 : vector<1x1x128xf32> to vector<2x16x128xf32>
    %59 = arith.addf %57, %58 : vector<2x16x128xf32>
    %cst_22 = arith.constant 0.000000e+00 : f32
    %60 = vector.broadcast %cst_22 : f32 to vector<2x16x128xf32>
    %61 = arith.maximumf %59, %60 : vector<2x16x128xf32>
    %62 = arith.mulf %36, %36 : vector<2x16x128xf32>
    %cst_23 = arith.constant dense<0.000000e+00> : vector<2x16xf32>
    %63 = vector.multi_reduction <add>, %62, %cst_23 [2] : vector<2x16x128xf32> to vector<2x16xf32>
    %64 = arith.mulf %61, %61 : vector<2x16x128xf32>
    %cst_24 = arith.constant dense<0.000000e+00> : vector<2x16xf32>
    %65 = vector.multi_reduction <add>, %64, %cst_24 [2] : vector<2x16x128xf32> to vector<2x16xf32>
    "tpu.trace_start"() <{level = 10 : i32, message = "bjf,bif->bji"}> : () -> ()
    %cst_25 = arith.constant dense<0.000000e+00> : vector<2x16x16xf32>
    %66 = tpu.matmul %61, %36, %cst_25 {dimension_numbers = #tpu.dot_dimension_numbers<[2], [2], [1], [1], [0, 0, 0, 1, 1, 1], [0], [0]>} : vector<2x16x128xf32>, vector<2x16x128xf32>, vector<2x16x16xf32> -> vector<2x16x16xf32>
    "tpu.trace_stop"() : () -> ()
    %67 = vector.shape_cast %65 : vector<2x16xf32> to vector<2x16x1xf32>
    %68 = vector.shape_cast %63 : vector<2x16xf32> to vector<2x1x16xf32>
    %69 = vector.broadcast %67 : vector<2x16x1xf32> to vector<2x16x16xf32>
    %70 = vector.broadcast %68 : vector<2x1x16xf32> to vector<2x16x16xf32>
    %71 = arith.addf %69, %70 : vector<2x16x16xf32>
    %cst_26 = arith.constant 2.000000e+00 : f32
    %72 = vector.broadcast %cst_26 : f32 to vector<2x16x16xf32>
    %73 = arith.mulf %72, %66 : vector<2x16x16xf32>
    %74 = arith.subf %71, %73 : vector<2x16x16xf32>
    %cst_27 = arith.constant 0.000000e+00 : f32
    %75 = vector.broadcast %cst_27 : f32 to vector<2x16x16xf32>
    %76 = arith.maximumf %74, %75 : vector<2x16x16xf32>
    %cst_28 = arith.constant 9.99999997E-7 : f32
    %77 = vector.broadcast %cst_28 : f32 to vector<2x16x16xf32>
    %78 = arith.addf %76, %77 : vector<2x16x16xf32>
    %79 = math.sqrt %78 : vector<2x16x16xf32>
    %cst_29 = arith.constant 1.000000e+00 : f32
    %80 = vector.broadcast %cst_29 : f32 to vector<2x16x16xf32>
    %81 = arith.addf %79, %80 : vector<2x16x16xf32>
    %cst_30 = arith.constant 1.000000e+00 : f32
    %82 = vector.broadcast %cst_30 : f32 to vector<2x16x16xf32>
    %83 = arith.divf %82, %81 : vector<2x16x16xf32>
    %cst_31 = arith.constant dense<0.000000e+00> : vector<2x16xf32>
    %84 = vector.multi_reduction <add>, %83, %cst_31 [1] : vector<2x16x16xf32> to vector<2x16xf32>
    %85 = vector.shape_cast %84 : vector<2x16xf32> to vector<2x1x16xf32>
    %cst_32 = arith.constant dense<0.000000e+00> : vector<2x16xf32>
    %86 = vector.multi_reduction <add>, %83, %cst_32 [2] : vector<2x16x16xf32> to vector<2x16xf32>
    %87 = vector.shape_cast %86 : vector<2x16xf32> to vector<2x1x16xf32>
    "tpu.trace_start"() <{level = 10 : i32, message = "bui,bif->buf"}> : () -> ()
    %cst_33 = arith.constant dense<0.000000e+00> : vector<2x1x128xf32>
    %88 = tpu.matmul %85, %36, %cst_33 {dimension_numbers = #tpu.dot_dimension_numbers<[2], [1], [1], [2], [0, 0, 0, 1, 1, 2], [0], [0]>} : vector<2x1x16xf32>, vector<2x16x128xf32>, vector<2x1x128xf32> -> vector<2x1x128xf32>
    "tpu.trace_stop"() : () -> ()
    %89 = vector.shape_cast %88 : vector<2x1x128xf32> to vector<2x128xf32>
    "tpu.trace_start"() <{level = 10 : i32, message = "buj,bjf->buf"}> : () -> ()
    %cst_34 = arith.constant dense<0.000000e+00> : vector<2x1x128xf32>
    %90 = tpu.matmul %87, %61, %cst_34 {dimension_numbers = #tpu.dot_dimension_numbers<[2], [1], [1], [2], [0, 0, 0, 1, 1, 2], [0], [0]>} : vector<2x1x16xf32>, vector<2x16x128xf32>, vector<2x1x128xf32> -> vector<2x1x128xf32>
    "tpu.trace_stop"() : () -> ()
    %91 = vector.shape_cast %90 : vector<2x1x128xf32> to vector<2x128xf32>
    %92 = vector.extract_strided_slice %6 {offsets = [0, 0, 128], sizes = [4, 14, 128], strides = [1, 1, 1]} : vector<4x16x2048xf32> to vector<4x14x128xf32>
    %93 = vector.extract_strided_slice %6 {offsets = [0, 1, 256], sizes = [4, 14, 128], strides = [1, 1, 1]} : vector<4x16x2048xf32> to vector<4x14x128xf32>
    %94 = arith.addf %92, %93 : vector<4x14x128xf32>
    %95 = vector.extract_strided_slice %6 {offsets = [0, 2, 384], sizes = [4, 14, 128], strides = [1, 1, 1]} : vector<4x16x2048xf32> to vector<4x14x128xf32>
    %96 = arith.addf %94, %95 : vector<4x14x128xf32>
    %97 = vector.extract_strided_slice %96 {offsets = [0, 0, 0], sizes = [2, 14, 128], strides = [1, 1, 1]} : vector<4x14x128xf32> to vector<2x14x128xf32>
    %cst_35 = arith.constant dense<0.000000e+00> : vector<128xf32>
    %98 = vector.multi_reduction <add>, %97, %cst_35 [0, 1] : vector<2x14x128xf32> to vector<128xf32>
    %99 = vector.shape_cast %98 : vector<128xf32> to vector<1x1x128xf32>
    %cst_36 = arith.constant 2.800000e+01 : f32
    %100 = vector.broadcast %cst_36 : f32 to vector<1x1x128xf32>
    %101 = arith.divf %99, %100 : vector<1x1x128xf32>
    %102 = vector.broadcast %101 : vector<1x1x128xf32> to vector<2x14x128xf32>
    %103 = arith.subf %97, %102 : vector<2x14x128xf32>
    %104 = arith.mulf %103, %103 : vector<2x14x128xf32>
    %cst_37 = arith.constant dense<0.000000e+00> : vector<128xf32>
    %105 = vector.multi_reduction <add>, %104, %cst_37 [0, 1] : vector<2x14x128xf32> to vector<128xf32>
    %106 = vector.shape_cast %105 : vector<128xf32> to vector<1x1x128xf32>
    %cst_38 = arith.constant 2.800000e+01 : f32
    %107 = vector.broadcast %cst_38 : f32 to vector<1x1x128xf32>
    %108 = arith.divf %106, %107 : vector<1x1x128xf32>
    %109 = vector.broadcast %101 : vector<1x1x128xf32> to vector<2x14x128xf32>
    %110 = arith.subf %97, %109 : vector<2x14x128xf32>
    %cst_39 = arith.constant 9.99999974E-6 : f32
    %111 = vector.broadcast %cst_39 : f32 to vector<1x1x128xf32>
    %112 = arith.addf %108, %111 : vector<1x1x128xf32>
    %113 = math.rsqrt %112 : vector<1x1x128xf32>
    %114 = vector.broadcast %113 : vector<1x1x128xf32> to vector<2x14x128xf32>
    %115 = arith.mulf %110, %114 : vector<2x14x128xf32>
    %116 = vector.broadcast %8 : vector<1x1x128xf32> to vector<2x14x128xf32>
    %117 = arith.mulf %115, %116 : vector<2x14x128xf32>
    %118 = vector.broadcast %10 : vector<1x1x128xf32> to vector<2x14x128xf32>
    %119 = arith.addf %117, %118 : vector<2x14x128xf32>
    %cst_40 = arith.constant 0.000000e+00 : f32
    %120 = vector.broadcast %cst_40 : f32 to vector<2x14x128xf32>
    %121 = arith.maximumf %119, %120 : vector<2x14x128xf32>
    %122 = vector.extract_strided_slice %96 {offsets = [2, 0, 0], sizes = [2, 14, 128], strides = [1, 1, 1]} : vector<4x14x128xf32> to vector<2x14x128xf32>
    %cst_41 = arith.constant dense<0.000000e+00> : vector<128xf32>
    %123 = vector.multi_reduction <add>, %122, %cst_41 [0, 1] : vector<2x14x128xf32> to vector<128xf32>
    %124 = vector.shape_cast %123 : vector<128xf32> to vector<1x1x128xf32>
    %cst_42 = arith.constant 2.800000e+01 : f32
    %125 = vector.broadcast %cst_42 : f32 to vector<1x1x128xf32>
    %126 = arith.divf %124, %125 : vector<1x1x128xf32>
    %127 = vector.broadcast %126 : vector<1x1x128xf32> to vector<2x14x128xf32>
    %128 = arith.subf %122, %127 : vector<2x14x128xf32>
    %129 = arith.mulf %128, %128 : vector<2x14x128xf32>
    %cst_43 = arith.constant dense<0.000000e+00> : vector<128xf32>
    %130 = vector.multi_reduction <add>, %129, %cst_43 [0, 1] : vector<2x14x128xf32> to vector<128xf32>
    %131 = vector.shape_cast %130 : vector<128xf32> to vector<1x1x128xf32>
    %cst_44 = arith.constant 2.800000e+01 : f32
    %132 = vector.broadcast %cst_44 : f32 to vector<1x1x128xf32>
    %133 = arith.divf %131, %132 : vector<1x1x128xf32>
    %134 = vector.broadcast %126 : vector<1x1x128xf32> to vector<2x14x128xf32>
    %135 = arith.subf %122, %134 : vector<2x14x128xf32>
    %cst_45 = arith.constant 9.99999974E-6 : f32
    %136 = vector.broadcast %cst_45 : f32 to vector<1x1x128xf32>
    %137 = arith.addf %133, %136 : vector<1x1x128xf32>
    %138 = math.rsqrt %137 : vector<1x1x128xf32>
    %139 = vector.broadcast %138 : vector<1x1x128xf32> to vector<2x14x128xf32>
    %140 = arith.mulf %135, %139 : vector<2x14x128xf32>
    %141 = vector.broadcast %8 : vector<1x1x128xf32> to vector<2x14x128xf32>
    %142 = arith.mulf %140, %141 : vector<2x14x128xf32>
    %143 = vector.broadcast %10 : vector<1x1x128xf32> to vector<2x14x128xf32>
    %144 = arith.addf %142, %143 : vector<2x14x128xf32>
    %cst_46 = arith.constant 0.000000e+00 : f32
    %145 = vector.broadcast %cst_46 : f32 to vector<2x14x128xf32>
    %146 = arith.maximumf %144, %145 : vector<2x14x128xf32>
    %147 = arith.mulf %121, %121 : vector<2x14x128xf32>
    %cst_47 = arith.constant dense<0.000000e+00> : vector<2x14xf32>
    %148 = vector.multi_reduction <add>, %147, %cst_47 [2] : vector<2x14x128xf32> to vector<2x14xf32>
    %149 = arith.mulf %146, %146 : vector<2x14x128xf32>
    %cst_48 = arith.constant dense<0.000000e+00> : vector<2x14xf32>
    %150 = vector.multi_reduction <add>, %149, %cst_48 [2] : vector<2x14x128xf32> to vector<2x14xf32>
    "tpu.trace_start"() <{level = 10 : i32, message = "bjf,bif->bji"}> : () -> ()
    %cst_49 = arith.constant dense<0.000000e+00> : vector<2x14x14xf32>
    %151 = tpu.matmul %146, %121, %cst_49 {dimension_numbers = #tpu.dot_dimension_numbers<[2], [2], [1], [1], [0, 0, 0, 1, 1, 1], [0], [0]>} : vector<2x14x128xf32>, vector<2x14x128xf32>, vector<2x14x14xf32> -> vector<2x14x14xf32>
    "tpu.trace_stop"() : () -> ()
    %152 = vector.shape_cast %150 : vector<2x14xf32> to vector<2x14x1xf32>
    %153 = vector.shape_cast %148 : vector<2x14xf32> to vector<2x1x14xf32>
    %154 = vector.broadcast %152 : vector<2x14x1xf32> to vector<2x14x14xf32>
    %155 = vector.broadcast %153 : vector<2x1x14xf32> to vector<2x14x14xf32>
    %156 = arith.addf %154, %155 : vector<2x14x14xf32>
    %cst_50 = arith.constant 2.000000e+00 : f32
    %157 = vector.broadcast %cst_50 : f32 to vector<2x14x14xf32>
    %158 = arith.mulf %157, %151 : vector<2x14x14xf32>
    %159 = arith.subf %156, %158 : vector<2x14x14xf32>
    %cst_51 = arith.constant 0.000000e+00 : f32
    %160 = vector.broadcast %cst_51 : f32 to vector<2x14x14xf32>
    %161 = arith.maximumf %159, %160 : vector<2x14x14xf32>
    %cst_52 = arith.constant 9.99999997E-7 : f32
    %162 = vector.broadcast %cst_52 : f32 to vector<2x14x14xf32>
    %163 = arith.addf %161, %162 : vector<2x14x14xf32>
    %164 = math.sqrt %163 : vector<2x14x14xf32>
    %cst_53 = arith.constant 1.000000e+00 : f32
    %165 = vector.broadcast %cst_53 : f32 to vector<2x14x14xf32>
    %166 = arith.addf %164, %165 : vector<2x14x14xf32>
    %cst_54 = arith.constant 1.000000e+00 : f32
    %167 = vector.broadcast %cst_54 : f32 to vector<2x14x14xf32>
    %168 = arith.divf %167, %166 : vector<2x14x14xf32>
    %cst_55 = arith.constant dense<0.000000e+00> : vector<2x14xf32>
    %169 = vector.multi_reduction <add>, %168, %cst_55 [1] : vector<2x14x14xf32> to vector<2x14xf32>
    %170 = vector.shape_cast %169 : vector<2x14xf32> to vector<2x1x14xf32>
    %cst_56 = arith.constant dense<0.000000e+00> : vector<2x14xf32>
    %171 = vector.multi_reduction <add>, %168, %cst_56 [2] : vector<2x14x14xf32> to vector<2x14xf32>
    %172 = vector.shape_cast %171 : vector<2x14xf32> to vector<2x1x14xf32>
    "tpu.trace_start"() <{level = 10 : i32, message = "bui,bif->buf"}> : () -> ()
    %cst_57 = arith.constant dense<0.000000e+00> : vector<2x1x128xf32>
    %173 = tpu.matmul %170, %121, %cst_57 {dimension_numbers = #tpu.dot_dimension_numbers<[2], [1], [1], [2], [0, 0, 0, 1, 1, 2], [0], [0]>} : vector<2x1x14xf32>, vector<2x14x128xf32>, vector<2x1x128xf32> -> vector<2x1x128xf32>
    "tpu.trace_stop"() : () -> ()
    %174 = vector.shape_cast %173 : vector<2x1x128xf32> to vector<2x128xf32>
    "tpu.trace_start"() <{level = 10 : i32, message = "buj,bjf->buf"}> : () -> ()
    %cst_58 = arith.constant dense<0.000000e+00> : vector<2x1x128xf32>
    %175 = tpu.matmul %172, %146, %cst_58 {dimension_numbers = #tpu.dot_dimension_numbers<[2], [1], [1], [2], [0, 0, 0, 1, 1, 2], [0], [0]>} : vector<2x1x14xf32>, vector<2x14x128xf32>, vector<2x1x128xf32> -> vector<2x1x128xf32>
    "tpu.trace_stop"() : () -> ()
    %176 = vector.shape_cast %175 : vector<2x1x128xf32> to vector<2x128xf32>
    %177 = vector.extract_strided_slice %6 {offsets = [0, 0, 512], sizes = [4, 12, 128], strides = [1, 1, 1]} : vector<4x16x2048xf32> to vector<4x12x128xf32>
    %178 = vector.extract_strided_slice %6 {offsets = [0, 1, 640], sizes = [4, 12, 128], strides = [1, 1, 1]} : vector<4x16x2048xf32> to vector<4x12x128xf32>
    %179 = arith.addf %177, %178 : vector<4x12x128xf32>
    %180 = vector.extract_strided_slice %6 {offsets = [0, 2, 768], sizes = [4, 12, 128], strides = [1, 1, 1]} : vector<4x16x2048xf32> to vector<4x12x128xf32>
    %181 = arith.addf %179, %180 : vector<4x12x128xf32>
    %182 = vector.extract_strided_slice %6 {offsets = [0, 3, 896], sizes = [4, 12, 128], strides = [1, 1, 1]} : vector<4x16x2048xf32> to vector<4x12x128xf32>
    %183 = arith.addf %181, %182 : vector<4x12x128xf32>
    %184 = vector.extract_strided_slice %6 {offsets = [0, 4, 1024], sizes = [4, 12, 128], strides = [1, 1, 1]} : vector<4x16x2048xf32> to vector<4x12x128xf32>
    %185 = arith.addf %183, %184 : vector<4x12x128xf32>
    %186 = vector.extract_strided_slice %185 {offsets = [0, 0, 0], sizes = [2, 12, 128], strides = [1, 1, 1]} : vector<4x12x128xf32> to vector<2x12x128xf32>
    %cst_59 = arith.constant dense<0.000000e+00> : vector<128xf32>
    %187 = vector.multi_reduction <add>, %186, %cst_59 [0, 1] : vector<2x12x128xf32> to vector<128xf32>
    %188 = vector.shape_cast %187 : vector<128xf32> to vector<1x1x128xf32>
    %cst_60 = arith.constant 2.400000e+01 : f32
    %189 = vector.broadcast %cst_60 : f32 to vector<1x1x128xf32>
    %190 = arith.divf %188, %189 : vector<1x1x128xf32>
    %191 = vector.broadcast %190 : vector<1x1x128xf32> to vector<2x12x128xf32>
    %192 = arith.subf %186, %191 : vector<2x12x128xf32>
    %193 = arith.mulf %192, %192 : vector<2x12x128xf32>
    %cst_61 = arith.constant dense<0.000000e+00> : vector<128xf32>
    %194 = vector.multi_reduction <add>, %193, %cst_61 [0, 1] : vector<2x12x128xf32> to vector<128xf32>
    %195 = vector.shape_cast %194 : vector<128xf32> to vector<1x1x128xf32>
    %cst_62 = arith.constant 2.400000e+01 : f32
    %196 = vector.broadcast %cst_62 : f32 to vector<1x1x128xf32>
    %197 = arith.divf %195, %196 : vector<1x1x128xf32>
    %198 = vector.broadcast %190 : vector<1x1x128xf32> to vector<2x12x128xf32>
    %199 = arith.subf %186, %198 : vector<2x12x128xf32>
    %cst_63 = arith.constant 9.99999974E-6 : f32
    %200 = vector.broadcast %cst_63 : f32 to vector<1x1x128xf32>
    %201 = arith.addf %197, %200 : vector<1x1x128xf32>
    %202 = math.rsqrt %201 : vector<1x1x128xf32>
    %203 = vector.broadcast %202 : vector<1x1x128xf32> to vector<2x12x128xf32>
    %204 = arith.mulf %199, %203 : vector<2x12x128xf32>
    %205 = vector.broadcast %8 : vector<1x1x128xf32> to vector<2x12x128xf32>
    %206 = arith.mulf %204, %205 : vector<2x12x128xf32>
    %207 = vector.broadcast %10 : vector<1x1x128xf32> to vector<2x12x128xf32>
    %208 = arith.addf %206, %207 : vector<2x12x128xf32>
    %cst_64 = arith.constant 0.000000e+00 : f32
    %209 = vector.broadcast %cst_64 : f32 to vector<2x12x128xf32>
    %210 = arith.maximumf %208, %209 : vector<2x12x128xf32>
    %211 = vector.extract_strided_slice %185 {offsets = [2, 0, 0], sizes = [2, 12, 128], strides = [1, 1, 1]} : vector<4x12x128xf32> to vector<2x12x128xf32>
    %cst_65 = arith.constant dense<0.000000e+00> : vector<128xf32>
    %212 = vector.multi_reduction <add>, %211, %cst_65 [0, 1] : vector<2x12x128xf32> to vector<128xf32>
    %213 = vector.shape_cast %212 : vector<128xf32> to vector<1x1x128xf32>
    %cst_66 = arith.constant 2.400000e+01 : f32
    %214 = vector.broadcast %cst_66 : f32 to vector<1x1x128xf32>
    %215 = arith.divf %213, %214 : vector<1x1x128xf32>
    %216 = vector.broadcast %215 : vector<1x1x128xf32> to vector<2x12x128xf32>
    %217 = arith.subf %211, %216 : vector<2x12x128xf32>
    %218 = arith.mulf %217, %217 : vector<2x12x128xf32>
    %cst_67 = arith.constant dense<0.000000e+00> : vector<128xf32>
    %219 = vector.multi_reduction <add>, %218, %cst_67 [0, 1] : vector<2x12x128xf32> to vector<128xf32>
    %220 = vector.shape_cast %219 : vector<128xf32> to vector<1x1x128xf32>
    %cst_68 = arith.constant 2.400000e+01 : f32
    %221 = vector.broadcast %cst_68 : f32 to vector<1x1x128xf32>
    %222 = arith.divf %220, %221 : vector<1x1x128xf32>
    %223 = vector.broadcast %215 : vector<1x1x128xf32> to vector<2x12x128xf32>
    %224 = arith.subf %211, %223 : vector<2x12x128xf32>
    %cst_69 = arith.constant 9.99999974E-6 : f32
    %225 = vector.broadcast %cst_69 : f32 to vector<1x1x128xf32>
    %226 = arith.addf %222, %225 : vector<1x1x128xf32>
    %227 = math.rsqrt %226 : vector<1x1x128xf32>
    %228 = vector.broadcast %227 : vector<1x1x128xf32> to vector<2x12x128xf32>
    %229 = arith.mulf %224, %228 : vector<2x12x128xf32>
    %230 = vector.broadcast %8 : vector<1x1x128xf32> to vector<2x12x128xf32>
    %231 = arith.mulf %229, %230 : vector<2x12x128xf32>
    %232 = vector.broadcast %10 : vector<1x1x128xf32> to vector<2x12x128xf32>
    %233 = arith.addf %231, %232 : vector<2x12x128xf32>
    %cst_70 = arith.constant 0.000000e+00 : f32
    %234 = vector.broadcast %cst_70 : f32 to vector<2x12x128xf32>
    %235 = arith.maximumf %233, %234 : vector<2x12x128xf32>
    %236 = arith.mulf %210, %210 : vector<2x12x128xf32>
    %cst_71 = arith.constant dense<0.000000e+00> : vector<2x12xf32>
    %237 = vector.multi_reduction <add>, %236, %cst_71 [2] : vector<2x12x128xf32> to vector<2x12xf32>
    %238 = arith.mulf %235, %235 : vector<2x12x128xf32>
    %cst_72 = arith.constant dense<0.000000e+00> : vector<2x12xf32>
    %239 = vector.multi_reduction <add>, %238, %cst_72 [2] : vector<2x12x128xf32> to vector<2x12xf32>
    "tpu.trace_start"() <{level = 10 : i32, message = "bjf,bif->bji"}> : () -> ()
    %cst_73 = arith.constant dense<0.000000e+00> : vector<2x12x12xf32>
    %240 = tpu.matmul %235, %210, %cst_73 {dimension_numbers = #tpu.dot_dimension_numbers<[2], [2], [1], [1], [0, 0, 0, 1, 1, 1], [0], [0]>} : vector<2x12x128xf32>, vector<2x12x128xf32>, vector<2x12x12xf32> -> vector<2x12x12xf32>
    "tpu.trace_stop"() : () -> ()
    %241 = vector.shape_cast %239 : vector<2x12xf32> to vector<2x12x1xf32>
    %242 = vector.shape_cast %237 : vector<2x12xf32> to vector<2x1x12xf32>
    %243 = vector.broadcast %241 : vector<2x12x1xf32> to vector<2x12x12xf32>
    %244 = vector.broadcast %242 : vector<2x1x12xf32> to vector<2x12x12xf32>
    %245 = arith.addf %243, %244 : vector<2x12x12xf32>
    %cst_74 = arith.constant 2.000000e+00 : f32
    %246 = vector.broadcast %cst_74 : f32 to vector<2x12x12xf32>
    %247 = arith.mulf %246, %240 : vector<2x12x12xf32>
    %248 = arith.subf %245, %247 : vector<2x12x12xf32>
    %cst_75 = arith.constant 0.000000e+00 : f32
    %249 = vector.broadcast %cst_75 : f32 to vector<2x12x12xf32>
    %250 = arith.maximumf %248, %249 : vector<2x12x12xf32>
    %cst_76 = arith.constant 9.99999997E-7 : f32
    %251 = vector.broadcast %cst_76 : f32 to vector<2x12x12xf32>
    %252 = arith.addf %250, %251 : vector<2x12x12xf32>
    %253 = math.sqrt %252 : vector<2x12x12xf32>
    %cst_77 = arith.constant 1.000000e+00 : f32
    %254 = vector.broadcast %cst_77 : f32 to vector<2x12x12xf32>
    %255 = arith.addf %253, %254 : vector<2x12x12xf32>
    %cst_78 = arith.constant 1.000000e+00 : f32
    %256 = vector.broadcast %cst_78 : f32 to vector<2x12x12xf32>
    %257 = arith.divf %256, %255 : vector<2x12x12xf32>
    %cst_79 = arith.constant dense<0.000000e+00> : vector<2x12xf32>
    %258 = vector.multi_reduction <add>, %257, %cst_79 [1] : vector<2x12x12xf32> to vector<2x12xf32>
    %259 = vector.shape_cast %258 : vector<2x12xf32> to vector<2x1x12xf32>
    %cst_80 = arith.constant dense<0.000000e+00> : vector<2x12xf32>
    %260 = vector.multi_reduction <add>, %257, %cst_80 [2] : vector<2x12x12xf32> to vector<2x12xf32>
    %261 = vector.shape_cast %260 : vector<2x12xf32> to vector<2x1x12xf32>
    "tpu.trace_start"() <{level = 10 : i32, message = "bui,bif->buf"}> : () -> ()
    %cst_81 = arith.constant dense<0.000000e+00> : vector<2x1x128xf32>
    %262 = tpu.matmul %259, %210, %cst_81 {dimension_numbers = #tpu.dot_dimension_numbers<[2], [1], [1], [2], [0, 0, 0, 1, 1, 2], [0], [0]>} : vector<2x1x12xf32>, vector<2x12x128xf32>, vector<2x1x128xf32> -> vector<2x1x128xf32>
    "tpu.trace_stop"() : () -> ()
    %263 = vector.shape_cast %262 : vector<2x1x128xf32> to vector<2x128xf32>
    "tpu.trace_start"() <{level = 10 : i32, message = "buj,bjf->buf"}> : () -> ()
    %cst_82 = arith.constant dense<0.000000e+00> : vector<2x1x128xf32>
    %264 = tpu.matmul %261, %235, %cst_82 {dimension_numbers = #tpu.dot_dimension_numbers<[2], [1], [1], [2], [0, 0, 0, 1, 1, 2], [0], [0]>} : vector<2x1x12xf32>, vector<2x12x128xf32>, vector<2x1x128xf32> -> vector<2x1x128xf32>
    "tpu.trace_stop"() : () -> ()
    %265 = vector.shape_cast %264 : vector<2x1x128xf32> to vector<2x128xf32>
    %266 = vector.extract_strided_slice %6 {offsets = [0, 0, 1152], sizes = [4, 10, 128], strides = [1, 1, 1]} : vector<4x16x2048xf32> to vector<4x10x128xf32>
    %267 = vector.extract_strided_slice %6 {offsets = [0, 1, 1280], sizes = [4, 10, 128], strides = [1, 1, 1]} : vector<4x16x2048xf32> to vector<4x10x128xf32>
    %268 = arith.addf %266, %267 : vector<4x10x128xf32>
    %269 = vector.extract_strided_slice %6 {offsets = [0, 2, 1408], sizes = [4, 10, 128], strides = [1, 1, 1]} : vector<4x16x2048xf32> to vector<4x10x128xf32>
    %270 = arith.addf %268, %269 : vector<4x10x128xf32>
    %271 = vector.extract_strided_slice %6 {offsets = [0, 3, 1536], sizes = [4, 10, 128], strides = [1, 1, 1]} : vector<4x16x2048xf32> to vector<4x10x128xf32>
    %272 = arith.addf %270, %271 : vector<4x10x128xf32>
    %273 = vector.extract_strided_slice %6 {offsets = [0, 4, 1664], sizes = [4, 10, 128], strides = [1, 1, 1]} : vector<4x16x2048xf32> to vector<4x10x128xf32>
    %274 = arith.addf %272, %273 : vector<4x10x128xf32>
    %275 = vector.extract_strided_slice %6 {offsets = [0, 5, 1792], sizes = [4, 10, 128], strides = [1, 1, 1]} : vector<4x16x2048xf32> to vector<4x10x128xf32>
    %276 = arith.addf %274, %275 : vector<4x10x128xf32>
    %277 = vector.extract_strided_slice %6 {offsets = [0, 6, 1920], sizes = [4, 10, 128], strides = [1, 1, 1]} : vector<4x16x2048xf32> to vector<4x10x128xf32>
    %278 = arith.addf %276, %277 : vector<4x10x128xf32>
    %279 = vector.extract_strided_slice %278 {offsets = [0, 0, 0], sizes = [2, 10, 128], strides = [1, 1, 1]} : vector<4x10x128xf32> to vector<2x10x128xf32>
    %cst_83 = arith.constant dense<0.000000e+00> : vector<128xf32>
    %280 = vector.multi_reduction <add>, %279, %cst_83 [0, 1] : vector<2x10x128xf32> to vector<128xf32>
    %281 = vector.shape_cast %280 : vector<128xf32> to vector<1x1x128xf32>
    %cst_84 = arith.constant 2.000000e+01 : f32
    %282 = vector.broadcast %cst_84 : f32 to vector<1x1x128xf32>
    %283 = arith.divf %281, %282 : vector<1x1x128xf32>
    %284 = vector.broadcast %283 : vector<1x1x128xf32> to vector<2x10x128xf32>
    %285 = arith.subf %279, %284 : vector<2x10x128xf32>
    %286 = arith.mulf %285, %285 : vector<2x10x128xf32>
    %cst_85 = arith.constant dense<0.000000e+00> : vector<128xf32>
    %287 = vector.multi_reduction <add>, %286, %cst_85 [0, 1] : vector<2x10x128xf32> to vector<128xf32>
    %288 = vector.shape_cast %287 : vector<128xf32> to vector<1x1x128xf32>
    %cst_86 = arith.constant 2.000000e+01 : f32
    %289 = vector.broadcast %cst_86 : f32 to vector<1x1x128xf32>
    %290 = arith.divf %288, %289 : vector<1x1x128xf32>
    %291 = vector.broadcast %283 : vector<1x1x128xf32> to vector<2x10x128xf32>
    %292 = arith.subf %279, %291 : vector<2x10x128xf32>
    %cst_87 = arith.constant 9.99999974E-6 : f32
    %293 = vector.broadcast %cst_87 : f32 to vector<1x1x128xf32>
    %294 = arith.addf %290, %293 : vector<1x1x128xf32>
    %295 = math.rsqrt %294 : vector<1x1x128xf32>
    %296 = vector.broadcast %295 : vector<1x1x128xf32> to vector<2x10x128xf32>
    %297 = arith.mulf %292, %296 : vector<2x10x128xf32>
    %298 = vector.broadcast %8 : vector<1x1x128xf32> to vector<2x10x128xf32>
    %299 = arith.mulf %297, %298 : vector<2x10x128xf32>
    %300 = vector.broadcast %10 : vector<1x1x128xf32> to vector<2x10x128xf32>
    %301 = arith.addf %299, %300 : vector<2x10x128xf32>
    %cst_88 = arith.constant 0.000000e+00 : f32
    %302 = vector.broadcast %cst_88 : f32 to vector<2x10x128xf32>
    %303 = arith.maximumf %301, %302 : vector<2x10x128xf32>
    %304 = vector.extract_strided_slice %278 {offsets = [2, 0, 0], sizes = [2, 10, 128], strides = [1, 1, 1]} : vector<4x10x128xf32> to vector<2x10x128xf32>
    %cst_89 = arith.constant dense<0.000000e+00> : vector<128xf32>
    %305 = vector.multi_reduction <add>, %304, %cst_89 [0, 1] : vector<2x10x128xf32> to vector<128xf32>
    %306 = vector.shape_cast %305 : vector<128xf32> to vector<1x1x128xf32>
    %cst_90 = arith.constant 2.000000e+01 : f32
    %307 = vector.broadcast %cst_90 : f32 to vector<1x1x128xf32>
    %308 = arith.divf %306, %307 : vector<1x1x128xf32>
    %309 = vector.broadcast %308 : vector<1x1x128xf32> to vector<2x10x128xf32>
    %310 = arith.subf %304, %309 : vector<2x10x128xf32>
    %311 = arith.mulf %310, %310 : vector<2x10x128xf32>
    %cst_91 = arith.constant dense<0.000000e+00> : vector<128xf32>
    %312 = vector.multi_reduction <add>, %311, %cst_91 [0, 1] : vector<2x10x128xf32> to vector<128xf32>
    %313 = vector.shape_cast %312 : vector<128xf32> to vector<1x1x128xf32>
    %cst_92 = arith.constant 2.000000e+01 : f32
    %314 = vector.broadcast %cst_92 : f32 to vector<1x1x128xf32>
    %315 = arith.divf %313, %314 : vector<1x1x128xf32>
    %316 = vector.broadcast %308 : vector<1x1x128xf32> to vector<2x10x128xf32>
    %317 = arith.subf %304, %316 : vector<2x10x128xf32>
    %cst_93 = arith.constant 9.99999974E-6 : f32
    %318 = vector.broadcast %cst_93 : f32 to vector<1x1x128xf32>
    %319 = arith.addf %315, %318 : vector<1x1x128xf32>
    %320 = math.rsqrt %319 : vector<1x1x128xf32>
    %321 = vector.broadcast %320 : vector<1x1x128xf32> to vector<2x10x128xf32>
    %322 = arith.mulf %317, %321 : vector<2x10x128xf32>
    %323 = vector.broadcast %8 : vector<1x1x128xf32> to vector<2x10x128xf32>
    %324 = arith.mulf %322, %323 : vector<2x10x128xf32>
    %325 = vector.broadcast %10 : vector<1x1x128xf32> to vector<2x10x128xf32>
    %326 = arith.addf %324, %325 : vector<2x10x128xf32>
    %cst_94 = arith.constant 0.000000e+00 : f32
    %327 = vector.broadcast %cst_94 : f32 to vector<2x10x128xf32>
    %328 = arith.maximumf %326, %327 : vector<2x10x128xf32>
    %329 = arith.mulf %303, %303 : vector<2x10x128xf32>
    %cst_95 = arith.constant dense<0.000000e+00> : vector<2x10xf32>
    %330 = vector.multi_reduction <add>, %329, %cst_95 [2] : vector<2x10x128xf32> to vector<2x10xf32>
    %331 = arith.mulf %328, %328 : vector<2x10x128xf32>
    %cst_96 = arith.constant dense<0.000000e+00> : vector<2x10xf32>
    %332 = vector.multi_reduction <add>, %331, %cst_96 [2] : vector<2x10x128xf32> to vector<2x10xf32>
    "tpu.trace_start"() <{level = 10 : i32, message = "bjf,bif->bji"}> : () -> ()
    %cst_97 = arith.constant dense<0.000000e+00> : vector<2x10x10xf32>
    %333 = tpu.matmul %328, %303, %cst_97 {dimension_numbers = #tpu.dot_dimension_numbers<[2], [2], [1], [1], [0, 0, 0, 1, 1, 1], [0], [0]>} : vector<2x10x128xf32>, vector<2x10x128xf32>, vector<2x10x10xf32> -> vector<2x10x10xf32>
    "tpu.trace_stop"() : () -> ()
    %334 = vector.shape_cast %332 : vector<2x10xf32> to vector<2x10x1xf32>
    %335 = vector.shape_cast %330 : vector<2x10xf32> to vector<2x1x10xf32>
    %336 = vector.broadcast %334 : vector<2x10x1xf32> to vector<2x10x10xf32>
    %337 = vector.broadcast %335 : vector<2x1x10xf32> to vector<2x10x10xf32>
    %338 = arith.addf %336, %337 : vector<2x10x10xf32>
    %cst_98 = arith.constant 2.000000e+00 : f32
    %339 = vector.broadcast %cst_98 : f32 to vector<2x10x10xf32>
    %340 = arith.mulf %339, %333 : vector<2x10x10xf32>
    %341 = arith.subf %338, %340 : vector<2x10x10xf32>
    %cst_99 = arith.constant 0.000000e+00 : f32
    %342 = vector.broadcast %cst_99 : f32 to vector<2x10x10xf32>
    %343 = arith.maximumf %341, %342 : vector<2x10x10xf32>
    %cst_100 = arith.constant 9.99999997E-7 : f32
    %344 = vector.broadcast %cst_100 : f32 to vector<2x10x10xf32>
    %345 = arith.addf %343, %344 : vector<2x10x10xf32>
    %346 = math.sqrt %345 : vector<2x10x10xf32>
    %cst_101 = arith.constant 1.000000e+00 : f32
    %347 = vector.broadcast %cst_101 : f32 to vector<2x10x10xf32>
    %348 = arith.addf %346, %347 : vector<2x10x10xf32>
    %cst_102 = arith.constant 1.000000e+00 : f32
    %349 = vector.broadcast %cst_102 : f32 to vector<2x10x10xf32>
    %350 = arith.divf %349, %348 : vector<2x10x10xf32>
    %cst_103 = arith.constant dense<0.000000e+00> : vector<2x10xf32>
    %351 = vector.multi_reduction <add>, %350, %cst_103 [1] : vector<2x10x10xf32> to vector<2x10xf32>
    %352 = vector.shape_cast %351 : vector<2x10xf32> to vector<2x1x10xf32>
    %cst_104 = arith.constant dense<0.000000e+00> : vector<2x10xf32>
    %353 = vector.multi_reduction <add>, %350, %cst_104 [2] : vector<2x10x10xf32> to vector<2x10xf32>
    %354 = vector.shape_cast %353 : vector<2x10xf32> to vector<2x1x10xf32>
    "tpu.trace_start"() <{level = 10 : i32, message = "bui,bif->buf"}> : () -> ()
    %cst_105 = arith.constant dense<0.000000e+00> : vector<2x1x128xf32>
    %355 = tpu.matmul %352, %303, %cst_105 {dimension_numbers = #tpu.dot_dimension_numbers<[2], [1], [1], [2], [0, 0, 0, 1, 1, 2], [0], [0]>} : vector<2x1x10xf32>, vector<2x10x128xf32>, vector<2x1x128xf32> -> vector<2x1x128xf32>
    "tpu.trace_stop"() : () -> ()
    %356 = vector.shape_cast %355 : vector<2x1x128xf32> to vector<2x128xf32>
    "tpu.trace_start"() <{level = 10 : i32, message = "buj,bjf->buf"}> : () -> ()
    %cst_106 = arith.constant dense<0.000000e+00> : vector<2x1x128xf32>
    %357 = tpu.matmul %354, %328, %cst_106 {dimension_numbers = #tpu.dot_dimension_numbers<[2], [1], [1], [2], [0, 0, 0, 1, 1, 2], [0], [0]>} : vector<2x1x10xf32>, vector<2x10x128xf32>, vector<2x1x128xf32> -> vector<2x1x128xf32>
    "tpu.trace_stop"() : () -> ()
    %358 = vector.shape_cast %357 : vector<2x1x128xf32> to vector<2x128xf32>
    %359 = tpu.concatenate %89, %174, %263, %356 in 1 : vector<2x128xf32>, vector<2x128xf32>, vector<2x128xf32>, vector<2x128xf32> -> vector<2x512xf32>
    %360 = tpu.concatenate %91, %176, %265, %358 in 1 : vector<2x128xf32>, vector<2x128xf32>, vector<2x128xf32>, vector<2x128xf32> -> vector<2x512xf32>
    %361 = tpu.concatenate %359, %360 in 0 : vector<2x512xf32>, vector<2x512xf32> -> vector<4x512xf32>
    %c0_107 = arith.constant 0 : index
    %c0_108 = arith.constant 0 : index
    %362 = vector.load %arg5[%c0_107, %c0_108] : memref<512x256xf32, #tpu.memory_space<vmem>>, vector<512x256xf32>
    %cst_109 = arith.constant dense<0.000000e+00> : vector<4x256xf32>
    %363 = tpu.matmul %361, %362, %cst_109 {dimension_numbers = #tpu.dot_dimension_numbers<[1], [0], [0], [1], [0, 0, 1, 1], [], []>} : vector<4x512xf32>, vector<512x256xf32>, vector<4x256xf32> -> vector<4x256xf32>
    %c0_110 = arith.constant 0 : index
    %c0_111 = arith.constant 0 : index
    %364 = vector.load %arg6[%c0_110, %c0_111] : memref<1x256xf32, #tpu.memory_space<vmem>>, vector<1x256xf32>
    %365 = vector.broadcast %364 : vector<1x256xf32> to vector<4x256xf32>
    %366 = arith.addf %363, %365 : vector<4x256xf32>
    %367 = vector.extract_strided_slice %366 {offsets = [0, 0], sizes = [2, 256], strides = [1, 1]} : vector<4x256xf32> to vector<2x256xf32>
    %368 = vector.extract_strided_slice %366 {offsets = [2, 0], sizes = [2, 256], strides = [1, 1]} : vector<4x256xf32> to vector<2x256xf32>
    %369 = arith.mulf %367, %368 : vector<2x256xf32>
    %cst_112 = arith.constant dense<0.000000e+00> : vector<2xf32>
    %370 = vector.multi_reduction <add>, %369, %cst_112 [1] : vector<2x256xf32> to vector<2xf32>
    %371 = vector.shape_cast %370 : vector<2xf32> to vector<2x1xf32>
    %372 = arith.mulf %367, %367 : vector<2x256xf32>
    %cst_113 = arith.constant dense<0.000000e+00> : vector<2xf32>
    %373 = vector.multi_reduction <add>, %372, %cst_113 [1] : vector<2x256xf32> to vector<2xf32>
    %374 = vector.shape_cast %373 : vector<2xf32> to vector<2x1xf32>
    %375 = arith.mulf %368, %368 : vector<2x256xf32>
    %cst_114 = arith.constant dense<0.000000e+00> : vector<2xf32>
    %376 = vector.multi_reduction <add>, %375, %cst_114 [1] : vector<2x256xf32> to vector<2xf32>
    %377 = vector.shape_cast %376 : vector<2xf32> to vector<2x1xf32>
    %cst_115 = arith.constant 1.000000e-16 : f32
    %378 = vector.broadcast %cst_115 : f32 to vector<2x1xf32>
    %379 = arith.maximumf %374, %378 : vector<2x1xf32>
    %380 = math.rsqrt %379 : vector<2x1xf32>
    %cst_116 = arith.constant 1.000000e-16 : f32
    %381 = vector.broadcast %cst_116 : f32 to vector<2x1xf32>
    %382 = arith.maximumf %377, %381 : vector<2x1xf32>
    %383 = math.rsqrt %382 : vector<2x1xf32>
    %384 = arith.mulf %371, %380 : vector<2x1xf32>
    %385 = arith.mulf %384, %383 : vector<2x1xf32>
    %c0_117 = arith.constant 0 : index
    %c0_118 = arith.constant 0 : index
    %386 = vector.load %arg7[%c0_117, %c0_118] : memref<2x1xf32, #tpu.memory_space<vmem>>, vector<2x1xf32>
    tpu.vector_store %arg7[%c0_117, %c0_118], %385 {strides = array<i32>} : memref<2x1xf32, #tpu.memory_space<vmem>>, vector<2x1xf32>,
    return
  }
}

</mosaic_0001>

<bundles_post_ra>
// kernel: conv_text_forward.1
= control target key start
LH: loop header
LB: loop body
LE: loop exit
PB: predicated region body
PF: predicated region fallthrough
CT: control target
= control target key end

     0   :  { %12 = vsyncpa [#allocation3], 0  ;;  %s8778_s0 = inlined_call_operand.hbm [shape: f32[2,16,300], index: 0, kind: input, shape index: {}]   ;;  %s8779_s1 = inlined_call_operand.hbm [shape: f32[2,16,300], index: 1, kind: input, shape index: {}]   ;;  %s8780_s2 = inlined_call_operand.hbm [shape: f32[300,2048], index: 2, kind: input, shape index: {}]   ;;  %s8781_s3 = inlined_call_operand.hbm [shape: f32[1,128], index: 3, kind: input, shape index: {}]   ;;  %s8782_s4 = inlined_call_operand.hbm [shape: f32[1,128], index: 4, kind: input, shape index: {}]   ;;  %s8783_s5 = inlined_call_operand.hbm [shape: f32[512,256], index: 5, kind: input, shape index: {}]   ;;  %s8784_s6 = inlined_call_operand.hbm [shape: f32[1,256], index: 6, kind: input, shape index: {}]   ;;  %s8785_s7 = inlined_call_operand.vmem [shape: f32[2,1], index: 7, kind: output, shape index: {}]  }
   0x1   :  { %13 = vsyncpa [#allocation5], 0 }
   0x2   :  { %14 = vsyncpa [#allocation8], 0 }
   0x3   :  { %15 = vsyncpa [#allocation11], 0  ;;  %s7016_s24 = smov [#allocation4]   ;;  %s7017_s26 = smov [#allocation7]  }
   0x4   :  { %s33_s25 = sshll.u32 %s7016_s24, 4  ;;  %s58_s27 = sshll.u32 %s7017_s26, 4  ;;  %s34_s25 = int_to_ptr.vmem [resolvable:$true] %s33_s25  ;;  %s59_s27 = int_to_ptr.vmem [resolvable:$true] %s58_s27 }
   0x5   :  { %s6876_s28 = scalar_lea.vmem %s34_s25, 1536  ;;  %p6881_p1 = scmp.lt.s32.totalorder %s34_s25, %s34_s25 }
   0x6   :  { %p6877_p0 = scmp.ne.s32.totalorder %s34_s25, %s6876_s28  ;;  %p6882_p2 = scmp.lt.s32.totalorder %s6876_s28, %s6876_s28 }
   0x8   :  { %p6883_p3 = por %p6882_p2, %p6881_p1 }
   0xa   :  { %p6884_p4 = pnand %p6883_p3, %p6877_p0 }
   0xc   :  { %6887 = shalt.err (!%p6884_p4)
}
   0xd   :  { %s7018_s29 = smov 384   ;;  %s7019_s30 = smov 24  }
   0xe   :  { %39 = dma.hbm_to_vmem [thread:$0]  %s8779_s1, 1536, %s34_s25, [#allocation5], %s7018_s29, %s7018_s29, %s7019_s30  }
   0xf   :  { %s6896_s10 = scalar_lea.vmem %s59_s27, 16  ;;  %s6900_s11 = scalar_lea.vmem %s59_s27, 32 }
  0x10   :  { %p6897_p5 = scmp.ne.s32.totalorder %s59_s27, %s6896_s10  ;;  %p6901_p6 = scmp.lt.s32.totalorder %s59_s27, %s59_s27 }
  0x11   :  { %p6902_p7 = scmp.lt.s32.totalorder %s6900_s11, %s6896_s10 }
  0x13   :  { %p6903_p8 = por %p6902_p7, %p6901_p6 }
  0x15   :  { %p6904_p9 = pnand %p6903_p8, %p6897_p5 }
  0x17   :  { %6907 = shalt.err (!%p6904_p9)
}
  0x18   :  { %61 = dma.hbm_to_vmem [thread:$0]  %s8781_s3, 16, %s59_s27, [#allocation8]  }
  0x19   :  { %s7020_s14 = smov [#allocation10]  }
  0x1a   :  { %s77_s15 = sshll.u32 %s7020_s14, 4  ;;  %s78_s15 = int_to_ptr.vmem [resolvable:$true] %s77_s15 }
  0x1b   :  { %s6916_s16 = scalar_lea.vmem %s78_s15, 16384  ;;  %p6921_p11 = scmp.lt.s32.totalorder %s78_s15, %s78_s15 }
  0x1c   :  { %p6917_p10 = scmp.ne.s32.totalorder %s78_s15, %s6916_s16  ;;  %p6922_p12 = scmp.lt.s32.totalorder %s6916_s16, %s6916_s16 }
  0x1e   :  { %p6923_p13 = por %p6922_p12, %p6921_p11 }
  0x20   :  { %p6924_p0 = pnand %p6923_p13, %p6917_p10 }
  0x22   :  { %6927 = shalt.err (!%p6924_p0)
}
  0x23   :  { %s7021_s1 = smov 256   ;;  %s7022_s17 = smov 16  }
  0x24   :  { %83 = dma.hbm_to_vmem [thread:$0]  %s8783_s5, 16384, %s78_s15, [#allocation11], %s7021_s1, %s7021_s1, %s7022_s17  }
  0x25   :  { %s7023_s20 = smov [#allocation2]   ;;  %s7024_s3 = smov [#allocation6]  }
  0x26   :  { %s21_s21 = sshll.u32 %s7023_s20, 4  ;;  %s45_s22 = sshll.u32 %s7024_s3, 4  ;;  %s22_s21 = int_to_ptr.vmem [resolvable:$true] %s21_s21  ;;  %s46_s22 = int_to_ptr.vmem [resolvable:$true] %s45_s22 }
  0x27   :  { %s6936_s23 = scalar_lea.vmem %s22_s21, 1536  ;;  %p6941_p2 = scmp.lt.s32.totalorder %s22_s21, %s22_s21 }
  0x28   :  { %p6937_p1 = scmp.ne.s32.totalorder %s22_s21, %s6936_s23  ;;  %p6942_p3 = scmp.lt.s32.totalorder %s6936_s23, %s6936_s23 }
  0x2a   :  { %p6943_p4 = por %p6942_p3, %p6941_p2 }
  0x2c   :  { %p6944_p5 = pnand %p6943_p4, %p6937_p1 }
  0x2e   :  { %6947 = shalt.err (!%p6944_p5)
}
  0x2f   :  { %27 = dma.hbm_to_vmem [thread:$0]  %s8778_s0, 1536, %s22_s21, [#allocation3], %s7018_s29, %s7018_s29, %s7019_s30  }
  0x30   :  { %s6956_s5 = scalar_lea.vmem %s46_s22, 77824  ;;  %p6961_p7 = scmp.lt.s32.totalorder %s46_s22, %s46_s22 }
  0x31   :  { %p6957_p6 = scmp.ne.s32.totalorder %s46_s22, %s6956_s5  ;;  %p6962_p8 = scmp.lt.s32.totalorder %s6956_s5, %s6956_s5 }
  0x33   :  { %p6963_p9 = por %p6962_p8, %p6961_p7 }
  0x35   :  { %p6964_p10 = pnand %p6963_p9, %p6957_p6 }
  0x37   :  { %6967 = shalt.err (!%p6964_p10)
}
  0x38   :  { %s7025_s26 = smov 2048   ;;  %s7026_s27 = smov 128  }
  0x39   :  { %51 = dma.hbm_to_vmem [thread:$0]  %s8780_s2, 77824, %s46_s22, [#allocation5], %s7025_s26, %s7025_s26, %s7026_s27  }
  0x3a   :  { %s7027_s9 = smov [#allocation9]   ;;  %s7028_s11 = smov [#allocation12]  }
  0x3b   :  { %s68_s10 = sshll.u32 %s7027_s9, 4  ;;  %s90_s12 = sshll.u32 %s7028_s11, 4  ;;  %s69_s10 = int_to_ptr.vmem [resolvable:$true] %s68_s10  ;;  %s91_s12 = int_to_ptr.vmem [resolvable:$true] %s90_s12 }
  0x3c   :  { %s6976_s0 = scalar_lea.vmem %s69_s10, 16  ;;  %s6980_s29 = scalar_lea.vmem %s69_s10, 32 }
  0x3d   :  { %p6977_p11 = scmp.ne.s32.totalorder %s69_s10, %s6976_s0  ;;  %p6981_p12 = scmp.lt.s32.totalorder %s69_s10, %s69_s10 }
  0x3e   :  { %p6982_p13 = scmp.lt.s32.totalorder %s6980_s29, %s6976_s0 }
  0x40   :  { %p6983_p0 = por %p6982_p13, %p6981_p12 }
  0x42   :  { %p6984_p1 = pnand %p6983_p0, %p6977_p11 }
  0x44   :  { %6987 = shalt.err (!%p6984_p1)
}
  0x45   :  { %71 = dma.hbm_to_vmem [thread:$0]  %s8782_s4, 16, %s69_s10, [#allocation8]  }
  0x46   :  { %s6996_s14 = scalar_lea.vmem %s91_s12, 32  ;;  %p7001_p3 = scmp.lt.s32.totalorder %s91_s12, %s91_s12 }
  0x47   :  { %p6997_p2 = scmp.ne.s32.totalorder %s91_s12, %s6996_s14  ;;  %p7002_p4 = scmp.lt.s32.totalorder %s6996_s14, %s6996_s14 }
  0x49   :  { %p7003_p5 = por %p7002_p4, %p7001_p3 }
  0x4b   :  { %p7004_p6 = pnand %p7003_p5, %p6997_p2 }
  0x4d   :  { %7007 = shalt.err (!%p7004_p6)
}
  0x4e   :  { %93 = dma.hbm_to_vmem [thread:$0]  %s8784_s6, 32, %s91_s12, [#allocation11]  }
  0x4f   :  { %7008 = dma.done.wait [#allocation3], 1536  }
  0x50   :  { %7009 = vsyncadd [#allocation3], 4294965760 }
  0x51   :  { %7010 = dma.done.wait [#allocation5], 79360  }
  0x52   :  { %7011 = vsyncadd [#allocation5], 4294887936 }
  0x53   :  { %7012 = dma.done.wait [#allocation8], 32  }
  0x54   :  { %7013 = vsyncadd [#allocation8], 4294967264 }
  0x55   :  { %7014 = dma.done.wait [#allocation11], 16416  }
  0x56   :  { %7015 = vsyncadd [#allocation11], 4294950880  ;;  %v8786_v0 = vmov 0.0   ;;  %vm772_vm0 = vcmask 1043456   ;;  %v380_v1 = vld [vmem:[#allocation6 + $0x788] sm:$0xff]  ;;  %v379_v3 = vld [vmem:[#allocation6 + $0x780] sm:$0xff] }
  0x57   :  { %998 = vmatprep.mubr.f32.mxu1 %v8786_v0  ;;  %v732_v2 = vld [vmem:[#allocation6 + $0x1288] sm:$0xf]  ;;  %821 = vmatprep.subr.mxu0 %v380_v1  ;;  %v731_v4 = vld [vmem:[#allocation6 + $0x1280] sm:$0xf]  ;;  %v7101_v26 = vld [vmem:[#allocation2 + $0x10] sm:$0xff]  ;;  %vm747_vm1 = vcmask 359424  }
  0x58   :  { %6355 = vmatprep.subr.msk.mxu1 %vm772_vm0, %v732_v2  ;;  %v364_v5 = vld [vmem:[#allocation6 + $0x708] sm:$0xff]  ;;  %822 = vmatpush1.msra.mxu0 %v379_v3  ;;  %v363_v7 = vld [vmem:[#allocation6 + $0x700] sm:$0xff]  ;;  %v382_v27 = vld [vmem:[#allocation6 + $0x798] sm:$0xff]  ;;  %vm3364_vm2 = vcmask 1046528   ;;  %vm3401_vm3 = vcmask 1045504   ;;  %vm4239_vm4 = vcmask 1044480  }
  0x59   :  { %v716_v6 = vld [vmem:[#allocation6 + $0x1208] sm:$0xff]  ;;  %6356 = vmatpush1.msk.msra.mxu1 %vm772_vm0, %v731_v4  ;;  %v715_v8 = vld [vmem:[#allocation6 + $0x1200] sm:$0xff]  ;;  %823 = vmatprep.subr.mxu0 %v364_v5  ;;  %v381_v29 = vld [vmem:[#allocation6 + $0x790] sm:$0xff]  ;;  %vm7030_vm5 = vmmov 0   ;;  %vm5185_vm6 = vcmask 1042432   ;;  %vm5222_vm7 = vcmask 1041408  }
  0x5a   :  { %v348_v9 = vld [vmem:[#allocation6 + $0x688] sm:$0xff]  ;;  %956 = vmatprep.subr.mxu1 %v716_v6  ;;  %v347_v11 = vld [vmem:[#allocation6 + $0x680] sm:$0xff]  ;;  %824 = vmatpush1.msra.mxu0 %v363_v7  ;;  %v366_v31 = vld [vmem:[#allocation6 + $0x718] sm:$0xff]  ;;  %vm2925_vm8 = vcmask 130112  }
  0x5b   :  { %v700_v10 = vld [vmem:[#allocation6 + $0x1188] sm:$0xff]  ;;  %v699_v12 = vld [vmem:[#allocation6 + $0x1180] sm:$0xff]  ;;  %957 = vmatpush1.msra.mxu1 %v715_v8  ;;  %825 = vmatprep.subr.mxu0 %v348_v9  ;;  %v365_v33 = vld [vmem:[#allocation6 + $0x710] sm:$0xff] }
  0x5c   :  { %v332_v13 = vld [vmem:[#allocation6 + $0x608] sm:$0xff]  ;;  %958 = vmatprep.subr.mxu1 %v700_v10  ;;  %v331_v15 = vld [vmem:[#allocation6 + $0x600] sm:$0xff]  ;;  %826 = vmatpush1.msra.mxu0 %v347_v11  ;;  %v350_v35 = vld [vmem:[#allocation6 + $0x698] sm:$0xff] }
  0x5d   :  { %v684_v14 = vld [vmem:[#allocation6 + $0x1108] sm:$0xff]  ;;  %v683_v16 = vld [vmem:[#allocation6 + $0x1100] sm:$0xff]  ;;  %959 = vmatpush1.msra.mxu1 %v699_v12  ;;  %827 = vmatprep.subr.mxu0 %v332_v13  ;;  %v349_v37 = vld [vmem:[#allocation6 + $0x690] sm:$0xff] }
  0x5e   :  { %v316_v17 = vld [vmem:[#allocation6 + $0x588] sm:$0xff]  ;;  %960 = vmatprep.subr.mxu1 %v684_v14  ;;  %v315_v19 = vld [vmem:[#allocation6 + $0x580] sm:$0xff]  ;;  %828 = vmatpush1.msra.mxu0 %v331_v15  ;;  %v334_v39 = vld [vmem:[#allocation6 + $0x618] sm:$0xff] }
  0x5f   :  { %v668_v18 = vld [vmem:[#allocation6 + $0x1088] sm:$0xff]  ;;  %v667_v20 = vld [vmem:[#allocation6 + $0x1080] sm:$0xff]  ;;  %961 = vmatpush1.msra.mxu1 %v683_v16  ;;  %829 = vmatprep.subr.mxu0 %v316_v17  ;;  %v333_v41 = vld [vmem:[#allocation6 + $0x610] sm:$0xff] }
  0x60   :  { %v300_v21 = vld [vmem:[#allocation6 + $0x508] sm:$0xff]  ;;  %962 = vmatprep.subr.mxu1 %v668_v18  ;;  %v299_v23 = vld [vmem:[#allocation6 + $0x500] sm:$0xff]  ;;  %830 = vmatpush1.msra.mxu0 %v315_v19  ;;  %v318_v43 = vld [vmem:[#allocation6 + $0x598] sm:$0xff] }
  0x61   :  { %v652_v22 = vld [vmem:[#allocation6 + $0x1008] sm:$0xff]  ;;  %v651_v24 = vld [vmem:[#allocation6 + $0x1000] sm:$0xff]  ;;  %963 = vmatpush1.msra.mxu1 %v667_v20  ;;  %831 = vmatprep.subr.mxu0 %v300_v21  ;;  %v317_v45 = vld [vmem:[#allocation6 + $0x590] sm:$0xff] }
  0x62   :  { %v284_v25 = vld [vmem:[#allocation6 + $0x488] sm:$0xff]  ;;  %964 = vmatprep.subr.mxu1 %v652_v22  ;;  %v283_v28 = vld [vmem:[#allocation6 + $0x480] sm:$0xff]  ;;  %832 = vmatpush1.msra.mxu0 %v299_v23  ;;  %v302_v47 = vld [vmem:[#allocation6 + $0x518] sm:$0xff] }
  0x63   :  { %965 = vmatpush1.msra.mxu1 %v651_v24  ;;  %v268_v30 = vld [vmem:[#allocation6 + $0x408] sm:$0xff]  ;;  %833 = vmatprep.subr.mxu0 %v284_v25  ;;  %v267_v32 = vld [vmem:[#allocation6 + $0x400] sm:$0xff]  ;;  %v301_v49 = vld [vmem:[#allocation6 + $0x510] sm:$0xff] }
  0x64   :  { %6357 = vmatmul.mubr.msk.f32.vlgmr.msra.gmra.mxu1 %vm747_vm1, %v7101_v26  ;;  %1047 = vmatprep.subr.mxu1 %v382_v27  ;;  %v252_v34 = vld [vmem:[#allocation6 + $0x388] sm:$0xff]  ;;  %v251_v36 = vld [vmem:[#allocation6 + $0x380] sm:$0xff]  ;;  %v286_v51 = vld [vmem:[#allocation6 + $0x498] sm:$0xff] }
  0x65   :  { %834 = vmatpush1.msra.mxu0 %v283_v28  ;;  %1048 = vmatpush1.msra.mxu1 %v381_v29  ;;  %v236_v38 = vld [vmem:[#allocation6 + $0x308] sm:$0xff]  ;;  %v235_v40 = vld [vmem:[#allocation6 + $0x300] sm:$0xff]  ;;  %v285_v53 = vld [vmem:[#allocation6 + $0x490] sm:$0xff] }
  0x66   :  { %835 = vmatprep.subr.mxu0 %v268_v30  ;;  %1049 = vmatprep.subr.mxu1 %v366_v31  ;;  %v220_v42 = vld [vmem:[#allocation6 + $0x288] sm:$0xff]  ;;  %v219_v44 = vld [vmem:[#allocation6 + $0x280] sm:$0xff]  ;;  %v270_v55 = vld [vmem:[#allocation6 + $0x418] sm:$0xff] }
  0x67   :  { %836 = vmatpush1.msra.mxu0 %v267_v32  ;;  %1050 = vmatpush1.msra.mxu1 %v365_v33  ;;  %v204_v46 = vld [vmem:[#allocation6 + $0x208] sm:$0xff]  ;;  %v203_v48 = vld [vmem:[#allocation6 + $0x200] sm:$0xff]  ;;  %v269_v57 = vld [vmem:[#allocation6 + $0x410] sm:$0xff] }
  0x68   :  { %837 = vmatprep.subr.mxu0 %v252_v34  ;;  %1051 = vmatprep.subr.mxu1 %v350_v35  ;;  %v188_v50 = vld [vmem:[#allocation6 + $0x188] sm:$0xff]  ;;  %v187_v52 = vld [vmem:[#allocation6 + $0x180] sm:$0xff]  ;;  %v254_v59 = vld [vmem:[#allocation6 + $0x398] sm:$0xff] }
  0x69   :  { %838 = vmatpush1.msra.mxu0 %v251_v36  ;;  %1052 = vmatpush1.msra.mxu1 %v349_v37  ;;  %v172_v54 = vld [vmem:[#allocation6 + $0x108] sm:$0xff]  ;;  %v171_v56 = vld [vmem:[#allocation6 + $0x100] sm:$0xff]  ;;  %v253_v61 = vld [vmem:[#allocation6 + $0x390] sm:$0xff] }
  0x6a   :  { %839 = vmatprep.subr.mxu0 %v236_v38  ;;  %1053 = vmatprep.subr.mxu1 %v334_v39  ;;  %v156_v58 = vld [vmem:[#allocation6 + $0x88] sm:$0xff]  ;;  %v155_v60 = vld [vmem:[#allocation6 + $0x80] sm:$0xff]  ;;  %v238_v63 = vld [vmem:[#allocation6 + $0x318] sm:$0xff] }
  0x6b   :  { %840 = vmatpush1.msra.mxu0 %v235_v40  ;;  %1054 = vmatpush1.msra.mxu1 %v333_v41  ;;  %v140_v62 = vld [vmem:[#allocation6 + $0x8] sm:$0xff]  ;;  %v139_v1 = vld [vmem:[#allocation6] sm:$0xff]  ;;  %v237_v2 = vld [vmem:[#allocation6 + $0x310] sm:$0xff] }
  0x6c   :  { %841 = vmatprep.subr.mxu0 %v220_v42  ;;  %1055 = vmatprep.subr.mxu1 %v318_v43  ;;  %v636_v3 = vld [vmem:[#allocation6 + $0xf88] sm:$0xff]  ;;  %v222_v4 = vld [vmem:[#allocation6 + $0x298] sm:$0xff]  ;;  %v635_v5 = vld [vmem:[#allocation6 + $0xf80] sm:$0xff] }
  0x6d   :  { %842 = vmatpush1.msra.mxu0 %v219_v44  ;;  %1056 = vmatpush1.msra.mxu1 %v317_v45  ;;  %v221_v6 = vld [vmem:[#allocation6 + $0x290] sm:$0xff]  ;;  %v620_v7 = vld [vmem:[#allocation6 + $0xf08] sm:$0xff]  ;;  %v206_v8 = vld [vmem:[#allocation6 + $0x218] sm:$0xff] }
  0x6e   :  { %843 = vmatprep.subr.mxu0 %v204_v46  ;;  %1057 = vmatprep.subr.mxu1 %v302_v47  ;;  %v619_v9 = vld [vmem:[#allocation6 + $0xf00] sm:$0xff]  ;;  %v205_v10 = vld [vmem:[#allocation6 + $0x210] sm:$0xff]  ;;  %v604_v11 = vld [vmem:[#allocation6 + $0xe88] sm:$0xff] }
  0x6f   :  { %844 = vmatpush1.msra.mxu0 %v203_v48  ;;  %1058 = vmatpush1.msra.mxu1 %v301_v49  ;;  %v190_v12 = vld [vmem:[#allocation6 + $0x198] sm:$0xff]  ;;  %v603_v13 = vld [vmem:[#allocation6 + $0xe80] sm:$0xff]  ;;  %v189_v14 = vld [vmem:[#allocation6 + $0x190] sm:$0xff] }
  0x70   :  { %845 = vmatprep.subr.mxu0 %v188_v50  ;;  %1059 = vmatprep.subr.mxu1 %v286_v51  ;;  %v588_v15 = vld [vmem:[#allocation6 + $0xe08] sm:$0xff]  ;;  %v174_v16 = vld [vmem:[#allocation6 + $0x118] sm:$0xff]  ;;  %v587_v17 = vld [vmem:[#allocation6 + $0xe00] sm:$0xff] }
  0x71   :  { %846 = vmatpush1.msra.mxu0 %v187_v52  ;;  %1060 = vmatpush1.msra.mxu1 %v285_v53  ;;  %v173_v18 = vld [vmem:[#allocation6 + $0x110] sm:$0xff]  ;;  %v572_v19 = vld [vmem:[#allocation6 + $0xd88] sm:$0xff]  ;;  %v158_v20 = vld [vmem:[#allocation6 + $0x98] sm:$0xff] }
  0x72   :  { %847 = vmatprep.subr.mxu0 %v172_v54  ;;  %1061 = vmatprep.subr.mxu1 %v270_v55  ;;  %v571_v21 = vld [vmem:[#allocation6 + $0xd80] sm:$0xff]  ;;  %v157_v22 = vld [vmem:[#allocation6 + $0x90] sm:$0xff]  ;;  %v556_v23 = vld [vmem:[#allocation6 + $0xd08] sm:$0xff] }
  0x73   :  { %848 = vmatpush1.msra.mxu0 %v171_v56  ;;  %1062 = vmatpush1.msra.mxu1 %v269_v57  ;;  %v142_v24 = vld [vmem:[#allocation6 + $0x18] sm:$0xff]  ;;  %v555_v25 = vld [vmem:[#allocation6 + $0xd00] sm:$0xff]  ;;  %v141_v27 = vld [vmem:[#allocation6 + $0x10] sm:$0xff] }
  0x74   :  { %849 = vmatprep.subr.mxu0 %v156_v58  ;;  %1063 = vmatprep.subr.mxu1 %v254_v59  ;;  %v540_v28 = vld [vmem:[#allocation6 + $0xc88] sm:$0xff]  ;;  %v638_v29 = vld [vmem:[#allocation6 + $0xf98] sm:$0xff]  ;;  %v539_v30 = vld [vmem:[#allocation6 + $0xc80] sm:$0xff] }
  0x75   :  { %850 = vmatpush1.msra.mxu0 %v155_v60  ;;  %1064 = vmatpush1.msra.mxu1 %v253_v61  ;;  %v637_v31 = vld [vmem:[#allocation6 + $0xf90] sm:$0xff]  ;;  %v524_v32 = vld [vmem:[#allocation6 + $0xc08] sm:$0xff]  ;;  %v622_v33 = vld [vmem:[#allocation6 + $0xf18] sm:$0xff] }
  0x76   :  { %851 = vmatprep.subr.mxu0 %v140_v62  ;;  %1065 = vmatprep.subr.mxu1 %v238_v63  ;;  %v523_v34 = vld [vmem:[#allocation6 + $0xc00] sm:$0xff]  ;;  %v7105_v35 = vld [vmem:[#allocation2 + $0x28] sm:$0xff]  ;;  %v621_v36 = vld [vmem:[#allocation6 + $0xf10] sm:$0xff] }
  0x77   :  { %852 = vmatpush1.msra.mxu0 %v139_v1  ;;  %1066 = vmatpush1.msra.mxu1 %v237_v2  ;;  %v508_v37 = vld [vmem:[#allocation6 + $0xb88] sm:$0xff]  ;;  %v606_v38 = vld [vmem:[#allocation6 + $0xe98] sm:$0xff]  ;;  %v507_v39 = vld [vmem:[#allocation6 + $0xb80] sm:$0xff] }
  0x78   :  { %853 = vmatprep.subr.mxu0 %v636_v3  ;;  %1067 = vmatprep.subr.mxu1 %v222_v4  ;;  %v605_v40 = vld [vmem:[#allocation6 + $0xe90] sm:$0xff]  ;;  %v492_v41 = vld [vmem:[#allocation6 + $0xb08] sm:$0xff]  ;;  %v590_v42 = vld [vmem:[#allocation6 + $0xe18] sm:$0xff] }
  0x79   :  { %854 = vmatpush2.msra.mxu0 %v635_v5  ;;  %1068 = vmatpush1.msra.mxu1 %v221_v6  ;;  %v491_v43 = vld [vmem:[#allocation6 + $0xb00] sm:$0xff]  ;;  %v589_v45 = vld [vmem:[#allocation6 + $0xe10] sm:$0xff]  ;;  %v476_v46 = vld [vmem:[#allocation6 + $0xa88] sm:$0xff] }
  0x7a   :  { %855 = vmatprep.subr.mxu0 %v620_v7  ;;  %1069 = vmatprep.subr.mxu1 %v206_v8  ;;  %v7110_v44 = vld [vmem:[#allocation2 + $0x40] sm:$0xff]  ;;  %v574_v47 = vld [vmem:[#allocation6 + $0xd98] sm:$0xff]  ;;  %v573_v49 = vld [vmem:[#allocation6 + $0xd90] sm:$0xff] }
  0x7b   :  { %856 = vmatpush2.msra.mxu0 %v619_v9  ;;  %1070 = vmatpush1.msra.mxu1 %v205_v10  ;;  %v475_v48 = vld [vmem:[#allocation6 + $0xa80] sm:$0xff]  ;;  %v460_v50 = vld [vmem:[#allocation6 + $0xa08] sm:$0xff]  ;;  %v558_v51 = vld [vmem:[#allocation6 + $0xd18] sm:$0xff] }
  0x7c   :  { %857 = vmatprep.subr.mxu0 %v604_v11  ;;  %1071 = vmatprep.subr.mxu1 %v190_v12  ;;  %v459_v52 = vld [vmem:[#allocation6 + $0xa00] sm:$0xff]  ;;  %v7115_v53 = vld [vmem:[#allocation2 + $0x58] sm:$0xff]  ;;  %v557_v54 = vld [vmem:[#allocation6 + $0xd10] sm:$0xff] }
  0x7d   :  { %858 = vmatpush2.msra.mxu0 %v603_v13  ;;  %1072 = vmatpush1.msra.mxu1 %v189_v14  ;;  %v444_v55 = vld [vmem:[#allocation6 + $0x988] sm:$0xff]  ;;  %v542_v56 = vld [vmem:[#allocation6 + $0xc98] sm:$0xff]  ;;  %v443_v57 = vld [vmem:[#allocation6 + $0x980] sm:$0xff] }
  0x7e   :  { %859 = vmatprep.subr.mxu0 %v588_v15  ;;  %1073 = vmatprep.subr.mxu1 %v174_v16  ;;  %v541_v58 = vld [vmem:[#allocation6 + $0xc90] sm:$0xff]  ;;  %v428_v59 = vld [vmem:[#allocation6 + $0x908] sm:$0xff]  ;;  %v526_v60 = vld [vmem:[#allocation6 + $0xc18] sm:$0xff] }
  0x7f   :  { %860 = vmatpush2.msra.mxu0 %v587_v17  ;;  %1074 = vmatpush1.msra.mxu1 %v173_v18  ;;  %v427_v61 = vld [vmem:[#allocation6 + $0x900] sm:$0xff]  ;;  %v7120_v62 = vld [vmem:[#allocation4 + $0x10] sm:$0xff]  ;;  %v412_v1 = vld [vmem:[#allocation6 + $0x888] sm:$0xff] }
  0x80   :  { %861 = vmatprep.subr.mxu0 %v572_v19  ;;  %1075 = vmatprep.subr.mxu1 %v158_v20  ;;  %v525_v63 = vld [vmem:[#allocation6 + $0xc10] sm:$0xff]  ;;  %v510_v2 = vld [vmem:[#allocation6 + $0xb98] sm:$0xff]  ;;  %v411_v3 = vld [vmem:[#allocation6 + $0x880] sm:$0xff] }
  0x81   :  { %862 = vmatpush2.msra.mxu0 %v571_v21  ;;  %1076 = vmatpush1.msra.mxu1 %v157_v22  ;;  %v509_v4 = vld [vmem:[#allocation6 + $0xb90] sm:$0xff]  ;;  %v396_v5 = vld [vmem:[#allocation6 + $0x808] sm:$0xff]  ;;  %v494_v6 = vld [vmem:[#allocation6 + $0xb18] sm:$0xff] }
  0x82   :  { %863 = vmatprep.subr.mxu0 %v556_v23  ;;  %1077 = vmatprep.subr.mxu1 %v142_v24  ;;  %v395_v7 = vld [vmem:[#allocation6 + $0x800] sm:$0xff]  ;;  %v7125_v8 = vld [vmem:[#allocation2 + $0x8] sm:$0xff]  ;;  %v493_v11 = vld [vmem:[#allocation6 + $0xb10] sm:$0xff] }
  0x83   :  { %864 = vmatpush2.msra.mxu0 %v555_v25  ;;  %1078 = vmatpush1.msra.mxu1 %v141_v27  ;;  %v7127_v9 = vld [vmem:[#allocation4 + $0x28] sm:$0xff]  ;;  %v7129_v10 = vld [vmem:[#allocation2] sm:$0xff]  ;;  %v478_v12 = vld [vmem:[#allocation6 + $0xa98] sm:$0xff] }
  0x84   :  { %865 = vmatprep.subr.mxu0 %v540_v28  ;;  %1079 = vmatprep.subr.mxu1 %v638_v29  ;;  %v7133_v13 = vld [vmem:[#allocation2 + $0x20] sm:$0xff]  ;;  %v477_v14 = vld [vmem:[#allocation6 + $0xa90] sm:$0xff]  ;;  %v734_v15 = vld [vmem:[#allocation6 + $0x1298] sm:$0xf] }
  0x85   :  { %866 = vmatpush2.msra.mxu0 %v539_v30  ;;  %1080 = vmatpush2.msra.mxu1 %v637_v31  ;;  %v462_v16 = vld [vmem:[#allocation6 + $0xa18] sm:$0xff]  ;;  %v7139_v17 = vld [vmem:[#allocation4 + $0x40] sm:$0xff]  ;;  %v461_v18 = vld [vmem:[#allocation6 + $0xa10] sm:$0xff] }
  0x86   :  { %867 = vmatprep.subr.mxu0 %v524_v32  ;;  %1004 = vmatprep.mubr.f32.mxu1 %v8786_v0  ;;  %v7142_v19 = vld [vmem:[#allocation2 + $0x18] sm:$0xff]  ;;  %v445_v21 = vld [vmem:[#allocation6 + $0x990] sm:$0xff] }
  0x87   :  { %1081 = vmatprep.subr.mxu1 %v622_v33  ;;  %868 = vmatpush2.msra.mxu0 %v523_v34  ;;  %v446_v20 = vld [vmem:[#allocation6 + $0x998] sm:$0xff]  ;;  %v429_v25 = vld [vmem:[#allocation6 + $0x910] sm:$0xff]  ;;  %v7162_v34 = vld [vmem:[#allocation2 + $0x48] sm:$0xff] }
  0x88   :  { %6358 = vmatmul.mubr.msk.f32.gmra.mxu1 %vm747_vm1, %v7105_v35  ;;  %869 = vmatprep.subr.mxu0 %v508_v37  ;;  %v7147_v22 = vld [vmem:[#allocation2 + $0x38] sm:$0xff]  ;;  %v7153_v27 = vld [vmem:[#allocation2 + $0x30] sm:$0xff]  ;;  %v383_v37 = vld [vmem:[#allocation6 + $0x7a0] sm:$0xff] }
  0x89   :  { %1082 = vmatpush2.msra.mxu1 %v621_v36  ;;  %870 = vmatpush2.msra.mxu0 %v507_v39  ;;  %v430_v23 = vld [vmem:[#allocation6 + $0x918] sm:$0xff]  ;;  %v7156_v29 = vld [vmem:[#allocation2 + $0x50] sm:$0xff]  ;;  %v384_v36 = vld [vmem:[#allocation6 + $0x7a8] sm:$0xff] }
  0x8a   :  { %1083 = vmatprep.subr.mxu1 %v606_v38  ;;  %871 = vmatprep.subr.mxu0 %v492_v41  ;;  %v7150_v24 = vld [vmem:[#allocation4 + $0x58] sm:$0xff]  ;;  %v413_v30 = vld [vmem:[#allocation6 + $0x890] sm:$0xff]  ;;  %v7165_v38 = vld [vmem:[#allocation4 + $0x8] sm:$0xff] }
  0x8b   :  { %1084 = vmatpush2.msra.mxu1 %v605_v40  ;;  %1010 = vmatprep.mubr.f32.mxu1 %v8786_v0  ;;  %v414_v28 = vld [vmem:[#allocation6 + $0x898] sm:$0xff]  ;;  %v733_v32 = vld [vmem:[#allocation6 + $0x1290] sm:$0xf]  ;;  %v368_v39 = vld [vmem:[#allocation6 + $0x728] sm:$0xff] }
  0x8c   :  { %1085 = vmatprep.subr.mxu1 %v590_v42  ;;  %872 = vmatpush2.msra.mxu0 %v491_v43  ;;  %v398_v31 = vld [vmem:[#allocation6 + $0x818] sm:$0xff]  ;;  %v397_v33 = vld [vmem:[#allocation6 + $0x810] sm:$0xff]  ;;  %v367_v41 = vld [vmem:[#allocation6 + $0x720] sm:$0xff] }
  0x8d   :  { %6359 = vmatmul.mubr.msk.f32.gmra.mxu1 %vm747_vm1, %v7110_v44  ;;  %873 = vmatprep.subr.mxu0 %v476_v46  ;;  %v718_v40 = vld [vmem:[#allocation6 + $0x1218] sm:$0xff]  ;;  %v7170_v42 = vld [vmem:[#allocation4] sm:$0xff]  ;;  %v352_v43 = vld [vmem:[#allocation6 + $0x6a8] sm:$0xff] }
  0x8e   :  { %1086 = vmatpush2.msra.mxu1 %v589_v45  ;;  %874 = vmatpush2.msra.mxu0 %v475_v48  ;;  %v7173_v45 = vld [vmem:[#allocation4 + $0x20] sm:$0xff]  ;;  %v336_v48 = vld [vmem:[#allocation6 + $0x628] sm:$0xff] }
  0x8f   :  { %1087 = vmatprep.subr.mxu1 %v574_v47  ;;  %875 = vmatprep.subr.mxu0 %v460_v50  ;;  %v351_v46 = vld [vmem:[#allocation6 + $0x6a0] sm:$0xff]  ;;  %v717_v47 = vld [vmem:[#allocation6 + $0x1210] sm:$0xff] }
  0x90   :  { %1088 = vmatpush2.msra.mxu1 %v573_v49  ;;  %1016 = vmatprep.mubr.f32.mxu1 %v8786_v0  ;;  %v702_v49 = vld [vmem:[#allocation6 + $0x1198] sm:$0xff]  ;;  %v335_v50 = vld [vmem:[#allocation6 + $0x620] sm:$0xff] }
  0x91   :  { %1089 = vmatprep.subr.mxu1 %v558_v51  ;;  %876 = vmatpush2.msra.mxu0 %v459_v52  ;;  %v7177_v51 = vld [vmem:[#allocation4 + $0x18] sm:$0xff]  ;;  %v320_v52 = vld [vmem:[#allocation6 + $0x5a8] sm:$0xff] }
  0x92   :  { %6360 = vmatmul.mubr.msk.f32.gmra.mxu1 %vm747_vm1, %v7115_v53  ;;  %877 = vmatprep.subr.mxu0 %v444_v55  ;;  %v319_v55 = vld [vmem:[#allocation6 + $0x5a0] sm:$0xff] }
  0x93   :  { %1090 = vmatpush2.msra.mxu1 %v557_v54  ;;  %878 = vmatpush2.msra.mxu0 %v443_v57  ;;  %v7179_v54 = vld [vmem:[#allocation4 + $0x38] sm:$0xff]  ;;  %v304_v57 = vld [vmem:[#allocation6 + $0x528] sm:$0xff] }
  0x94   :  { %1091 = vmatprep.subr.mxu1 %v542_v56  ;;  %879 = vmatprep.subr.mxu0 %v428_v59  ;;  %v701_v56 = vld [vmem:[#allocation6 + $0x1190] sm:$0xff]  ;;  %v303_v59 = vld [vmem:[#allocation6 + $0x520] sm:$0xff] }
  0x95   :  { %1092 = vmatpush2.msra.mxu1 %v541_v58  ;;  %1022 = vmatprep.mubr.f32.mxu1 %v8786_v0  ;;  %v686_v58 = vld [vmem:[#allocation6 + $0x1118] sm:$0xff] }
  0x96   :  { %1093 = vmatprep.subr.mxu1 %v526_v60  ;;  %880 = vmatpush2.msra.mxu0 %v427_v61  ;;  %v7183_v60 = vld [vmem:[#allocation4 + $0x30] sm:$0xff]  ;;  %v288_v61 = vld [vmem:[#allocation6 + $0x4a8] sm:$0xff] }
  0x97   :  { %6361 = vmatmul.mubr.msk.f32.gmra.mxu1 %vm747_vm1, %v7120_v62  ;;  %881 = vmatprep.subr.mxu0 %v412_v1  ;;  %v287_v1 = vld [vmem:[#allocation6 + $0x4a0] sm:$0xff] }
  0x98   :  { %1094 = vmatpush2.msra.mxu1 %v525_v63  ;;  %882 = vmatpush2.msra.mxu0 %v411_v3  ;;  %v7185_v63 = vld [vmem:[#allocation4 + $0x50] sm:$0xff]  ;;  %v272_v3 = vld [vmem:[#allocation6 + $0x428] sm:$0xff] }
  0x99   :  { %1095 = vmatprep.subr.mxu1 %v510_v2  ;;  %883 = vmatprep.subr.mxu0 %v396_v5  ;;  %v685_v2 = vld [vmem:[#allocation6 + $0x1110] sm:$0xff]  ;;  %v271_v5 = vld [vmem:[#allocation6 + $0x420] sm:$0xff] }
  0x9a   :  { %1096 = vmatpush2.msra.mxu1 %v509_v4  ;;  %1028 = vmatprep.mubr.f32.mxu1 %v8786_v0  ;;  %v670_v4 = vld [vmem:[#allocation6 + $0x1098] sm:$0xff] }
  0x9b   :  { %1097 = vmatprep.subr.mxu1 %v494_v6  ;;  %884 = vmatpush2.msra.mxu0 %v395_v7  ;;  %v7189_v6 = vld [vmem:[#allocation4 + $0x48] sm:$0xff] }
  0x9c   :  { %885 = vmatprep.mubr.f32.mxu0 %v7125_v8  ;;  %6362 = vmatmul.mubr.msk.f32.gmra.mxu1 %vm747_vm1, %v7127_v9  ;;  %v256_v7 = vld [vmem:[#allocation6 + $0x3a8] sm:$0xff] }
  0x9d   :  { %886 = vmatmul.mubr.f32.vlgmr.msra.gmra.mxu0 %v7129_v10  ;;  %1098 = vmatpush2.msra.mxu1 %v493_v11  ;;  %v669_v11 = vld [vmem:[#allocation6 + $0x1090] sm:$0xff] }
  0x9e   :  { %1034 = vmatprep.mubr.f32.mxu1 %v8786_v0  ;;  %1099 = vmatprep.subr.mxu1 %v478_v12  ;;  %v255_v12 = vld [vmem:[#allocation6 + $0x3a0] sm:$0xff] }
  0x9f   :  { %891 = vmatprep.mubr.f32.mxu0 %v7133_v13  ;;  %1100 = vmatpush2.msra.mxu1 %v477_v14  ;;  %v654_v14 = vld [vmem:[#allocation6 + $0x1018] sm:$0xff] }
  0xa0   :  { %6365 = vmatprep.subr.msk.mxu0 %vm772_vm0, %v734_v15  ;;  %1101 = vmatprep.subr.mxu1 %v462_v16  ;;  %v240_v15 = vld [vmem:[#allocation6 + $0x328] sm:$0xff]  ;;  %v653_v16 = vld [vmem:[#allocation6 + $0x1010] sm:$0xff] }
  0xa1   :  { %6363 = vmatmul.mubr.msk.f32.gmra.mxu1 %vm747_vm1, %v7139_v17  ;;  %892 = vmatmul.mubr.f32.gmra.mxu0 %v7142_v19 }
  0xa2   :  { %1102 = vmatpush2.msra.mxu1 %v461_v18  ;;  %1040 = vmatprep.mubr.f32.mxu1 %v8786_v0  ;;  %v239_v18 = vld [vmem:[#allocation6 + $0x320] sm:$0xff] }
  0xa3   :  { %1103 = vmatprep.subr.mxu1 %v446_v20  ;;  %897 = vmatprep.mubr.f32.mxu0 %v7147_v22  ;;  %v224_v20 = vld [vmem:[#allocation6 + $0x2a8] sm:$0xff] }
  0xa4   :  { %1104 = vmatpush2.msra.mxu1 %v445_v21  ;;  %6366 = vmatpush1.msk.msra.mxu0 %vm772_vm0, %v733_v32  ;;  %v223_v21 = vld [vmem:[#allocation6 + $0x2a0] sm:$0xff]  ;;  %v176_v32 = vld [vmem:[#allocation6 + $0x128] sm:$0xff] }
  0xa5   :  { %1105 = vmatprep.subr.mxu1 %v430_v23  ;;  %6364 = vmatmul.mubr.msk.f32.gmra.mxu1 %vm747_vm1, %v7150_v24  ;;  %v208_v23 = vld [vmem:[#allocation6 + $0x228] sm:$0xff] }
  0xa6   :  { %1106 = vmatpush2.msra.mxu1 %v429_v25  ;;  %898 = vmatmul.mubr.f32.gmra.mxu0 %v7153_v27  ;;  %v207_v25 = vld [vmem:[#allocation6 + $0x220] sm:$0xff] }
  0xa7   :  { %1107 = vmatprep.subr.mxu1 %v414_v28  ;;  %903 = vmatprep.mubr.f32.mxu0 %v7156_v29  ;;  %v736_v28 = vld [vmem:[#allocation6 + $0x12a8] sm:$0xf] }
  0xa8   :  { %1108 = vmatpush2.msra.mxu1 %v413_v30  ;;  %1111 = vmatprep.mubr.f32.mxu1 %v7125_v8  ;;  %v192_v30 = vld [vmem:[#allocation6 + $0x1a8] sm:$0xff] }
  0xa9   :  { %1109 = vmatprep.subr.mxu1 %v398_v31  ;;  %1182 = vmatprep.subr.mxu0 %v718_v40  ;;  %v191_v31 = vld [vmem:[#allocation6 + $0x1a0] sm:$0xff]  ;;  %v144_v40 = vld [vmem:[#allocation6 + $0x28] sm:$0xff] }
  0xaa   :  { %1110 = vmatpush2.msra.mxu1 %v397_v33  ;;  %904 = vmatmul.mubr.f32.gmra.mxu0 %v7162_v34  ;;  %v735_v33 = vld [vmem:[#allocation6 + $0x12a0] sm:$0xf] }
  0xab   :  { %1112 = vmatmul.mubr.f32.vlgmr.msra.gmra.mxu1 %v7129_v10  ;;  %1273 = vmatprep.subr.mxu1 %v384_v36  ;;  %v175_v36 = vld [vmem:[#allocation6 + $0x120] sm:$0xff] }
  0xac   :  { %1274 = vmatpush1.msra.mxu1 %v383_v37  ;;  %909 = vmatprep.mubr.f32.mxu0 %v7165_v38  ;;  %v160_v37 = vld [vmem:[#allocation6 + $0xa8] sm:$0xff] }
  0xad   :  { %1275 = vmatprep.subr.mxu1 %v368_v39  ;;  %1183 = vmatpush1.msra.mxu0 %v717_v47  ;;  %v159_v39 = vld [vmem:[#allocation6 + $0xa0] sm:$0xff]  ;;  %v624_v47 = vld [vmem:[#allocation6 + $0xf28] sm:$0xff] }
  0xae   :  { %1276 = vmatpush1.msra.mxu1 %v367_v41  ;;  %910 = vmatmul.mubr.f32.gmra.mxu0 %v7170_v42  ;;  %v143_v41 = vld [vmem:[#allocation6 + $0x20] sm:$0xff] }
  0xaf   :  { %1277 = vmatprep.subr.mxu1 %v352_v43  ;;  %915 = vmatprep.mubr.f32.mxu0 %v7173_v45  ;;  %v640_v43 = vld [vmem:[#allocation6 + $0xfa8] sm:$0xff] }
  0xb0   :  { %1278 = vmatpush1.msra.mxu1 %v351_v46  ;;  %1184 = vmatprep.subr.mxu0 %v702_v49  ;;  %v639_v46 = vld [vmem:[#allocation6 + $0xfa0] sm:$0xff]  ;;  %v608_v49 = vld [vmem:[#allocation6 + $0xea8] sm:$0xff] }
  0xb1   :  { %1279 = vmatprep.subr.mxu1 %v336_v48  ;;  %1185 = vmatpush1.msra.mxu0 %v701_v56  ;;  %v623_v48 = vld [vmem:[#allocation6 + $0xf20] sm:$0xff]  ;;  %v576_v56 = vld [vmem:[#allocation6 + $0xda8] sm:$0xff] }
  0xb2   :  { %1280 = vmatpush1.msra.mxu1 %v335_v50  ;;  %916 = vmatmul.mubr.f32.gmra.mxu0 %v7177_v51  ;;  %v607_v50 = vld [vmem:[#allocation6 + $0xea0] sm:$0xff] }
  0xb3   :  { %1281 = vmatprep.subr.mxu1 %v320_v52  ;;  %921 = vmatprep.mubr.f32.mxu0 %v7179_v54  ;;  %v592_v52 = vld [vmem:[#allocation6 + $0xe28] sm:$0xff] }
  0xb4   :  { %1282 = vmatpush1.msra.mxu1 %v319_v55  ;;  %1186 = vmatprep.subr.mxu0 %v686_v58  ;;  %v591_v55 = vld [vmem:[#allocation6 + $0xe20] sm:$0xff]  ;;  %v720_v58 = vld [vmem:[#allocation6 + $0x1228] sm:$0xff] }
  0xb5   :  { %1283 = vmatprep.subr.mxu1 %v304_v57  ;;  %1187 = vmatpush1.msra.mxu0 %v685_v2  ;;  %v575_v57 = vld [vmem:[#allocation6 + $0xda0] sm:$0xff]  ;;  %v704_v2 = vld [vmem:[#allocation6 + $0x11a8] sm:$0xff] }
  0xb6   :  { %1284 = vmatpush1.msra.mxu1 %v303_v59  ;;  %922 = vmatmul.mubr.f32.gmra.mxu0 %v7183_v60  ;;  %v560_v59 = vld [vmem:[#allocation6 + $0xd28] sm:$0xff] }
  0xb7   :  { %1285 = vmatprep.subr.mxu1 %v288_v61  ;;  %927 = vmatprep.mubr.f32.mxu0 %v7185_v63  ;;  %v719_v61 = vld [vmem:[#allocation6 + $0x1220] sm:$0xff] }
  0xb8   :  { %1286 = vmatpush1.msra.mxu1 %v287_v1  ;;  %1188 = vmatprep.subr.mxu0 %v670_v4  ;;  %v559_v1 = vld [vmem:[#allocation6 + $0xd20] sm:$0xff] }
  0xb9   :  { %1287 = vmatprep.subr.mxu1 %v272_v3  ;;  %1189 = vmatpush1.msra.mxu0 %v669_v11  ;;  %v544_v3 = vld [vmem:[#allocation6 + $0xca8] sm:$0xff]  ;;  %v703_v4 = vld [vmem:[#allocation6 + $0x11a0] sm:$0xff] }
  0xba   :  { %1288 = vmatpush1.msra.mxu1 %v271_v5  ;;  %928 = vmatmul.mubr.f32.gmra.mxu0 %v7189_v6  ;;  %v543_v5 = vld [vmem:[#allocation6 + $0xca0] sm:$0xff]  ;;  %v528_v11 = vld [vmem:[#allocation6 + $0xc28] sm:$0xff] }
  0xbb   :  { %1289 = vmatprep.subr.mxu1 %v256_v7  ;;  %1190 = vmatprep.subr.mxu0 %v654_v14  ;;  %v688_v7 = vld [vmem:[#allocation6 + $0x1128] sm:$0xff]  ;;  %v527_v14 = vld [vmem:[#allocation6 + $0xc20] sm:$0xff] }
  0xbc   :  { %1290 = vmatpush1.msra.mxu1 %v255_v12  ;;  %1191 = vmatpush1.msra.mxu0 %v653_v16  ;;  %v687_v12 = vld [vmem:[#allocation6 + $0x1120] sm:$0xff]  ;;  %v512_v16 = vld [vmem:[#allocation6 + $0xba8] sm:$0xff] }
  0xbd   :  { %1291 = vmatprep.subr.mxu1 %v240_v15  ;;  %1224 = vmatprep.mubr.f32.mxu0 %v8786_v0  ;;  %v672_v15 = vld [vmem:[#allocation6 + $0x10a8] sm:$0xff] }
  0xbe   :  { %1292 = vmatpush1.msra.mxu1 %v239_v18  ;;  %6367 = vmatmul.mubr.msk.f32.vlgmr.msra.gmra.mxu0 %vm747_vm1, %v7101_v26  ;;  %v671_v18 = vld [vmem:[#allocation6 + $0x10a0] sm:$0xff] }
  0xbf   :  { %1293 = vmatprep.subr.mxu1 %v224_v20  ;;  %1117 = vmatprep.mubr.f32.mxu1 %v7133_v13  ;;  %v511_v20 = vld [vmem:[#allocation6 + $0xba0] sm:$0xff] }
  0xc0   :  { %1294 = vmatpush1.msra.mxu1 %v223_v21  ;;  %1230 = vmatprep.mubr.f32.mxu0 %v8786_v0  ;;  %v656_v21 = vld [vmem:[#allocation6 + $0x1028] sm:$0xff] }
  0xc1   :  { %1295 = vmatprep.subr.mxu1 %v208_v23  ;;  %6375 = vmatprep.subr.msk.mxu0 %vm772_vm0, %v736_v28  ;;  %v496_v23 = vld [vmem:[#allocation6 + $0xb28] sm:$0xff]  ;;  %v495_v28 = vld [vmem:[#allocation6 + $0xb20] sm:$0xff] }
  0xc2   :  { %1296 = vmatpush1.msra.mxu1 %v207_v25  ;;  %6368 = vmatmul.mubr.msk.f32.gmra.mxu0 %vm747_vm1, %v7105_v35  ;;  %v655_v25 = vld [vmem:[#allocation6 + $0x1020] sm:$0xff] }
  0xc3   :  { %1118 = vmatmul.mubr.f32.gmra.mxu1 %v7142_v19  ;;  %1297 = vmatprep.subr.mxu1 %v192_v30  ;;  %v386_v30 = vld [vmem:[#allocation6 + $0x7b8] sm:$0xff] }
  0xc4   :  { %1123 = vmatprep.mubr.f32.mxu1 %v7147_v22  ;;  %1298 = vmatpush1.msra.mxu1 %v191_v31  ;;  %v480_v31 = vld [vmem:[#allocation6 + $0xaa8] sm:$0xff] }
  0xc5   :  { %1236 = vmatprep.mubr.f32.mxu0 %v8786_v0  ;;  %1299 = vmatprep.subr.mxu1 %v176_v32  ;;  %v479_v32 = vld [vmem:[#allocation6 + $0xaa0] sm:$0xff] }
  0xc6   :  { %6376 = vmatpush1.msk.msra.mxu0 %vm772_vm0, %v735_v33  ;;  %1300 = vmatpush1.msra.mxu1 %v175_v36  ;;  %v385_v33 = vld [vmem:[#allocation6 + $0x7b0] sm:$0xff]  ;;  %v464_v36 = vld [vmem:[#allocation6 + $0xa28] sm:$0xff] }
  0xc7   :  { %6369 = vmatmul.mubr.msk.f32.gmra.mxu0 %vm747_vm1, %v7110_v44  ;;  %1124 = vmatmul.mubr.f32.gmra.mxu1 %v7153_v27 }
  0xc8   :  { %1301 = vmatprep.subr.mxu1 %v160_v37  ;;  %1129 = vmatprep.mubr.f32.mxu1 %v7156_v29  ;;  %v370_v37 = vld [vmem:[#allocation6 + $0x738] sm:$0xff] }
  0xc9   :  { %1302 = vmatpush1.msra.mxu1 %v159_v39  ;;  %1242 = vmatprep.mubr.f32.mxu0 %v8786_v0  ;;  %v463_v39 = vld [vmem:[#allocation6 + $0xa20] sm:$0xff] }
  0xca   :  { %1303 = vmatprep.subr.mxu1 %v144_v40  ;;  %1408 = vmatprep.subr.mxu0 %v720_v58  ;;  %v369_v40 = vld [vmem:[#allocation6 + $0x730] sm:$0xff]  ;;  %v400_v58 = vld [vmem:[#allocation6 + $0x828] sm:$0xff] }
  0xcb   :  { %1304 = vmatpush1.msra.mxu1 %v143_v41  ;;  %6370 = vmatmul.mubr.msk.f32.gmra.mxu0 %vm747_vm1, %v7115_v53  ;;  %v448_v41 = vld [vmem:[#allocation6 + $0x9a8] sm:$0xff] }
  0xcc   :  { %1130 = vmatmul.mubr.f32.gmra.mxu1 %v7162_v34  ;;  %1305 = vmatprep.subr.mxu1 %v640_v43  ;;  %v354_v43 = vld [vmem:[#allocation6 + $0x6b8] sm:$0xff] }
  0xcd   :  { %1306 = vmatpush2.msra.mxu1 %v639_v46  ;;  %1135 = vmatprep.mubr.f32.mxu1 %v7165_v38  ;;  %v447_v46 = vld [vmem:[#allocation6 + $0x9a0] sm:$0xff] }
  0xce   :  { %1307 = vmatprep.subr.mxu1 %v624_v47  ;;  %1248 = vmatprep.mubr.f32.mxu0 %v8786_v0  ;;  %v353_v47 = vld [vmem:[#allocation6 + $0x6b0] sm:$0xff] }
  0xcf   :  { %1308 = vmatpush2.msra.mxu1 %v623_v48  ;;  %6371 = vmatmul.mubr.msk.f32.gmra.mxu0 %vm747_vm1, %v7120_v62  ;;  %v432_v48 = vld [vmem:[#allocation6 + $0x928] sm:$0xff] }
  0xd0   :  { %1136 = vmatmul.mubr.f32.gmra.mxu1 %v7170_v42  ;;  %1309 = vmatprep.subr.mxu1 %v608_v49  ;;  %v338_v49 = vld [vmem:[#allocation6 + $0x638] sm:$0xff] }
  0xd1   :  { %1310 = vmatpush2.msra.mxu1 %v607_v50  ;;  %1141 = vmatprep.mubr.f32.mxu1 %v7173_v45  ;;  %v431_v50 = vld [vmem:[#allocation6 + $0x920] sm:$0xff] }
  0xd2   :  { %1311 = vmatprep.subr.mxu1 %v592_v52  ;;  %1254 = vmatprep.mubr.f32.mxu0 %v8786_v0  ;;  %v337_v52 = vld [vmem:[#allocation6 + $0x630] sm:$0xff] }
  0xd3   :  { %1312 = vmatpush2.msra.mxu1 %v591_v55  ;;  %6372 = vmatmul.mubr.msk.f32.gmra.mxu0 %vm747_vm1, %v7127_v9  ;;  %v416_v55 = vld [vmem:[#allocation6 + $0x8a8] sm:$0xff] }
  0xd4   :  { %1142 = vmatmul.mubr.f32.gmra.mxu1 %v7177_v51  ;;  %1313 = vmatprep.subr.mxu1 %v576_v56  ;;  %v415_v56 = vld [vmem:[#allocation6 + $0x8a0] sm:$0xff] }
  0xd5   :  { %1314 = vmatpush2.msra.mxu1 %v575_v57  ;;  %1409 = vmatpush1.msra.mxu0 %v719_v61  ;;  %v321_v57 = vld [vmem:[#allocation6 + $0x5b0] sm:$0xff]  ;;  %v399_v61 = vld [vmem:[#allocation6 + $0x820] sm:$0xff] }
  0xd6   :  { %1315 = vmatprep.subr.mxu1 %v560_v59  ;;  %1147 = vmatprep.mubr.f32.mxu1 %v7179_v54  ;;  %v306_v59 = vld [vmem:[#allocation6 + $0x538] sm:$0xff] }
  0xd7   :  { %1260 = vmatprep.mubr.f32.mxu0 %v8786_v0  ;;  %1316 = vmatpush2.msra.mxu1 %v559_v1  ;;  %v305_v1 = vld [vmem:[#allocation6 + $0x530] sm:$0xff] }
  0xd8   :  { %1410 = vmatprep.subr.mxu0 %v704_v2  ;;  %1148 = vmatmul.mubr.f32.gmra.mxu1 %v7183_v60  ;;  %v290_v2 = vld [vmem:[#allocation6 + $0x4b8] sm:$0xff] }
  0xd9   :  { %6373 = vmatmul.mubr.msk.f32.gmra.mxu0 %vm747_vm1, %v7139_v17  ;;  %1317 = vmatprep.subr.mxu1 %v544_v3  ;;  %v289_v3 = vld [vmem:[#allocation6 + $0x4b0] sm:$0xff] }
  0xda   :  { %1411 = vmatpush1.msra.mxu0 %v703_v4  ;;  %1318 = vmatpush2.msra.mxu1 %v543_v5  ;;  %v738_v4 = vld [vmem:[#allocation6 + $0x12b8] sm:$0xf] }
  0xdb   :  { %1412 = vmatprep.subr.mxu0 %v688_v7  ;;  %1319 = vmatprep.subr.mxu1 %v528_v11  ;;  %v274_v5 = vld [vmem:[#allocation6 + $0x438] sm:$0xff]  ;;  %v737_v7 = vld [vmem:[#allocation6 + $0x12b0] sm:$0xf] }
  0xdc   :  { %1413 = vmatpush1.msra.mxu0 %v687_v12  ;;  %1153 = vmatprep.mubr.f32.mxu1 %v7185_v63  ;;  %v273_v11 = vld [vmem:[#allocation6 + $0x430] sm:$0xff]  ;;  %v258_v12 = vld [vmem:[#allocation6 + $0x3b8] sm:$0xff] }
  0xdd   :  { %1266 = vmatprep.mubr.f32.mxu0 %v8786_v0  ;;  %1320 = vmatpush2.msra.mxu1 %v527_v14  ;;  %v257_v14 = vld [vmem:[#allocation6 + $0x3b0] sm:$0xff] }
  0xde   :  { %1414 = vmatprep.subr.mxu0 %v672_v15  ;;  %1154 = vmatmul.mubr.f32.gmra.mxu1 %v7189_v6  ;;  %v722_v15 = vld [vmem:[#allocation6 + $0x1238] sm:$0xff] }
  0xdf   :  { %6374 = vmatmul.mubr.msk.f32.gmra.mxu0 %vm747_vm1, %v7150_v24  ;;  %1321 = vmatprep.subr.mxu1 %v512_v16  ;;  %v242_v16 = vld [vmem:[#allocation6 + $0x338] sm:$0xff] }
  0xe0   :  { %1415 = vmatpush1.msra.mxu0 %v671_v18  ;;  %1322 = vmatpush2.msra.mxu1 %v511_v20  ;;  %v241_v18 = vld [vmem:[#allocation6 + $0x330] sm:$0xff]  ;;  %v226_v20 = vld [vmem:[#allocation6 + $0x2b8] sm:$0xff] }
  0xe1   :  { %1416 = vmatprep.subr.mxu0 %v656_v21  ;;  %1323 = vmatprep.subr.mxu1 %v496_v23  ;;  %v721_v21 = vld [vmem:[#allocation6 + $0x1230] sm:$0xff] }
  0xe2   :  { %1417 = vmatpush1.msra.mxu0 %v655_v25  ;;  %1324 = vmatpush2.msra.mxu1 %v495_v28  ;;  %v225_v23 = vld [vmem:[#allocation6 + $0x2b0] sm:$0xff]  ;;  %v210_v25 = vld [vmem:[#allocation6 + $0x238] sm:$0xff] }
  0xe3   :  { %1450 = vmatprep.mubr.f32.mxu0 %v8786_v0  ;;  %1499 = vmatprep.subr.mxu0 %v386_v30  ;;  %v706_v28 = vld [vmem:[#allocation6 + $0x11b8] sm:$0xff] }
  0xe4   :  { %1325 = vmatprep.subr.mxu1 %v480_v31  ;;  %6377 = vmatmul.mubr.msk.f32.vlgmr.msra.gmra.mxu0 %vm747_vm1, %v7101_v26  ;;  %v322_v26 = vld [vmem:[#allocation6 + $0x5b8] sm:$0xff]  ;;  %v705_v31 = vld [vmem:[#allocation6 + $0x11b0] sm:$0xff] }
  0xe5   :  { %1326 = vmatpush2.msra.mxu1 %v479_v32  ;;  %1500 = vmatpush1.msra.mxu0 %v385_v33  ;;  %v194_v30 = vld [vmem:[#allocation6 + $0x1b8] sm:$0xff]  ;;  %v193_v32 = vld [vmem:[#allocation6 + $0x1b0] sm:$0xff] }
  0xe6   :  { %1327 = vmatprep.subr.mxu1 %v464_v36  ;;  %1501 = vmatprep.subr.mxu0 %v370_v37  ;;  %v178_v33 = vld [vmem:[#allocation6 + $0x138] sm:$0xff]  ;;  %v161_v37 = vld [vmem:[#allocation6 + $0xb0] sm:$0xff] }
  0xe7   :  { %1328 = vmatpush2.msra.mxu1 %v463_v39  ;;  %1502 = vmatpush1.msra.mxu0 %v369_v40  ;;  %v162_v36 = vld [vmem:[#allocation6 + $0xb8] sm:$0xff] }
  0xe8   :  { %1329 = vmatprep.subr.mxu1 %v448_v41  ;;  %1503 = vmatprep.subr.mxu0 %v354_v43  ;;  %v690_v39 = vld [vmem:[#allocation6 + $0x1138] sm:$0xff]  ;;  %v689_v41 = vld [vmem:[#allocation6 + $0x1130] sm:$0xff] }
  0xe9   :  { %1330 = vmatpush2.msra.mxu1 %v447_v46  ;;  %1504 = vmatpush1.msra.mxu0 %v353_v47  ;;  %v146_v40 = vld [vmem:[#allocation6 + $0x38] sm:$0xff]  ;;  %v641_v46 = vld [vmem:[#allocation6 + $0xfb0] sm:$0xff] }
  0xea   :  { %1331 = vmatprep.subr.mxu1 %v432_v48  ;;  %1505 = vmatprep.subr.mxu0 %v338_v49  ;;  %v642_v43 = vld [vmem:[#allocation6 + $0xfb8] sm:$0xff] }
  0xeb   :  { %1332 = vmatpush2.msra.mxu1 %v431_v50  ;;  %1506 = vmatpush1.msra.mxu0 %v337_v52  ;;  %v674_v47 = vld [vmem:[#allocation6 + $0x10b8] sm:$0xff]  ;;  %v673_v50 = vld [vmem:[#allocation6 + $0x10b0] sm:$0xff] }
  0xec   :  { %1333 = vmatprep.subr.mxu1 %v416_v55  ;;  %1507 = vmatprep.subr.mxu0 %v322_v26  ;;  %v626_v48 = vld [vmem:[#allocation6 + $0xf38] sm:$0xff]  ;;  %v609_v52 = vld [vmem:[#allocation6 + $0xeb0] sm:$0xff] }
  0xed   :  { %1334 = vmatpush2.msra.mxu1 %v415_v56  ;;  %1508 = vmatpush1.msra.mxu0 %v321_v57  ;;  %v610_v49 = vld [vmem:[#allocation6 + $0xeb8] sm:$0xff]  ;;  %v657_v57 = vld [vmem:[#allocation6 + $0x1030] sm:$0xff] }
  0xee   :  { %1335 = vmatprep.subr.mxu1 %v400_v58  ;;  %1509 = vmatprep.subr.mxu0 %v306_v59  ;;  %v594_v55 = vld [vmem:[#allocation6 + $0xe38] sm:$0xff]  ;;  %v577_v58 = vld [vmem:[#allocation6 + $0xdb0] sm:$0xff] }
  0xef   :  { %1336 = vmatpush2.msra.mxu1 %v399_v61  ;;  %1510 = vmatpush1.msra.mxu0 %v305_v1  ;;  %v658_v26 = vld [vmem:[#allocation6 + $0x1038] sm:$0xff]  ;;  %v388_v61 = vld [vmem:[#allocation6 + $0x7c8] sm:$0xff] }
  0xf0   :  { %1337 = vmatprep.mubr.f32.mxu1 %v7125_v8  ;;  %1511 = vmatprep.subr.mxu0 %v290_v2  ;;  %v578_v56 = vld [vmem:[#allocation6 + $0xdb8] sm:$0xff]  ;;  %v387_v2 = vld [vmem:[#allocation6 + $0x7c0] sm:$0xff] }
  0xf1   :  { %1338 = vmatmul.mubr.f32.vlgmr.msra.gmra.mxu1 %v7129_v10  ;;  %1512 = vmatpush1.msra.mxu0 %v289_v3  ;;  %v562_v59 = vld [vmem:[#allocation6 + $0xd38] sm:$0xff]  ;;  %v545_v3 = vld [vmem:[#allocation6 + $0xcb0] sm:$0xff] }
  0xf2   :  { %6385 = vmatprep.subr.msk.mxu1 %vm772_vm0, %v738_v4  ;;  %1513 = vmatprep.subr.mxu0 %v274_v5  ;;  %v546_v1 = vld [vmem:[#allocation6 + $0xcb8] sm:$0xff]  ;;  %v372_v4 = vld [vmem:[#allocation6 + $0x748] sm:$0xff]  ;;  %v7275_v5 = vld [vmem:[#allocation2 + $0x10] sm:$0xff] }
  0xf3   :  { %6386 = vmatpush1.msk.msra.mxu1 %vm772_vm0, %v737_v7  ;;  %1514 = vmatpush1.msra.mxu0 %v273_v11  ;;  %v530_v7 = vld [vmem:[#allocation6 + $0xc38] sm:$0xff]  ;;  %v371_v11 = vld [vmem:[#allocation6 + $0x740] sm:$0xff] }
  0xf4   :  { %1343 = vmatprep.mubr.f32.mxu1 %v7133_v13  ;;  %1456 = vmatprep.mubr.f32.mxu0 %v8786_v0 }
  0xf5   :  { %1515 = vmatprep.subr.mxu0 %v258_v12  ;;  %1344 = vmatmul.mubr.f32.gmra.mxu1 %v7142_v19  ;;  %v356_v12 = vld [vmem:[#allocation6 + $0x6c8] sm:$0xff] }
  0xf6   :  { %6378 = vmatmul.mubr.msk.f32.gmra.mxu0 %vm747_vm1, %v7105_v35  ;;  %1634 = vmatprep.subr.mxu1 %v722_v15  ;;  %v209_v35 = vld [vmem:[#allocation6 + $0x230] sm:$0xff]  ;;  %v355_v15 = vld [vmem:[#allocation6 + $0x6c0] sm:$0xff] }
  0xf7   :  { %1516 = vmatpush1.msra.mxu0 %v257_v14  ;;  %1349 = vmatprep.mubr.f32.mxu1 %v7147_v22  ;;  %v514_v14 = vld [vmem:[#allocation6 + $0xbb8] sm:$0xff] }
  0xf8   :  { %1517 = vmatprep.subr.mxu0 %v242_v16  ;;  %1462 = vmatprep.mubr.f32.mxu0 %v8786_v0  ;;  %v513_v16 = vld [vmem:[#allocation6 + $0xbb0] sm:$0xff] }
  0xf9   :  { %1518 = vmatpush1.msra.mxu0 %v241_v18  ;;  %1635 = vmatpush1.msra.mxu1 %v721_v21  ;;  %v340_v18 = vld [vmem:[#allocation6 + $0x648] sm:$0xff]  ;;  %v339_v21 = vld [vmem:[#allocation6 + $0x640] sm:$0xff] }
  0xfa   :  { %1519 = vmatprep.subr.mxu0 %v226_v20  ;;  %1350 = vmatmul.mubr.f32.gmra.mxu1 %v7153_v27  ;;  %v498_v20 = vld [vmem:[#allocation6 + $0xb38] sm:$0xff] }
  0xfb   :  { %6379 = vmatmul.mubr.msk.f32.gmra.mxu0 %vm747_vm1, %v7110_v44  ;;  %1355 = vmatprep.mubr.f32.mxu1 %v7156_v29  ;;  %v177_v44 = vld [vmem:[#allocation6 + $0x130] sm:$0xff] }
  0xfc   :  { %1520 = vmatpush1.msra.mxu0 %v225_v23  ;;  %1468 = vmatprep.mubr.f32.mxu0 %v8786_v0  ;;  %v497_v23 = vld [vmem:[#allocation6 + $0xb30] sm:$0xff] }
  0xfd   :  { %1521 = vmatprep.subr.mxu0 %v210_v25  ;;  %1636 = vmatprep.subr.mxu1 %v706_v28  ;;  %v324_v25 = vld [vmem:[#allocation6 + $0x5c8] sm:$0xff]  ;;  %v323_v28 = vld [vmem:[#allocation6 + $0x5c0] sm:$0xff] }
  0xfe   :  { %1522 = vmatpush1.msra.mxu0 %v209_v35  ;;  %1356 = vmatmul.mubr.f32.gmra.mxu1 %v7162_v34  ;;  %v482_v35 = vld [vmem:[#allocation6 + $0xab8] sm:$0xff] }
  0xff   :  { %1523 = vmatprep.subr.mxu0 %v194_v30  ;;  %6380 = vmatmul.mubr.msk.f32.gmra.mxu0 %vm747_vm1, %v7115_v53  ;;  %v145_v53 = vld [vmem:[#allocation6 + $0x30] sm:$0xff] }
 0x100   :  { %1637 = vmatpush1.msra.mxu1 %v705_v31  ;;  %1524 = vmatpush1.msra.mxu0 %v193_v32  ;;  %v481_v30 = vld [vmem:[#allocation6 + $0xab0] sm:$0xff]  ;;  %v308_v31 = vld [vmem:[#allocation6 + $0x548] sm:$0xff]  ;;  %v466_v32 = vld [vmem:[#allocation6 + $0xa38] sm:$0xff] }
 0x101   :  { %1361 = vmatprep.mubr.f32.mxu1 %v7165_v38  ;;  %1525 = vmatprep.subr.mxu0 %v178_v33  ;;  %v307_v33 = vld [vmem:[#allocation6 + $0x540] sm:$0xff] }
 0x102   :  { %1474 = vmatprep.mubr.f32.mxu0 %v8786_v0  ;;  %1526 = vmatpush1.msra.mxu0 %v177_v44  ;;  %v465_v44 = vld [vmem:[#allocation6 + $0xa30] sm:$0xff] }
 0x103   :  { %1362 = vmatmul.mubr.f32.gmra.mxu1 %v7170_v42  ;;  %1527 = vmatprep.subr.mxu0 %v162_v36  ;;  %v292_v36 = vld [vmem:[#allocation6 + $0x4c8] sm:$0xff] }
 0x104   :  { %6381 = vmatmul.mubr.msk.f32.gmra.mxu0 %vm747_vm1, %v7120_v62  ;;  %1638 = vmatprep.subr.mxu1 %v690_v39  ;;  %v625_v62 = vld [vmem:[#allocation6 + $0xf30] sm:$0xff]  ;;  %v291_v39 = vld [vmem:[#allocation6 + $0x4c0] sm:$0xff] }
 0x105   :  { %1528 = vmatpush1.msra.mxu0 %v161_v37  ;;  %1639 = vmatpush1.msra.mxu1 %v689_v41  ;;  %v450_v37 = vld [vmem:[#allocation6 + $0x9b8] sm:$0xff]  ;;  %v276_v41 = vld [vmem:[#allocation6 + $0x448] sm:$0xff] }
 0x106   :  { %1529 = vmatprep.subr.mxu0 %v146_v40  ;;  %1367 = vmatprep.mubr.f32.mxu1 %v7173_v45  ;;  %v449_v40 = vld [vmem:[#allocation6 + $0x9b0] sm:$0xff] }
 0x107   :  { %1530 = vmatpush1.msra.mxu0 %v145_v53  ;;  %1480 = vmatprep.mubr.f32.mxu0 %v8786_v0  ;;  %v434_v53 = vld [vmem:[#allocation6 + $0x938] sm:$0xff] }
 0x108   :  { %1531 = vmatprep.subr.mxu0 %v642_v43  ;;  %1368 = vmatmul.mubr.f32.gmra.mxu1 %v7177_v51  ;;  %v275_v43 = vld [vmem:[#allocation6 + $0x440] sm:$0xff] }
 0x109   :  { %6382 = vmatmul.mubr.msk.f32.gmra.mxu0 %vm747_vm1, %v7127_v9  ;;  %1640 = vmatprep.subr.mxu1 %v674_v47  ;;  %v593_v9 = vld [vmem:[#allocation6 + $0xe30] sm:$0xff]  ;;  %v260_v47 = vld [vmem:[#allocation6 + $0x3c8] sm:$0xff] }
 0x10a   :  { %1532 = vmatpush2.msra.mxu0 %v641_v46  ;;  %1373 = vmatprep.mubr.f32.mxu1 %v7179_v54  ;;  %v433_v46 = vld [vmem:[#allocation6 + $0x930] sm:$0xff] }
 0x10b   :  { %1533 = vmatprep.subr.mxu0 %v626_v48  ;;  %1486 = vmatprep.mubr.f32.mxu0 %v8786_v0  ;;  %v418_v48 = vld [vmem:[#allocation6 + $0x8b8] sm:$0xff] }
 0x10c   :  { %1534 = vmatpush2.msra.mxu0 %v625_v62  ;;  %1641 = vmatpush1.msra.mxu1 %v673_v50  ;;  %v259_v62 = vld [vmem:[#allocation6 + $0x3c0] sm:$0xff]  ;;  %v244_v50 = vld [vmem:[#allocation6 + $0x348] sm:$0xff] }
 0x10d   :  { %1535 = vmatprep.subr.mxu0 %v610_v49  ;;  %1374 = vmatmul.mubr.f32.gmra.mxu1 %v7183_v60  ;;  %v417_v49 = vld [vmem:[#allocation6 + $0x8b0] sm:$0xff] }
 0x10e   :  { %6383 = vmatmul.mubr.msk.f32.gmra.mxu0 %vm747_vm1, %v7139_v17  ;;  %1379 = vmatprep.mubr.f32.mxu1 %v7185_v63  ;;  %v561_v17 = vld [vmem:[#allocation6 + $0xd30] sm:$0xff] }
 0x10f   :  { %1536 = vmatpush2.msra.mxu0 %v609_v52  ;;  %1492 = vmatprep.mubr.f32.mxu0 %v8786_v0  ;;  %v402_v52 = vld [vmem:[#allocation6 + $0x838] sm:$0xff] }
 0x110   :  { %1537 = vmatprep.subr.mxu0 %v594_v55  ;;  %1642 = vmatprep.subr.mxu1 %v658_v26  ;;  %v401_v55 = vld [vmem:[#allocation6 + $0x830] sm:$0xff]  ;;  %v228_v26 = vld [vmem:[#allocation6 + $0x2c8] sm:$0xff] }
 0x111   :  { %1538 = vmatpush2.msra.mxu0 %v593_v9  ;;  %1380 = vmatmul.mubr.f32.gmra.mxu1 %v7189_v6  ;;  %v243_v9 = vld [vmem:[#allocation6 + $0x340] sm:$0xff] }
 0x112   :  { %1539 = vmatprep.subr.mxu0 %v578_v56  ;;  %6384 = vmatmul.mubr.msk.f32.gmra.mxu0 %vm747_vm1, %v7150_v24  ;;  %v529_v24 = vld [vmem:[#allocation6 + $0xc30] sm:$0xff]  ;;  %v227_v56 = vld [vmem:[#allocation6 + $0x2c0] sm:$0xff] }
 0x113   :  { %1643 = vmatpush1.msra.mxu1 %v657_v57  ;;  %1540 = vmatpush2.msra.mxu0 %v577_v58  ;;  %v212_v57 = vld [vmem:[#allocation6 + $0x248] sm:$0xff]  ;;  %v211_v58 = vld [vmem:[#allocation6 + $0x240] sm:$0xff] }
 0x114   :  { %1676 = vmatprep.mubr.f32.mxu1 %v8786_v0  ;;  %1541 = vmatprep.subr.mxu0 %v562_v59  ;;  %v740_v59 = vld [vmem:[#allocation6 + $0x12c8] sm:$0xf] }
 0x115   :  { %1725 = vmatprep.subr.mxu1 %v388_v61  ;;  %1542 = vmatpush2.msra.mxu0 %v561_v17  ;;  %v196_v61 = vld [vmem:[#allocation6 + $0x1c8] sm:$0xff]  ;;  %v195_v17 = vld [vmem:[#allocation6 + $0x1c0] sm:$0xff] }
 0x116   :  { %6387 = vmatmul.mubr.msk.f32.vlgmr.msra.gmra.mxu1 %vm747_vm1, %v7275_v5  ;;  %1543 = vmatprep.subr.mxu0 %v546_v1  ;;  %v739_v1 = vld [vmem:[#allocation6 + $0x12c0] sm:$0xf] }
 0x117   :  { %1726 = vmatpush1.msra.mxu1 %v387_v2  ;;  %1544 = vmatpush2.msra.mxu0 %v545_v3  ;;  %v164_v2 = vld [vmem:[#allocation6 + $0xc8] sm:$0xff]  ;;  %v163_v3 = vld [vmem:[#allocation6 + $0xc0] sm:$0xff] }
 0x118   :  { %1727 = vmatprep.subr.mxu1 %v372_v4  ;;  %1545 = vmatprep.subr.mxu0 %v530_v7  ;;  %v7293_v4 = vld [vmem:[#allocation2 + $0x40] sm:$0xff]  ;;  %v644_v7 = vld [vmem:[#allocation6 + $0xfc8] sm:$0xff] }
 0x119   :  { %1728 = vmatpush1.msra.mxu1 %v371_v11  ;;  %1546 = vmatpush2.msra.mxu0 %v529_v24  ;;  %v643_v11 = vld [vmem:[#allocation6 + $0xfc0] sm:$0xff]  ;;  %v7300_v24 = vld [vmem:[#allocation2 + $0x58] sm:$0xff] }
 0x11a   :  { %1729 = vmatprep.subr.mxu1 %v356_v12  ;;  %1547 = vmatprep.subr.mxu0 %v514_v14  ;;  %v627_v12 = vld [vmem:[#allocation6 + $0xf40] sm:$0xff] }
 0x11b   :  { %1730 = vmatpush1.msra.mxu1 %v355_v15  ;;  %1548 = vmatpush2.msra.mxu0 %v513_v16  ;;  %v611_v14 = vld [vmem:[#allocation6 + $0xec0] sm:$0xff]  ;;  %v7307_v15 = vld [vmem:[#allocation4 + $0x10] sm:$0xff] }
 0x11c   :  { %1731 = vmatprep.subr.mxu1 %v340_v18  ;;  %1549 = vmatprep.subr.mxu0 %v498_v20  ;;  %v595_v16 = vld [vmem:[#allocation6 + $0xe40] sm:$0xff]  ;;  %v724_v20 = vld [vmem:[#allocation6 + $0x1248] sm:$0xff] }
 0x11d   :  { %1732 = vmatpush1.msra.mxu1 %v339_v21  ;;  %1550 = vmatpush2.msra.mxu0 %v497_v23  ;;  %v579_v18 = vld [vmem:[#allocation6 + $0xdc0] sm:$0xff]  ;;  %v7314_v23 = vld [vmem:[#allocation4 + $0x28] sm:$0xff] }
 0x11e   :  { %1733 = vmatprep.subr.mxu1 %v324_v25  ;;  %1551 = vmatprep.subr.mxu0 %v482_v35  ;;  %v723_v21 = vld [vmem:[#allocation6 + $0x1240] sm:$0xff]  ;;  %v708_v25 = vld [vmem:[#allocation6 + $0x11c8] sm:$0xff] }
 0x11f   :  { %1734 = vmatpush1.msra.mxu1 %v323_v28  ;;  %1552 = vmatpush2.msra.mxu0 %v481_v30  ;;  %v707_v28 = vld [vmem:[#allocation6 + $0x11c0] sm:$0xff] }
 0x120   :  { %1735 = vmatprep.subr.mxu1 %v308_v31  ;;  %1553 = vmatprep.subr.mxu0 %v466_v32  ;;  %v547_v30 = vld [vmem:[#allocation6 + $0xcc0] sm:$0xff]  ;;  %v692_v31 = vld [vmem:[#allocation6 + $0x1148] sm:$0xff] }
 0x121   :  { %1736 = vmatpush1.msra.mxu1 %v307_v33  ;;  %1554 = vmatpush2.msra.mxu0 %v465_v44  ;;  %v7323_v32 = vld [vmem:[#allocation4 + $0x40] sm:$0xff]  ;;  %v532_v33 = vld [vmem:[#allocation6 + $0xc48] sm:$0xff] }
 0x122   :  { %1737 = vmatprep.subr.mxu1 %v292_v36  ;;  %1555 = vmatprep.subr.mxu0 %v450_v37  ;;  %v691_v44 = vld [vmem:[#allocation6 + $0x1140] sm:$0xff]  ;;  %v676_v37 = vld [vmem:[#allocation6 + $0x10c8] sm:$0xff] }
 0x123   :  { %1738 = vmatpush1.msra.mxu1 %v291_v39  ;;  %1556 = vmatpush2.msra.mxu0 %v449_v40  ;;  %v675_v40 = vld [vmem:[#allocation6 + $0x10c0] sm:$0xff] }
 0x124   :  { %1739 = vmatprep.subr.mxu1 %v276_v41  ;;  %1557 = vmatprep.subr.mxu0 %v434_v53  ;;  %v7318_v35 = vpop.f32.mrf.mxu1  ;;  %v515_v41 = vld [vmem:[#allocation6 + $0xbc0] sm:$0xff]  ;;  %v660_v53 = vld [vmem:[#allocation6 + $0x1048] sm:$0xff] }
 0x125   :  { %1740 = vmatpush1.msra.mxu1 %v275_v43  ;;  %1558 = vmatpush2.msra.mxu0 %v433_v46  ;;  %v7336_v46 = vld [vmem:[#allocation4 + $0x58] sm:$0xff] }
 0x126   :  { %1741 = vmatprep.subr.mxu1 %v260_v47  ;;  %1559 = vmatprep.subr.mxu0 %v418_v48  ;;  %v7327_v36 = vpop.f32.mrf.mxu1  ;;  %v500_v47 = vld [vmem:[#allocation6 + $0xb48] sm:$0xff]  ;;  %v659_v48 = vld [vmem:[#allocation6 + $0x1040] sm:$0xff] }
 0x127   :  { %1742 = vmatpush1.msra.mxu1 %v259_v62  ;;  %1560 = vmatpush2.msra.mxu0 %v417_v49  ;;  %v390_v62 = vld [vmem:[#allocation6 + $0x7d8] sm:$0xff]  ;;  %v484_v49 = vld [vmem:[#allocation6 + $0xac8] sm:$0xff] }
 0x128   :  { %1743 = vmatprep.subr.mxu1 %v244_v50  ;;  %1561 = vmatprep.subr.mxu0 %v402_v52  ;;  %v483_v52 = vld [vmem:[#allocation6 + $0xac0] sm:$0xff] }
 0x129   :  { %1563 = vmatprep.mubr.f32.mxu0 %v7125_v8  ;;  %1562 = vmatpush2.msra.mxu0 %v401_v55  ;;  %v7285_v8 = vld [vmem:[#allocation2 + $0x28] sm:$0xff] }
 0x12a   :  { %1744 = vmatpush1.msra.mxu1 %v243_v9  ;;  %1564 = vmatmul.mubr.f32.vlgmr.msra.gmra.mxu0 %v7129_v10  ;;  %v180_v10 = vld [vmem:[#allocation6 + $0x148] sm:$0xff]  ;;  %v374_v9 = vld [vmem:[#allocation6 + $0x758] sm:$0xff] }
 0x12b   :  { %1745 = vmatprep.subr.mxu1 %v228_v26  ;;  %1569 = vmatprep.mubr.f32.mxu0 %v7133_v13  ;;  %v179_v13 = vld [vmem:[#allocation6 + $0x140] sm:$0xff]  ;;  %v468_v55 = vld [vmem:[#allocation6 + $0xa48] sm:$0xff] }
 0x12c   :  { %1746 = vmatpush1.msra.mxu1 %v227_v56  ;;  %1682 = vmatprep.mubr.f32.mxu1 %v8786_v0  ;;  %v467_v26 = vld [vmem:[#allocation6 + $0xa40] sm:$0xff]  ;;  %v373_v56 = vld [vmem:[#allocation6 + $0x750] sm:$0xff] }
 0x12d   :  { %1747 = vmatprep.subr.mxu1 %v212_v57  ;;  %6395 = vmatprep.subr.msk.mxu0 %vm772_vm0, %v740_v59  ;;  %v452_v57 = vld [vmem:[#allocation6 + $0x9c8] sm:$0xff]  ;;  %v358_v59 = vld [vmem:[#allocation6 + $0x6d8] sm:$0xff] }
 0x12e   :  { %1748 = vmatpush1.msra.mxu1 %v211_v58  ;;  %1570 = vmatmul.mubr.f32.gmra.mxu0 %v7142_v19  ;;  %v148_v19 = vld [vmem:[#allocation6 + $0x48] sm:$0xff] }
 0x12f   :  { %6388 = vmatmul.mubr.msk.f32.gmra.mxu1 %vm747_vm1, %v7285_v8  ;;  %1749 = vmatprep.subr.mxu1 %v196_v61  ;;  %v451_v61 = vld [vmem:[#allocation6 + $0x9c0] sm:$0xff] }
 0x130   :  { %1575 = vmatprep.mubr.f32.mxu0 %v7147_v22  ;;  %1750 = vmatpush1.msra.mxu1 %v195_v17  ;;  %v147_v22 = vld [vmem:[#allocation6 + $0x40] sm:$0xff]  ;;  %v357_v17 = vld [vmem:[#allocation6 + $0x6d0] sm:$0xff] }
 0x131   :  { %1688 = vmatprep.mubr.f32.mxu1 %v8786_v0  ;;  %1751 = vmatprep.subr.mxu1 %v180_v10  ;;  %v436_v10 = vld [vmem:[#allocation6 + $0x948] sm:$0xff] }
 0x132   :  { %6396 = vmatpush1.msk.msra.mxu0 %vm772_vm0, %v739_v1  ;;  %1752 = vmatpush1.msra.mxu1 %v179_v13  ;;  %v342_v1 = vld [vmem:[#allocation6 + $0x658] sm:$0xff]  ;;  %v435_v13 = vld [vmem:[#allocation6 + $0x940] sm:$0xff] }
 0x133   :  { %1576 = vmatmul.mubr.f32.gmra.mxu0 %v7153_v27  ;;  %6389 = vmatmul.mubr.msk.f32.gmra.mxu1 %vm747_vm1, %v7293_v4  ;;  %v628_v27 = vld [vmem:[#allocation6 + $0xf48] sm:$0xff] }
 0x134   :  { %1753 = vmatprep.subr.mxu1 %v164_v2  ;;  %1581 = vmatprep.mubr.f32.mxu0 %v7156_v29  ;;  %v612_v29 = vld [vmem:[#allocation6 + $0xec8] sm:$0xff]  ;;  %v341_v2 = vld [vmem:[#allocation6 + $0x650] sm:$0xff] }
 0x135   :  { %1754 = vmatpush1.msra.mxu1 %v163_v3  ;;  %1694 = vmatprep.mubr.f32.mxu1 %v8786_v0  ;;  %v420_v3 = vld [vmem:[#allocation6 + $0x8c8] sm:$0xff] }
 0x136   :  { %1755 = vmatprep.subr.mxu1 %v148_v19  ;;  %1860 = vmatprep.subr.mxu0 %v724_v20  ;;  %v7351_v20 = vld [vmem:[#allocation2 + $0x8] sm:$0xff] }
 0x137   :  { %1756 = vmatpush1.msra.mxu1 %v147_v22  ;;  %1582 = vmatmul.mubr.f32.gmra.mxu0 %v7162_v34  ;;  %v596_v34 = vld [vmem:[#allocation6 + $0xe48] sm:$0xff]  ;;  %v326_v22 = vld [vmem:[#allocation6 + $0x5d8] sm:$0xff] }
 0x138   :  { %6390 = vmatmul.mubr.msk.f32.gmra.mxu1 %vm747_vm1, %v7300_v24  ;;  %1757 = vmatprep.subr.mxu1 %v644_v7  ;;  %v419_v7 = vld [vmem:[#allocation6 + $0x8c0] sm:$0xff] }
 0x139   :  { %1758 = vmatpush2.msra.mxu1 %v643_v11  ;;  %1587 = vmatprep.mubr.f32.mxu0 %v7165_v38  ;;  %v580_v38 = vld [vmem:[#allocation6 + $0xdc8] sm:$0xff]  ;;  %v325_v11 = vld [vmem:[#allocation6 + $0x5d0] sm:$0xff] }
 0x13a   :  { %1759 = vmatprep.subr.mxu1 %v628_v27  ;;  %1700 = vmatprep.mubr.f32.mxu1 %v8786_v0  ;;  %v404_v27 = vld [vmem:[#allocation6 + $0x848] sm:$0xff] }
 0x13b   :  { %1760 = vmatpush2.msra.mxu1 %v627_v12  ;;  %1588 = vmatmul.mubr.f32.gmra.mxu0 %v7170_v42  ;;  %v564_v42 = vld [vmem:[#allocation6 + $0xd48] sm:$0xff]  ;;  %v310_v12 = vld [vmem:[#allocation6 + $0x558] sm:$0xff] }
 0x13c   :  { %6391 = vmatmul.mubr.msk.f32.gmra.mxu1 %vm747_vm1, %v7307_v15  ;;  %1761 = vmatprep.subr.mxu1 %v612_v29  ;;  %v403_v29 = vld [vmem:[#allocation6 + $0x840] sm:$0xff] }
 0x13d   :  { %1762 = vmatpush2.msra.mxu1 %v611_v14  ;;  %1593 = vmatprep.mubr.f32.mxu0 %v7173_v45  ;;  %v563_v45 = vld [vmem:[#allocation6 + $0xd40] sm:$0xff]  ;;  %v309_v14 = vld [vmem:[#allocation6 + $0x550] sm:$0xff] }
 0x13e   :  { %1763 = vmatprep.subr.mxu1 %v596_v34  ;;  %1706 = vmatprep.mubr.f32.mxu1 %v8786_v0 }
 0x13f   :  { %1764 = vmatpush2.msra.mxu1 %v595_v16  ;;  %1594 = vmatmul.mubr.f32.gmra.mxu0 %v7177_v51  ;;  %v548_v51 = vld [vmem:[#allocation6 + $0xcc8] sm:$0xff]  ;;  %v294_v16 = vld [vmem:[#allocation6 + $0x4d8] sm:$0xff] }
 0x140   :  { %6392 = vmatmul.mubr.msk.f32.gmra.mxu1 %vm747_vm1, %v7314_v23  ;;  %1765 = vmatprep.subr.mxu1 %v580_v38  ;;  %v293_v38 = vld [vmem:[#allocation6 + $0x4d0] sm:$0xff] }
 0x141   :  { %1766 = vmatpush2.msra.mxu1 %v579_v18  ;;  %1861 = vmatpush1.msra.mxu0 %v723_v21  ;;  %v742_v18 = vld [vmem:[#allocation6 + $0x12d8] sm:$0xf]  ;;  %v741_v21 = vld [vmem:[#allocation6 + $0x12d0] sm:$0xf] }
 0x142   :  { %1767 = vmatprep.subr.mxu1 %v564_v42  ;;  %1599 = vmatprep.mubr.f32.mxu0 %v7179_v54  ;;  %v531_v54 = vld [vmem:[#allocation6 + $0xc40] sm:$0xff]  ;;  %v278_v42 = vld [vmem:[#allocation6 + $0x458] sm:$0xff] }
 0x143   :  { %1712 = vmatprep.mubr.f32.mxu1 %v8786_v0  ;;  %1768 = vmatpush2.msra.mxu1 %v563_v45  ;;  %v7354_v45 = vld [vmem:[#allocation2] sm:$0xff] }
 0x144   :  { %1862 = vmatprep.subr.mxu0 %v708_v25  ;;  %1600 = vmatmul.mubr.f32.gmra.mxu0 %v7183_v60  ;;  %v516_v60 = vld [vmem:[#allocation6 + $0xbc8] sm:$0xff]  ;;  %v277_v25 = vld [vmem:[#allocation6 + $0x450] sm:$0xff] }
 0x145   :  { %6393 = vmatmul.mubr.msk.f32.gmra.mxu1 %vm747_vm1, %v7323_v32  ;;  %1769 = vmatprep.subr.mxu1 %v548_v51 }
 0x146   :  { %1863 = vmatpush1.msra.mxu0 %v707_v28  ;;  %1770 = vmatpush2.msra.mxu1 %v547_v30  ;;  %v262_v30 = vld [vmem:[#allocation6 + $0x3d8] sm:$0xff] }
 0x147   :  { %1864 = vmatprep.subr.mxu0 %v692_v31  ;;  %1771 = vmatprep.subr.mxu1 %v532_v33  ;;  %v7363_v33 = vld [vmem:[#allocation2 + $0x20] sm:$0xff] }
 0x148   :  { %1865 = vmatpush1.msra.mxu0 %v691_v44  ;;  %v7329_v39 = vpop.f32.mrf.mxu1  ;;  %1605 = vmatprep.mubr.f32.mxu0 %v7185_v63  ;;  %v499_v63 = vld [vmem:[#allocation6 + $0xb40] sm:$0xff]  ;;  %v261_v44 = vld [vmem:[#allocation6 + $0x3d0] sm:$0xff] }
 0x149   :  { %1718 = vmatprep.mubr.f32.mxu1 %v8786_v0  ;;  %1772 = vmatpush2.msra.mxu1 %v531_v54  ;;  %v726_v54 = vld [vmem:[#allocation6 + $0x1258] sm:$0xff] }
 0x14a   :  { %1866 = vmatprep.subr.mxu0 %v676_v37  ;;  %v7333_v43 = vpop.f32.mrf.mxu1  ;;  %1606 = vmatmul.mubr.f32.gmra.mxu0 %v7189_v6  ;;  %v389_v6 = vld [vmem:[#allocation6 + $0x7d0] sm:$0xff]  ;;  %v246_v37 = vld [vmem:[#allocation6 + $0x358] sm:$0xff] }
 0x14b   :  { %6394 = vmatmul.mubr.msk.f32.gmra.mxu1 %vm747_vm1, %v7336_v46  ;;  %1773 = vmatprep.subr.mxu1 %v516_v60 }
 0x14c   :  { %1867 = vmatpush1.msra.mxu0 %v675_v40  ;;  %1774 = vmatpush2.msra.mxu1 %v515_v41  ;;  %v7369_v40 = vld [vmem:[#allocation2 + $0x18] sm:$0xff]  ;;  %v245_v41 = vld [vmem:[#allocation6 + $0x350] sm:$0xff] }
 0x14d   :  { %1868 = vmatprep.subr.mxu0 %v660_v53  ;;  %v7340_v50 = vpop.f32.mrf.mxu1  ;;  %1775 = vmatprep.subr.mxu1 %v500_v47  ;;  %v230_v47 = vld [vmem:[#allocation6 + $0x2d8] sm:$0xff] }
 0x14e   :  { %1869 = vmatpush1.msra.mxu0 %v659_v48  ;;  %1776 = vmatpush2.msra.mxu1 %v499_v63  ;;  %v725_v48 = vld [vmem:[#allocation6 + $0x1250] sm:$0xff]  ;;  %v7374_v63 = vld [vmem:[#allocation2 + $0x38] sm:$0xff] }
 0x14f   :  { %1902 = vmatprep.mubr.f32.mxu0 %v8786_v0  ;;  %1951 = vmatprep.subr.mxu0 %v390_v62  ;;  %v7345_v58 = vpop.f32.mrf.mxu1 }
 0x150   :  { %1777 = vmatprep.subr.mxu1 %v484_v49  ;;  %6397 = vmatmul.mubr.msk.f32.vlgmr.msra.gmra.mxu0 %vm747_vm1, %v7275_v5  ;;  %v229_v49 = vld [vmem:[#allocation6 + $0x2d0] sm:$0xff] }
 0x151   :  { %1778 = vmatpush2.msra.mxu1 %v483_v52  ;;  %1952 = vmatpush1.msra.mxu0 %v389_v6  ;;  %v214_v6 = vld [vmem:[#allocation6 + $0x258] sm:$0xff] }
 0x152   :  { %1779 = vmatprep.subr.mxu1 %v468_v55  ;;  %1953 = vmatprep.subr.mxu0 %v374_v9  ;;  %v7347_v19 = vpop.f32.mrf.mxu1  ;;  %v7385_v9 = vld [vmem:[#allocation2 + $0x30] sm:$0xff] }
 0x153   :  { %1780 = vmatpush2.msra.mxu1 %v467_v26  ;;  %1954 = vmatpush1.msra.mxu0 %v373_v56  ;;  %v213_v26 = vld [vmem:[#allocation6 + $0x250] sm:$0xff]  ;;  %v710_v56 = vld [vmem:[#allocation6 + $0x11d8] sm:$0xff] }
 0x154   :  { %1781 = vmatprep.subr.mxu1 %v452_v57  ;;  %1955 = vmatprep.subr.mxu0 %v358_v59  ;;  %v7349_v34 = vpop.f32.mrf.mxu1 }
 0x155   :  { %1782 = vmatpush2.msra.mxu1 %v451_v61  ;;  %1956 = vmatpush1.msra.mxu0 %v357_v17  ;;  %v198_v61 = vld [vmem:[#allocation6 + $0x1d8] sm:$0xff] }
 0x156   :  { %1783 = vmatprep.subr.mxu1 %v436_v10  ;;  %1957 = vmatprep.subr.mxu0 %v342_v1 }
 0x157   :  { %1784 = vmatpush2.msra.mxu1 %v435_v13  ;;  %1958 = vmatpush1.msra.mxu0 %v341_v2  ;;  %v7357_v51 = vpop.f32.mrf.mxu1  ;;  %v7406_v13 = vld [vmem:[#allocation2 + $0x48] sm:$0xff]  ;;  %v182_v2 = vld [vmem:[#allocation6 + $0x158] sm:$0xff] }
 0x158   :  { %1785 = vmatprep.subr.mxu1 %v420_v3  ;;  %1959 = vmatprep.subr.mxu0 %v326_v22 }
 0x159   :  { %1786 = vmatpush2.msra.mxu1 %v419_v7  ;;  %1960 = vmatpush1.msra.mxu0 %v325_v11  ;;  %v7367_v60 = vpop.f32.mrf.mxu1  ;;  %v181_v7 = vld [vmem:[#allocation6 + $0x150] sm:$0xff] }
 0x15a   :  { %1787 = vmatprep.subr.mxu1 %v404_v27  ;;  %1961 = vmatprep.subr.mxu0 %v310_v12  ;;  %v7417_v27 = vld [vmem:[#allocation4 + $0x8] sm:$0xff]  ;;  %v166_v12 = vld [vmem:[#allocation6 + $0xd8] sm:$0xff] }
 0x15b   :  { %1788 = vmatpush2.msra.mxu1 %v403_v29  ;;  %1962 = vmatpush1.msra.mxu0 %v309_v14 }
 0x15c   :  { %1789 = vmatprep.mubr.f32.mxu1 %v7351_v20  ;;  %1963 = vmatprep.subr.mxu0 %v294_v16  ;;  %v7380_v52 = vpop.f32.mrf.mxu1  ;;  %v694_v16 = vld [vmem:[#allocation6 + $0x1158] sm:$0xff] }
 0x15d   :  { %1790 = vmatmul.mubr.f32.vlgmr.msra.gmra.mxu1 %v7354_v45  ;;  %v887_v28 = vpop.f32.mrf.mxu0  ;;  %1964 = vmatpush1.msra.mxu0 %v293_v38 }
 0x15e   :  { %6405 = vmatprep.subr.msk.mxu1 %vm772_vm0, %v742_v18  ;;  %1965 = vmatprep.subr.mxu0 %v278_v42  ;;  %v7391_v57 = vadd.f32 %v7318_v35, %v887_v28  ;;  %v7402_v10 = vpop.f32.mrf.mxu1  ;;  %v150_v18 = vld [vmem:[#allocation6 + $0x58] sm:$0xff]  ;;  %v693_v42 = vld [vmem:[#allocation6 + $0x1150] sm:$0xff] }
 0x15f   :  { %6406 = vmatpush1.msk.msra.mxu1 %vm772_vm0, %v741_v21  ;;  %v7361_v31 = vpop.f32.mrf.mxu0  ;;  %1966 = vmatpush1.msra.mxu0 %v277_v25  ;;  %v149_v25 = vld [vmem:[#allocation6 + $0x50] sm:$0xff] }
 0x160   :  { %1795 = vmatprep.mubr.f32.mxu1 %v7363_v33  ;;  %1908 = vmatprep.mubr.f32.mxu0 %v8786_v0 }
 0x161   :  { %1967 = vmatprep.subr.mxu0 %v262_v30  ;;  %1796 = vmatmul.mubr.f32.gmra.mxu1 %v7369_v40  ;;  %v893_v53 = vpop.f32.mrf.mxu0  ;;  %v1036_v29 = vpop.f32.mrf.mxu1  ;;  %v646_v30 = vld [vmem:[#allocation6 + $0xfd8] sm:$0xff] }
 0x162   :  { %6398 = vmatmul.mubr.msk.f32.gmra.mxu0 %vm747_vm1, %v7285_v8  ;;  %2086 = vmatprep.subr.mxu1 %v726_v54  ;;  %v7383_v8 = vadd.f32 %v7329_v39, %v893_v53  ;;  %v7396_v39 = vld [vmem:[#allocation2 + $0x50] sm:$0xff] }
 0x163   :  { %1968 = vmatpush1.msra.mxu0 %v261_v44  ;;  %1801 = vmatprep.mubr.f32.mxu1 %v7374_v63  ;;  %v7377_v62 = vpop.f32.mrf.mxu0  ;;  %v7429_v44 = vpop.f32.mrf.mxu1  ;;  %v645_v53 = vld [vmem:[#allocation6 + $0xfd0] sm:$0xff] }
 0x164   :  { %1969 = vmatprep.subr.mxu0 %v246_v37  ;;  %1914 = vmatprep.mubr.f32.mxu0 %v8786_v0  ;;  %v2631_v35 = vadd.f32 %v7383_v8, %v7391_v57 }
 0x165   :  { %1970 = vmatpush1.msra.mxu0 %v245_v41  ;;  %2087 = vmatpush1.msra.mxu1 %v725_v48  ;;  %v7431_v41 = vld [vmem:[#allocation4 + $0x20] sm:$0xff]  ;;  %v630_v48 = vld [vmem:[#allocation6 + $0xf58] sm:$0xff] }
 0x166   :  { %1971 = vmatprep.subr.mxu0 %v230_v47  ;;  %v899_v55 = vpop.f32.mrf.mxu0  ;;  %1802 = vmatmul.mubr.f32.gmra.mxu1 %v7385_v9  ;;  %v678_v47 = vld [vmem:[#allocation6 + $0x10d8] sm:$0xff] }
 0x167   :  { %6399 = vmatmul.mubr.msk.f32.gmra.mxu0 %vm747_vm1, %v7293_v4  ;;  %v7394_v59 = vadd.f32 %v7340_v50, %v899_v55  ;;  %1807 = vmatprep.mubr.f32.mxu1 %v7396_v39  ;;  %v709_v4 = vld [vmem:[#allocation6 + $0x11d0] sm:$0xff] }
 0x168   :  { %1972 = vmatpush1.msra.mxu0 %v229_v49  ;;  %v7399_v17 = vpop.f32.mrf.mxu0  ;;  %1920 = vmatprep.mubr.f32.mxu0 %v8786_v0  ;;  %v197_v50 = vld [vmem:[#allocation6 + $0x1d0] sm:$0xff] }
 0x169   :  { %1973 = vmatprep.subr.mxu0 %v214_v6  ;;  %2088 = vmatprep.subr.mxu1 %v710_v56  ;;  %v2632_v3 = vadd.f32 %v2631_v35, %v7394_v59  ;;  %v7437_v6 = vld [vmem:[#allocation4 + $0x18] sm:$0xff]  ;;  %v629_v55 = vld [vmem:[#allocation6 + $0xf50] sm:$0xff] }
 0x16a   :  { %1974 = vmatpush1.msra.mxu0 %v213_v26  ;;  %v905_v1 = vpop.f32.mrf.mxu0  ;;  %1808 = vmatmul.mubr.f32.gmra.mxu1 %v7406_v13  ;;  %v1042_v26 = vpop.f32.mrf.mxu1 }
 0x16b   :  { %1975 = vmatprep.subr.mxu0 %v198_v61  ;;  %v7411_v22 = vadd.f32 %v7347_v19, %v905_v1  ;;  %6400 = vmatmul.mubr.msk.f32.gmra.mxu0 %vm747_vm1, %v7300_v24  ;;  %v165_v19 = vld [vmem:[#allocation6 + $0xd0] sm:$0xff]  ;;  %v7422_v24 = vld [vmem:[#allocation4] sm:$0xff]  ;;  %v614_v61 = vld [vmem:[#allocation6 + $0xed8] sm:$0xff] }
 0x16c   :  { %2089 = vmatpush1.msra.mxu1 %v709_v4  ;;  %v7415_v11 = vpop.f32.mrf.mxu0  ;;  %1976 = vmatpush1.msra.mxu0 %v197_v50  ;;  %v677_v4 = vld [vmem:[#allocation6 + $0x10d0] sm:$0xff]  ;;  %v7445_v1 = vld [vmem:[#allocation4 + $0x38] sm:$0xff] }
 0x16d   :  { %1813 = vmatprep.mubr.f32.mxu1 %v7417_v27  ;;  %v2633_v14 = vadd.f32 %v2632_v3, %v7411_v22  ;;  %1977 = vmatprep.subr.mxu0 %v182_v2 }
 0x16e   :  { %1926 = vmatprep.mubr.f32.mxu0 %v8786_v0  ;;  %v911_v38 = vpop.f32.mrf.mxu0  ;;  %1978 = vmatpush1.msra.mxu0 %v181_v7 }
 0x16f   :  { %1814 = vmatmul.mubr.f32.gmra.mxu1 %v7422_v24  ;;  %v2634_v21 = vrot.slane %v2633_v14, 4  ;;  %1979 = vmatprep.subr.mxu0 %v166_v12  ;;  %v7450_v3 = vadd.f32 %v7357_v51, %v911_v38  ;;  %v662_v51 = vld [vmem:[#allocation6 + $0x1058] sm:$0xff] }
 0x170   :  { %6401 = vmatmul.mubr.msk.f32.gmra.mxu0 %vm747_vm1, %v7307_v15  ;;  %v7427_v28 = vpop.f32.mrf.mxu0  ;;  %2090 = vmatprep.subr.mxu1 %v694_v16  ;;  %v7458_v16 = vld [vmem:[#allocation4 + $0x30] sm:$0xff] }
 0x171   :  { %1980 = vmatpush1.msra.mxu0 %v165_v19  ;;  %v2635_v54 = vadd.f32 %v2634_v21, %v2633_v14  ;;  %2091 = vmatpush1.msra.mxu1 %v693_v42  ;;  %v7456_v14 = vpop.f32.mrf.mxu1  ;;  %v7465_v42 = vld [vmem:[#allocation4 + $0x50] sm:$0xff]  ;;  %v582_v21 = vld [vmem:[#allocation6 + $0xdd8] sm:$0xff] }
 0x172   :  { %1981 = vmatprep.subr.mxu0 %v150_v18  ;;  %v917_v37 = vpop.f32.mrf.mxu0  ;;  %1819 = vmatprep.mubr.f32.mxu1 %v7431_v41  ;;  %v597_v18 = vld [vmem:[#allocation6 + $0xe50] sm:$0xff] }
 0x173   :  { %1982 = vmatpush1.msra.mxu0 %v149_v25  ;;  %v2636_v15 = vrot.slane %v2635_v54, 2  ;;  %1932 = vmatprep.mubr.f32.mxu0 %v8786_v0  ;;  %v7443_v35 = vadd.f32 %v7380_v52, %v917_v37  ;;  %v598_v52 = vld [vmem:[#allocation6 + $0xe58] sm:$0xff] }
 0x174   :  { %1983 = vmatprep.subr.mxu0 %v646_v30  ;;  %v7435_v49 = vpop.f32.mrf.mxu0  ;;  %1820 = vmatmul.mubr.f32.gmra.mxu1 %v7437_v6 }
 0x175   :  { %6402 = vmatmul.mubr.msk.f32.gmra.mxu0 %vm747_vm1, %v7314_v23  ;;  %v2637_v56 = vadd.f32 %v2636_v15, %v2635_v54  ;;  %2092 = vmatprep.subr.mxu1 %v678_v47  ;;  %v613_v23 = vld [vmem:[#allocation6 + $0xed0] sm:$0xff] }
 0x176   :  { %1984 = vmatpush2.msra.mxu0 %v645_v53  ;;  %v923_v50 = vpop.f32.mrf.mxu0  ;;  %1825 = vmatprep.mubr.f32.mxu1 %v7445_v1  ;;  %v661_v54 = vld [vmem:[#allocation6 + $0x1050] sm:$0xff] }
 0x177   :  { %1985 = vmatprep.subr.mxu0 %v630_v48  ;;  %v2638_v2 = vrot.slane %v2637_v56, 1  ;;  %1938 = vmatprep.mubr.f32.mxu0 %v8786_v0  ;;  %v7452_v7 = vadd.f32 %v1036_v29, %v923_v50  ;;  %v2690_v29 = vadd.f32 %v7443_v35, %v7450_v3  ;;  %v581_v53 = vld [vmem:[#allocation6 + $0xdd0] sm:$0xff]  ;;  %v1113_v48 = vpop.f32.mrf.mxu1 }
 0x178   :  { %1986 = vmatpush2.msra.mxu0 %v629_v55  ;;  %v7454_v12 = vpop.f32.mrf.mxu0  ;;  %2093 = vmatpush1.msra.mxu1 %v677_v4  ;;  %v7480_v55 = vld [vmem:[#allocation4 + $0x48] sm:$0xff] }
 0x179   :  { %1987 = vmatprep.subr.mxu0 %v614_v61  ;;  %v2639_v19 = vadd.f32 %v2638_v2, %v2637_v56  ;;  %1826 = vmatmul.mubr.f32.gmra.mxu1 %v7458_v16  ;;  %8797 = vst [vmem:[#allocation19_spill] sm:$0xff] %v7480_v55  ;;  %v392_v56 = vld [vmem:[#allocation6 + $0x7e8] sm:$0xff] }
 0x17a   :  { %6403 = vmatmul.mubr.msk.f32.gmra.mxu0 %vm747_vm1, %v7323_v32  ;;  %v929_v38 = vpop.f32.mrf.mxu0  ;;  %1831 = vmatprep.mubr.f32.mxu1 %v7465_v42  ;;  %v2691_v32 = vadd.f32 %v2690_v29, %v7452_v7 }
 0x17b   :  { %1988 = vmatpush2.msra.mxu0 %v613_v23  ;;  %v2641_v25 = vmul.f32 0.03125, %v2639_v19  ;;  %v7468_v30 = vadd.f32 %v1042_v26, %v929_v38  ;;  %1944 = vmatprep.mubr.f32.mxu0 %v8786_v0  ;;  %v566_v26 = vld [vmem:[#allocation6 + $0xd58] sm:$0xff]  ;;  %v549_v19 = vld [vmem:[#allocation6 + $0xcd0] sm:$0xff] }
 0x17c   :  { %1989 = vmatprep.subr.mxu0 %v598_v52  ;;  %v7472_v37 = vpop.f32.mrf.mxu0  ;;  %2094 = vmatprep.subr.mxu1 %v662_v51  ;;  %v550_v23 = vld [vmem:[#allocation6 + $0xcd8] sm:$0xff]  ;;  %v1115_v51 = vpop.f32.mrf.mxu1 }
 0x17d   :  { %1990 = vmatpush2.msra.mxu0 %v597_v18  ;;  %v7475_v47 = vsub.f32 %v7391_v57, %v2641_v25  ;;  %v7478_v15 = vsub.f32 %v7383_v8, %v2641_v25  ;;  %1832 = vmatmul.mubr.f32.gmra.mxu1 %v7480_v55  ;;  %v7484_v61 = vsub.f32 %v7394_v59, %v2641_v25  ;;  %v565_v57 = vld [vmem:[#allocation6 + $0xd50] sm:$0xff]  ;;  %v391_v59 = vld [vmem:[#allocation6 + $0x7e0] sm:$0xff] }
 0x17e   :  { %1991 = vmatprep.subr.mxu0 %v582_v21  ;;  %v2692_v4 = vadd.f32 %v2691_v32, %v7468_v30  ;;  %6404 = vmatmul.mubr.msk.f32.gmra.mxu0 %vm747_vm1, %v7336_v46  ;;  %v1226_v2 = vpop.f32.mrf.mxu0  ;;  %v376_v46 = vld [vmem:[#allocation6 + $0x768] sm:$0xff]  ;;  %v7497_v38 = vsub.f32 %v7411_v22, %v2641_v25  ;;  %v375_v32 = vld [vmem:[#allocation6 + $0x760] sm:$0xff] }
 0x17f   :  { %8795 = vst [vmem:[#allocation17_spill] sm:$0xff] %v7475_v47  ;;  %8796 = vst [vmem:[#allocation18_spill] sm:$0xff] %v7478_v15  ;;  %2095 = vmatpush1.msra.mxu1 %v661_v54  ;;  %v2646_v8 = vmul.f32 %v7475_v47, %v7475_v47  ;;  %v2647_v50 = vmul.f32 %v7478_v15, %v7478_v15  ;;  %1992 = vmatpush2.msra.mxu0 %v581_v53  ;;  %v534_v54 = vld [vmem:[#allocation6 + $0xc58] sm:$0xff]  ;;  %v359_v15 = vld [vmem:[#allocation6 + $0x6e0] sm:$0xff] }
 0x180   :  { %8798 = vst [vmem:[#allocation20_spill] sm:$0xff] %v7484_v61  ;;  %2128 = vmatprep.mubr.f32.mxu1 %v8786_v0  ;;  %v2693_v52 = vrot.slane %v2692_v4, 4  ;;  %1993 = vmatprep.subr.mxu0 %v566_v26  ;;  %v1228_v29 = vpop.f32.mrf.mxu0  ;;  %8799 = vst [vmem:[#allocation21_spill] sm:$0xff] %v7497_v38  ;;  %v2648_v21 = vmul.f32 %v7484_v61, %v7484_v61  ;;  %v533_v26 = vld [vmem:[#allocation6 + $0xc50] sm:$0xff]  ;;  %v344_v61 = vld [vmem:[#allocation6 + $0x668] sm:$0xff] }
 0x181   :  { %2177 = vmatprep.subr.mxu1 %v392_v56  ;;  %v2650_v18 = vadd.f32 %v2647_v50, %v2646_v8  ;;  %1994 = vmatpush2.msra.mxu0 %v565_v57  ;;  %v360_v56 = vld [vmem:[#allocation6 + $0x6e8] sm:$0xff]  ;;  %v1227_v8 = vadd.f32 %v1226_v2, %v1113_v48  ;;  %v517_v47 = vld [vmem:[#allocation6 + $0xbd0] sm:$0xff]  ;;  %v502_v48 = vld [vmem:[#allocation6 + $0xb58] sm:$0xff] }
 0x182   :  { %6407 = vmatmul.mubr.msk.f32.vlgmr.msra.gmra.mxu1 %vm747_vm1, %v7275_v5  ;;  %v2694_v53 = vadd.f32 %v2693_v52, %v2692_v4  ;;  %1995 = vmatprep.subr.mxu0 %v550_v23  ;;  %v1232_v0 = vpop.f32.mrf.mxu0  ;;  %v518_v5 = vld [vmem:[#allocation6 + $0xbd8] sm:$0xff]  ;;  %v343_v2 = vld [vmem:[#allocation6 + $0x660] sm:$0xff] }
 0x183   :  { %2178 = vmatpush1.msra.mxu1 %v391_v59  ;;  %v1119_v50 = vpop.f32.mrf.mxu1  ;;  %1996 = vmatpush2.msra.mxu0 %v549_v19  ;;  %v2651_v57 = vadd.f32 %v2650_v18, %v2648_v21  ;;  %v2649_v59 = vmul.f32 %v7497_v38, %v7497_v38  ;;  %v328_v21 = vld [vmem:[#allocation6 + $0x5e8] sm:$0xff] }
 0x184   :  { %2179 = vmatprep.subr.mxu1 %v376_v46  ;;  %v2695_v22 = vrot.slane %v2694_v53, 2  ;;  %v1233_v25 = vadd.f32 %v1232_v0, %v1119_v50  ;;  %1997 = vmatprep.subr.mxu0 %v534_v54  ;;  %v1234_v23 = vpop.f32.mrf.mxu0  ;;  %v1009_v0 = vadd.f32 %v7333_v43, %v7377_v62  ;;  %v501_v46 = vld [vmem:[#allocation6 + $0xb50] sm:$0xff]  ;;  %v3365_v54 = vrot.slane %v1227_v8, 1 }
 0x185   :  { %2180 = vmatpush1.msra.mxu1 %v375_v32  ;;  %v1121_v4 = vpop.f32.mrf.mxu1  ;;  %1998 = vmatpush2.msra.mxu0 %v533_v26  ;;  %v1229_v32 = vadd.f32 %v1228_v29, %v1115_v51  ;;  %v7505_v55 = vadd.f32 %v2651_v57, %v2649_v59  ;;  %v486_v26 = vld [vmem:[#allocation6 + $0xad8] sm:$0xff]  ;;  %v1003_v29 = vadd.f32 %v7327_v36, %v7361_v31  ;;  %v295_v31 = vld [vmem:[#allocation6 + $0x4e0] sm:$0xff] }
 0x186   :  { %2181 = vmatprep.subr.mxu1 %v360_v56  ;;  %v2696_v52 = vadd.f32 %v2695_v22, %v2694_v53  ;;  %v3366_v19 = vrot.slane %v1233_v25, 1  ;;  %v1235_v18 = vadd.f32 %v1234_v23, %v1121_v4  ;;  %1999 = vmatprep.subr.mxu0 %v518_v5  ;;  %v327_v56 = vld [vmem:[#allocation6 + $0x5e0] sm:$0xff]  ;;  %v485_v22 = vld [vmem:[#allocation6 + $0xad0] sm:$0xff]  ;;  %v312_v25 = vld [vmem:[#allocation6 + $0x568] sm:$0xff] }
 0x187   :  { %2182 = vmatpush1.msra.mxu1 %v359_v15  ;;  %v1238_v50 = vpop.f32.mrf.mxu0  ;;  %2000 = vmatpush2.msra.mxu0 %v517_v47  ;;  %v1125_v53 = vpop.f32.mrf.mxu1  ;;  %v470_v47 = vld [vmem:[#allocation6 + $0xa58] sm:$0xff]  ;;  %v469_v4 = vld [vmem:[#allocation6 + $0xa50] sm:$0xff]  ;;  %v296_v23 = vld [vmem:[#allocation6 + $0x4e8] sm:$0xff]  ;;  %v3402_v59 = vrot.slane %v1229_v32, 2 }
 0x188   :  { %2183 = vmatprep.subr.mxu1 %v344_v61  ;;  %v2697_v38 = vrot.slane %v2696_v52, 1  ;;  %2001 = vmatprep.subr.mxu0 %v502_v48  ;;  %v3367_v43 = vsel %vm3364_vm2, %v3365_v54, %v3366_v19  ;;  %v3386_v62 = vadd.f32 %v3366_v19, %v1009_v0  ;;  %v3403_v15 = vrot.slane %v1235_v18, 2  ;;  %v311_v61 = vld [vmem:[#allocation6 + $0x560] sm:$0xff]  ;;  %v454_v36 = vld [vmem:[#allocation6 + $0x9d8] sm:$0xff] }
 0x189   :  { %2184 = vmatpush1.msra.mxu1 %v343_v2  ;;  %v7508_v5 = vadd.f32 %v1238_v50, %v1125_v53  ;;  %v1240_v51 = vpop.f32.mrf.mxu0  ;;  %2002 = vmatpush2.msra.mxu0 %v501_v46  ;;  %v1127_v57 = vpop.f32.mrf.mxu1  ;;  %v2653_v19 = vrot.slane %v7505_v55, 4  ;;  %v3385_v0 = vadd.f32 %v3367_v43, %v1003_v29  ;;  %v280_v46 = vld [vmem:[#allocation6 + $0x468] sm:$0xff]  ;;  %v279_v53 = vld [vmem:[#allocation6 + $0x460] sm:$0xff] }
 0x18a   :  { %2185 = vmatprep.subr.mxu1 %v328_v21  ;;  %v2698_v8 = vadd.f32 %v2697_v38, %v2696_v52  ;;  %2003 = vmatprep.subr.mxu0 %v486_v26  ;;  %v7512_v48 = vadd.f32 %v1240_v51, %v1127_v57  ;;  %v453_v52 = vld [vmem:[#allocation6 + $0x9d0] sm:$0xff]  ;;  %v3404_v21 = vsel %vm3401_vm3, %v3402_v59, %v3403_v15  ;;  %v263_v57 = vld [vmem:[#allocation6 + $0x3e0] sm:$0xff]  ;;  %v248_v59 = vld [vmem:[#allocation6 + $0x368] sm:$0xff] }
 0x18b   :  { %2186 = vmatpush1.msra.mxu1 %v327_v56  ;;  %v1244_v2 = vpop.f32.mrf.mxu0  ;;  %2004 = vmatpush2.msra.mxu0 %v485_v22  ;;  %v7518_v54 = vadd.f32 %v3403_v15, %v3386_v62  ;;  %v3368_v32 = vrot.slane %v7508_v5, 1  ;;  %v438_v56 = vld [vmem:[#allocation6 + $0x958] sm:$0xff]  ;;  %v1015_v62 = vadd.f32 %v7345_v58, %v7399_v17  ;;  %v437_v15 = vld [vmem:[#allocation6 + $0x950] sm:$0xff]  ;;  %v264_v5 = vld [vmem:[#allocation6 + $0x3e8] sm:$0xff]  ;;  %v7537_v58 = vadd.f32 %v3404_v21, %v3385_v0 }
 0x18c   :  { %2187 = vmatprep.subr.mxu1 %v312_v25  ;;  %v7515_v18 = vmul.f32 0.03125, %v2698_v8  ;;  %v1131_v38 = vpop.f32.mrf.mxu1  ;;  %2005 = vmatprep.subr.mxu0 %v470_v47  ;;  %v3405_v51 = vrot.slane %v7512_v48, 2  ;;  %v422_v8 = vld [vmem:[#allocation6 + $0x8d8] sm:$0xff] }
 0x18d   :  { %2188 = vmatpush1.msra.mxu1 %v311_v61  ;;  %v1245_v50 = vadd.f32 %v1244_v2, %v1131_v38  ;;  %v1246_v26 = vpop.f32.mrf.mxu0  ;;  %2006 = vmatpush2.msra.mxu0 %v469_v4  ;;  %v421_v4 = vld [vmem:[#allocation6 + $0x8d0] sm:$0xff] }
 0x18e   :  { %2189 = vmatprep.subr.mxu1 %v296_v23  ;;  %v7523_v22 = vsub.f32 %v7450_v3, %v7515_v18  ;;  %v7527_v25 = vsub.f32 %v7443_v35, %v7515_v18  ;;  %v1133_v43 = vpop.f32.mrf.mxu1  ;;  %2007 = vmatprep.subr.mxu0 %v454_v36  ;;  %v7533_v3 = vadd.f32 %v2653_v19, %v7505_v55  ;;  %v3430_v55 = vsel %vm3401_vm3, %v7518_v54, 0.0  ;;  %v406_v19 = vld [vmem:[#allocation6 + $0x858] sm:$0xff]  ;;  %v405_v38 = vld [vmem:[#allocation6 + $0x850] sm:$0xff] }
 0x18f   :  { %2190 = vmatpush1.msra.mxu1 %v295_v31  ;;  %v3369_v29 = vrot.slane %v1245_v50, 1  ;;  %v1247_v47 = vadd.f32 %v1246_v26, %v1133_v43  ;;  %v1250_v61 = vpop.f32.mrf.mxu0  ;;  %v1021_v35 = vadd.f32 %v7349_v34, %v7415_v11  ;;  %2008 = vmatpush2.msra.mxu0 %v453_v52  ;;  %v247_v52 = vld [vmem:[#allocation6 + $0x360] sm:$0xff]  ;;  %v232_v26 = vld [vmem:[#allocation6 + $0x2e8] sm:$0xff] }
 0x190   :  { %2191 = vmatprep.subr.mxu1 %v280_v46  ;;  %v1137_v17 = vpop.f32.mrf.mxu1  ;;  %2009 = vmatprep.subr.mxu0 %v438_v56  ;;  %v2704_v23 = vmul.f32 %v7523_v22, %v7523_v22  ;;  %v2705_v2 = vmul.f32 %v7527_v25, %v7527_v25  ;;  %v3431_v56 = vadd.f32 %v3430_v55, %v7537_v58 }
 0x191   :  { %2192 = vmatpush1.msra.mxu1 %v279_v53  ;;  %v3370_v48 = vsel %vm3364_vm2, %v3368_v32, %v3369_v29  ;;  %v3406_v34 = vrot.slane %v1247_v47, 2  ;;  %v1252_v11 = vpop.f32.mrf.mxu0  ;;  %2010 = vmatpush2.msra.mxu0 %v437_v15  ;;  %v3388_v31 = vadd.f32 %v3369_v29, %v1021_v35  ;;  %v1251_v21 = vadd.f32 %v1250_v61, %v1137_v17 }
 0x192   :  { %2193 = vmatprep.subr.mxu1 %v264_v5  ;;  %v3387_v36 = vadd.f32 %v3370_v48, %v1015_v62  ;;  %v1139_v0 = vpop.f32.mrf.mxu1  ;;  %2011 = vmatprep.subr.mxu0 %v422_v8  ;;  %v7554_v15 = vsub.f32 %v7452_v7, %v7515_v18  ;;  %v231_v5 = vld [vmem:[#allocation6 + $0x2e0] sm:$0xff]  ;;  %v2655_v61 = vrot.slane %v7533_v3, 2  ;;  %v1033_v35 = vadd.f32 %v7402_v10, %v7435_v49 }
 0x193   :  { %2194 = vmatpush1.msra.mxu1 %v263_v57  ;;  %v3407_v46 = vsel %vm3401_vm3, %v3405_v51, %v3406_v34  ;;  %v1253_v50 = vadd.f32 %v1252_v11, %v1139_v0  ;;  %v1256_v32 = vpop.f32.mrf.mxu0  ;;  %2012 = vmatpush2.msra.mxu0 %v421_v4  ;;  %v7550_v43 = vadd.f32 %v3406_v34, %v3388_v31  ;;  %v3371_v51 = vrot.slane %v1251_v21, 1  ;;  %v216_v57 = vld [vmem:[#allocation6 + $0x268] sm:$0xff]  ;;  %v743_v21 = vld [vmem:[#allocation6 + $0x12e0] sm:$0xf] }
 0x194   :  { %2195 = vmatprep.subr.mxu1 %v248_v59  ;;  %v7548_v53 = vadd.f32 %v3407_v46, %v3387_v36  ;;  %v1143_v62 = vpop.f32.mrf.mxu1  ;;  %2013 = vmatprep.subr.mxu0 %v406_v19  ;;  %v2708_v8 = vadd.f32 %v2705_v2, %v2704_v23  ;;  %v744_v59 = vld [vmem:[#allocation6 + $0x12e8] sm:$0xf]  ;;  %v1027_v10 = vadd.f32 %v7367_v60, %v7427_v28  ;;  %v8800_v11 = vmov 0.0  }
 0x195   :  { %2015 = vmatprep.mubr.f32.mxu0 %v7351_v20  ;;  %v1257_v29 = vadd.f32 %v1256_v32, %v1143_v62  ;;  %v1258_v47 = vpop.f32.mrf.mxu0  ;;  %2014 = vmatpush2.msra.mxu0 %v405_v38  ;;  %v215_v20 = vld [vmem:[#allocation6 + $0x260] sm:$0xff]  ;;  %v3433_v4 = vsel %vm3401_vm3, %v7550_v43, 0.0  ;;  %v3408_v55 = vrot.slane %v1253_v50, 2  ;;  %v7568_v49 = vsub.f32 %v7468_v30, %v7515_v18  ;;  %v200_v2 = vld [vmem:[#allocation6 + $0x1e8] sm:$0xff] }
 0x196   :  { %2196 = vmatpush1.msra.mxu1 %v247_v52  ;;  %v3432_v17 = vadd.f32 %v3431_v56, %v7548_v53  ;;  %v1145_v7 = vpop.f32.mrf.mxu1  ;;  %2016 = vmatmul.mubr.f32.vlgmr.msra.gmra.mxu0 %v7354_v45  ;;  %v2706_v23 = vmul.f32 %v7554_v15, %v7554_v15  ;;  %v2656_v30 = vadd.f32 %v2655_v61, %v7533_v3  ;;  %v199_v18 = vld [vmem:[#allocation6 + $0x1e0] sm:$0xff]  ;;  %v7578_v52 = vld [vmem:[#allocation2 + $0x28] sm:$0xff] }
 0x197   :  { %2197 = vmatprep.subr.mxu1 %v232_v26  ;;  %v3372_v48 = vrot.slane %v1257_v29, 1  ;;  %v1259_v34 = vadd.f32 %v1258_v47, %v1145_v7  ;;  %2021 = vmatprep.mubr.f32.mxu0 %v7363_v33  ;;  %v184_v46 = vld [vmem:[#allocation6 + $0x168] sm:$0xff]  ;;  %v183_v56 = vld [vmem:[#allocation6 + $0x160] sm:$0xff] }
 0x198   :  { %2198 = vmatpush1.msra.mxu1 %v231_v5  ;;  %v3434_v45 = vadd.f32 %v3433_v4, %v3432_v17  ;;  %2134 = vmatprep.mubr.f32.mxu1 %v8800_v11  ;;  %v1149_v60 = vpop.f32.mrf.mxu1  ;;  %v2709_v38 = vadd.f32 %v2708_v8, %v2706_v23  ;;  %v168_v29 = vld [vmem:[#allocation6 + $0xe8] sm:$0xff]  ;;  %v167_v61 = vld [vmem:[#allocation6 + $0xe0] sm:$0xff]  ;;  %v2657_v8 = vrot.slane %v2656_v30, 1 }
 0x199   :  { %2199 = vmatprep.subr.mxu1 %v216_v57  ;;  %v3373_v19 = vsel %vm3364_vm2, %v3371_v51, %v3372_v48  ;;  %v3390_v36 = vadd.f32 %v3372_v48, %v1033_v35  ;;  %v3409_v31 = vrot.slane %v1259_v34, 2  ;;  %v1262_v28 = vpop.f32.mrf.mxu0  ;;  %6415 = vmatprep.subr.msk.mxu0 %vm772_vm0, %v744_v59  ;;  %v2707_v51 = vmul.f32 %v7568_v49, %v7568_v49  ;;  %v152_v17 = vld [vmem:[#allocation6 + $0x68] sm:$0xff]  ;;  %v7598_v59 = vld [vmem:[#allocation2 + $0x40] sm:$0xff] }
 0x19a   :  { %2200 = vmatpush1.msra.mxu1 %v215_v20  ;;  %v3435_v0 = vrot.slane %v3434_v45, 4  ;;  %v3389_v33 = vadd.f32 %v3373_v19, %v1027_v10  ;;  %2022 = vmatmul.mubr.f32.gmra.mxu0 %v7369_v40  ;;  %v1151_v3 = vpop.f32.mrf.mxu1  ;;  %v1263_v40 = vadd.f32 %v1262_v28, %v1149_v60  ;;  %v647_v19 = vld [vmem:[#allocation6 + $0xfe0] sm:$0xff]  ;;  %v2658_v28 = vadd.f32 %v2657_v8, %v2656_v30 }
 0x19b   :  { %6408 = vmatmul.mubr.msk.f32.gmra.mxu1 %vm747_vm1, %v7578_v52  ;;  %v3410_v50 = vsel %vm3401_vm3, %v3408_v55, %v3409_v31  ;;  %v7583_v32 = vadd.f32 %v3409_v31, %v3390_v36  ;;  %v1264_v26 = vpop.f32.mrf.mxu0  ;;  %2201 = vmatprep.subr.mxu1 %v200_v2  ;;  %v2710_v57 = vadd.f32 %v2709_v38, %v2707_v51  ;;  %v151_v55 = vld [vmem:[#allocation6 + $0x60] sm:$0xff]  ;;  %v7609_v38 = vld [vmem:[#allocation2 + $0x58] sm:$0xff]  ;;  %v7624_v51 = vld [vmem:[#allocation4 + $0x10] sm:$0xff] }
 0x19c   :  { %2027 = vmatprep.mubr.f32.mxu0 %v7374_v63  ;;  %v3436_v62 = vadd.f32 %v3435_v0, %v3434_v45  ;;  %v7586_v5 = vadd.f32 %v3410_v50, %v3389_v33  ;;  %2202 = vmatpush1.msra.mxu1 %v199_v18  ;;  %v1265_v7 = vadd.f32 %v1264_v26, %v1151_v3  ;;  %v3374_v34 = vrot.slane %v1263_v40, 1  ;;  %v648_v45 = vld [vmem:[#allocation6 + $0xfe8] sm:$0xff]  ;;  %v615_v50 = vld [vmem:[#allocation6 + $0xee0] sm:$0xff] }
 0x19d   :  { %2140 = vmatprep.mubr.f32.mxu1 %v8800_v11  ;;  %v3481_v47 = vsel %vm3401_vm3, %v7583_v32, 0.0  ;;  %2203 = vmatprep.subr.mxu1 %v184_v46  ;;  %v1045_v2 = vadd.f32 %v7456_v14, %v7472_v37  ;;  %v1039_v18 = vadd.f32 %v7429_v44, %v7454_v12  ;;  %v2711_v0 = vrot.slane %v2710_v57, 4  ;;  %v631_v14 = vld [vmem:[#allocation6 + $0xf60] sm:$0xff]  ;;  %v616_v44 = vld [vmem:[#allocation6 + $0xee8] sm:$0xff] }
 0x19e   :  { %v3437_v35 = vrot.slane %v3436_v62, 2  ;;  %6416 = vmatpush1.msk.msra.mxu0 %vm772_vm0, %v743_v21  ;;  %v7595_v63 = vadd.f32 %v3481_v47, %v7586_v5  ;;  %2204 = vmatpush1.msra.mxu1 %v183_v56  ;;  %v1155_v20 = vpop.f32.mrf.mxu1  ;;  %v3411_v33 = vrot.slane %v1265_v7, 2  ;;  %v2659_v3 = vmul.f32 0.03125, %v2658_v28  ;;  %v600_v56 = vld [vmem:[#allocation6 + $0xe68] sm:$0xff] }
 0x19f   :  { %2028 = vmatmul.mubr.f32.gmra.mxu0 %v7385_v9  ;;  %v1268_v4 = vpop.f32.mrf.mxu0  ;;  %6409 = vmatmul.mubr.msk.f32.gmra.mxu1 %vm747_vm1, %v7598_v59  ;;  %v2712_v26 = vadd.f32 %v2711_v0, %v2710_v57  ;;  %v728_v57 = vld [vmem:[#allocation6 + $0x1268] sm:$0xff] }
 0x1a0   :  { %2205 = vmatprep.subr.mxu1 %v168_v29  ;;  %v3438_v48 = vadd.f32 %v3437_v35, %v3436_v62  ;;  %v1269_v10 = vadd.f32 %v1268_v4, %v1155_v20  ;;  %2033 = vmatprep.mubr.f32.mxu0 %v7396_v39  ;;  %v1157_v23 = vpop.f32.mrf.mxu1  ;;  %v632_v39 = vld [vmem:[#allocation6 + $0xf68] sm:$0xff]  ;;  %v599_v29 = vld [vmem:[#allocation6 + $0xe60] sm:$0xff] }
 0x1a1   :  { %2206 = vmatpush1.msra.mxu1 %v167_v61  ;;  %v1270_v9 = vpop.f32.mrf.mxu0  ;;  %2146 = vmatprep.mubr.f32.mxu1 %v8800_v11  ;;  %v2713_v20 = vrot.slane %v2712_v26, 2  ;;  %v696_v0 = vld [vmem:[#allocation6 + $0x1168] sm:$0xff] }
 0x1a2   :  { %2207 = vmatprep.subr.mxu1 %v152_v17  ;;  %v3439_v36 = vrot.slane %v3438_v48, 1  ;;  %v3375_v31 = vrot.slane %v1269_v10, 1  ;;  %v1271_v60 = vadd.f32 %v1270_v9, %v1157_v23  ;;  %v2660_v17 = vadd.f32 1e-05, %v2659_v3  ;;  %2312 = vmatprep.subr.mxu0 %v728_v57 }
 0x1a3   :  { %2208 = vmatpush1.msra.mxu1 %v151_v55  ;;  %2034 = vmatmul.mubr.f32.gmra.mxu0 %v7406_v13 }
 0x1a4   :  { %6410 = vmatmul.mubr.msk.f32.gmra.mxu1 %vm747_vm1, %v7609_v38  ;;  %2209 = vmatprep.subr.mxu1 %v648_v45  ;;  %v3440_v37 = vadd.f32 %v3439_v36, %v3438_v48  ;;  %v3376_v46 = vsel %vm3364_vm2, %v3374_v34, %v3375_v31  ;;  %v3392_v30 = vadd.f32 %v3375_v31, %v1045_v2  ;;  %v3412_v21 = vrot.slane %v1271_v60, 2  ;;  %v7650_v48 = vld [vmem:[#allocation4 + $0x28] sm:$0xff]  ;;  %v1452_v9 = vpop.f32.mrf.mxu0  ;;  %v711_v36 = vld [vmem:[#allocation6 + $0x11e0] sm:$0xff] }
 0x1a5   :  { %2210 = vmatpush2.msra.mxu1 %v647_v19  ;;  %2039 = vmatprep.mubr.f32.mxu0 %v7417_v27  ;;  %v3391_v12 = vadd.f32 %v3376_v46, %v1039_v18  ;;  %v712_v45 = vld [vmem:[#allocation6 + $0x11e8] sm:$0xff]  ;;  %6728 = vrsqrt.f32 %v2660_v17  ;;  %v2714_v60 = vadd.f32 %v2713_v20, %v2712_v26  ;;  %v551_v18 = vld [vmem:[#allocation6 + $0xce0] sm:$0xff]  ;;  %v8801_v17 = vld [vmem:[#allocation19_spill] sm:$0xff] }
 0x1a6   :  { %2211 = vmatprep.subr.mxu1 %v632_v39  ;;  %2152 = vmatprep.mubr.f32.mxu1 %v8800_v11  ;;  %v3442_v13 = vmul.f32 0.035714287, %v3440_v37  ;;  %v3413_v62 = vsel %vm3401_vm3, %v3411_v33, %v3412_v21  ;;  %v7628_v47 = vadd.f32 %v3412_v21, %v3392_v30  ;;  %v552_v19 = vld [vmem:[#allocation6 + $0xce8] sm:$0xff]  ;;  %v7662_v33 = vld [vmem:[#allocation4 + $0x40] sm:$0xff] }
 0x1a7   :  { %2212 = vmatpush2.msra.mxu1 %v631_v14  ;;  %2040 = vmatmul.mubr.f32.gmra.mxu0 %v7422_v24  ;;  %v695_v14 = vld [vmem:[#allocation6 + $0x1160] sm:$0xff]  ;;  %v2715_v3 = vrot.slane %v2714_v60, 1 }
 0x1a8   :  { %v7619_v40 = vsub.f32 %v7537_v58, %v3442_v13  ;;  %v7622_v27 = vsub.f32 %v7518_v54, %v3442_v13  ;;  %6411 = vmatmul.mubr.msk.f32.gmra.mxu1 %vm747_vm1, %v7624_v51  ;;  %2213 = vmatprep.subr.mxu1 %v616_v44  ;;  %v7631_v24 = vsub.f32 %v7548_v53, %v3442_v13  ;;  %v584_v54 = vld [vmem:[#allocation6 + $0xde8] sm:$0xff]  ;;  %v583_v53 = vld [vmem:[#allocation6 + $0xde0] sm:$0xff]  ;;  %v7668_v44 = vpop.f32.mrf.mxu0 }
 0x1a9   :  { %v7634_v61 = vsub.f32 %v7550_v43, %v3442_v13  ;;  %2214 = vmatpush2.msra.mxu1 %v615_v50  ;;  %2045 = vmatprep.mubr.f32.mxu0 %v7431_v41  ;;  %v7637_v58 = vadd.f32 %v3413_v62, %v3391_v12  ;;  %v568_v43 = vld [vmem:[#allocation6 + $0xd68] sm:$0xff]  ;;  %v727_v41 = vld [vmem:[#allocation6 + $0x1260] sm:$0xff] }
 0x1aa   :  { %v3447_v35 = vmul.f32 %v7619_v40, %v7619_v40  ;;  %v3448_v8 = vmul.f32 %v7622_v27, %v7622_v27  ;;  %2215 = vmatprep.subr.mxu1 %v600_v56  ;;  %2158 = vmatprep.mubr.f32.mxu1 %v8800_v11  ;;  %v3449_v34 = vmul.f32 %v7631_v24, %v7631_v24  ;;  %v535_v21 = vld [vmem:[#allocation6 + $0xc60] sm:$0xff]  ;;  %v520_v56 = vld [vmem:[#allocation6 + $0xbe8] sm:$0xff] }
 0x1ab   :  { %2216 = vmatpush2.msra.mxu1 %v599_v29  ;;  %2046 = vmatmul.mubr.f32.gmra.mxu0 %v7437_v6  ;;  %v3483_v7 = vadd.f32 %v7595_v63, %v7637_v58  ;;  %v3450_v4 = vmul.f32 %v7634_v61, %v7634_v61  ;;  %v3484_v6 = vsel %vm3401_vm3, %v7628_v47, 0.0  ;;  %v567_v63 = vld [vmem:[#allocation6 + $0xd60] sm:$0xff] }
 0x1ac   :  { %v3451_v55 = vsel %vm3401_vm3, %v3448_v8, 0.0  ;;  %6412 = vmatmul.mubr.msk.f32.gmra.mxu1 %vm747_vm1, %v7650_v48  ;;  %2217 = vmatprep.subr.mxu1 %v584_v54  ;;  %v679_v62 = vld [vmem:[#allocation6 + $0x10e0] sm:$0xff] }
 0x1ad   :  { %v3452_v10 = vadd.f32 %v3451_v55, %v3447_v35  ;;  %2218 = vmatpush2.msra.mxu1 %v583_v53  ;;  %v3485_v23 = vadd.f32 %v3484_v6, %v3483_v7  ;;  %2313 = vmatpush1.msra.mxu0 %v727_v41  ;;  %v3454_v28 = vsel %vm3401_vm3, %v3450_v4, 0.0  ;;  %v519_v54 = vld [vmem:[#allocation6 + $0xbe0] sm:$0xff]  ;;  %v664_v35 = vld [vmem:[#allocation6 + $0x1068] sm:$0xff]  ;;  %v2716_v4 = vadd.f32 %v2715_v3, %v2714_v60 }
 0x1ae   :  { %2219 = vmatprep.subr.mxu1 %v568_v43  ;;  %2051 = vmatprep.mubr.f32.mxu0 %v7445_v1  ;;  %v536_v1 = vld [vmem:[#allocation6 + $0xc68] sm:$0xff]  ;;  %v7675_v43 = vld [vmem:[#allocation4 + $0x58] sm:$0xff]  ;;  %v663_v41 = vld [vmem:[#allocation6 + $0x1060] sm:$0xff] }
 0x1af   :  { %v3453_v2 = vadd.f32 %v3452_v10, %v3449_v34  ;;  %2164 = vmatprep.mubr.f32.mxu1 %v8800_v11  ;;  %v3486_v31 = vrot.slane %v3485_v23, 4  ;;  %2220 = vmatpush2.msra.mxu1 %v567_v63  ;;  %v503_v55 = vld [vmem:[#allocation6 + $0xb60] sm:$0xff]  ;;  %v394_v63 = vld [vmem:[#allocation6 + $0x7f8] sm:$0xff] }
 0x1b0   :  { %2314 = vmatprep.subr.mxu0 %v712_v45  ;;  %2052 = vmatmul.mubr.f32.gmra.mxu0 %v7458_v16  ;;  %v680_v16 = vld [vmem:[#allocation6 + $0x10e8] sm:$0xff] }
 0x1b1   :  { %v3455_v39 = vadd.f32 %v3454_v28, %v3453_v2  ;;  %6413 = vmatmul.mubr.msk.f32.gmra.mxu1 %vm747_vm1, %v7662_v33  ;;  %v3487_v37 = vadd.f32 %v3486_v31, %v3485_v23  ;;  %v1339_v46 = vpop.f32.mrf.mxu1  ;;  %2221 = vmatprep.subr.mxu1 %v552_v19  ;;  %v488_v23 = vld [vmem:[#allocation6 + $0xae8] sm:$0xff]  ;;  %v393_v19 = vld [vmem:[#allocation6 + $0x7f0] sm:$0xff]  ;;  %v2717_v28 = vmul.f32 0.03125, %v2716_v4 }
 0x1b2   :  { %2315 = vmatpush1.msra.mxu0 %v711_v36  ;;  %v7666_v30 = vadd.f32 %v1452_v9, %v1339_v46  ;;  %2222 = vmatpush2.msra.mxu1 %v551_v18  ;;  %v487_v36 = vld [vmem:[#allocation6 + $0xae0] sm:$0xff]  ;;  %v378_v18 = vld [vmem:[#allocation6 + $0x778] sm:$0xff] }
 0x1b3   :  { %v3456_v12 = vrot.slane %v3455_v39, 4  ;;  %2316 = vmatprep.subr.mxu0 %v696_v0  ;;  %v3488_v13 = vrot.slane %v3487_v37, 2  ;;  %v7670_v50 = vpop.f32.mrf.mxu1  ;;  %2223 = vmatprep.subr.mxu1 %v536_v1  ;;  %v472_v0 = vld [vmem:[#allocation6 + $0xa68] sm:$0xff]  ;;  %v7688_v1 = vpop.eup %6728 }
 0x1b4   :  { %2317 = vmatpush1.msra.mxu0 %v695_v14  ;;  %2057 = vmatprep.mubr.f32.mxu0 %v7465_v42  ;;  %v504_v42 = vld [vmem:[#allocation6 + $0xb68] sm:$0xff] }
 0x1b5   :  { %v3457_v26 = vadd.f32 %v3456_v12, %v3455_v39  ;;  %2170 = vmatprep.mubr.f32.mxu1 %v8800_v11  ;;  %v3489_v29 = vadd.f32 %v3488_v13, %v3487_v37  ;;  %2224 = vmatpush2.msra.mxu1 %v535_v21  ;;  %v1345_v8 = vpop.f32.mrf.mxu1  ;;  %v7699_v21 = vld [vmem:[#allocation2 + $0x10] sm:$0xff]  ;;  %v471_v13 = vld [vmem:[#allocation6 + $0xa60] sm:$0xff] }
 0x1b6   :  { %2318 = vmatprep.subr.mxu0 %v680_v16  ;;  %v1458_v53 = vpop.f32.mrf.mxu0  ;;  %2058 = vmatmul.mubr.f32.gmra.mxu0 %v8801_v17  ;;  %v377_v16 = vld [vmem:[#allocation6 + $0x770] sm:$0xff]  ;;  %v346_v17 = vld [vmem:[#allocation6 + $0x678] sm:$0xff]  ;;  %v8803_v4 = vld [vmem:[#allocation17_spill] sm:$0xff] }
 0x1b7   :  { %v3458_v57 = vrot.slane %v3457_v26, 2  ;;  %6414 = vmatmul.mubr.msk.f32.gmra.mxu1 %vm747_vm1, %v7675_v43  ;;  %v3490_v7 = vrot.slane %v3489_v29, 1  ;;  %v7679_v20 = vadd.f32 %v1458_v53, %v1345_v8  ;;  %2225 = vmatprep.subr.mxu1 %v520_v56  ;;  %v7681_v6 = vpop.f32.mrf.mxu1  ;;  %v7710_v53 = vld [vmem:[#allocation7] ss:$0 sm:$0xff] }
 0x1b8   :  { %2319 = vmatpush1.msra.mxu0 %v679_v62  ;;  %v7683_v34 = vpop.f32.mrf.mxu0  ;;  %2226 = vmatpush2.msra.mxu1 %v519_v54  ;;  %v361_v54 = vld [vmem:[#allocation6 + $0x6f0] sm:$0xff] }
 0x1b9   :  { %v3459_v10 = vadd.f32 %v3458_v57, %v3457_v26  ;;  %2320 = vmatprep.subr.mxu0 %v664_v35  ;;  %v3491_v45 = vadd.f32 %v3490_v7, %v3489_v29  ;;  %2227 = vmatprep.subr.mxu1 %v504_v42  ;;  %v455_v35 = vld [vmem:[#allocation6 + $0x9e0] sm:$0xff]  ;;  %v440_v42 = vld [vmem:[#allocation6 + $0x968] sm:$0xff] }
 0x1ba   :  { %2321 = vmatpush1.msra.mxu0 %v663_v41  ;;  %2228 = vmatpush2.msra.mxu1 %v503_v55  ;;  %v1351_v31 = vpop.f32.mrf.mxu1  ;;  %v8802_v41 = vld [vmem:[#allocation20_spill] sm:$0xff]  ;;  %v2662_v55 = vmul.f32 %v7688_v1, %v8803_v4 }
 0x1bb   :  { %v3460_v9 = vrot.slane %v3459_v10, 1  ;;  %2354 = vmatprep.mubr.f32.mxu0 %v8800_v11  ;;  %v3492_v2 = vmul.f32 0.035714287, %v3491_v45  ;;  %v1464_v60 = vpop.f32.mrf.mxu0  ;;  %2403 = vmatprep.subr.mxu0 %v394_v63  ;;  %v2664_v7 = vmul.f32 %v7688_v1, %v8802_v41 }
 0x1bc   :  { %2229 = vmatprep.subr.mxu1 %v488_v23  ;;  %v7686_v39 = vadd.f32 %v1464_v60, %v1351_v31  ;;  %6417 = vmatmul.mubr.msk.f32.vlgmr.msra.gmra.mxu0 %vm747_vm1, %v7699_v21  ;;  %v1353_v3 = vpop.f32.mrf.mxu1  ;;  %v345_v23 = vld [vmem:[#allocation6 + $0x670] sm:$0xff] }
 0x1bd   :  { %v3461_v14 = vadd.f32 %v3460_v9, %v3459_v10  ;;  %v7691_v37 = vsub.f32 %v7586_v5, %v3492_v2  ;;  %v7694_v46 = vsub.f32 %v7583_v32, %v3492_v2  ;;  %v7697_v12 = vsub.f32 %v7637_v58, %v3492_v2  ;;  %v1466_v26 = vpop.f32.mrf.mxu0  ;;  %2404 = vmatpush1.msra.mxu0 %v393_v19  ;;  %v362_v5 = vld [vmem:[#allocation6 + $0x6f8] sm:$0xff]  ;;  %v456_v32 = vld [vmem:[#allocation6 + $0x9e8] sm:$0xff]  ;;  %v439_v9 = vld [vmem:[#allocation6 + $0x960] sm:$0xff] }
 0x1be   :  { %v7704_v56 = vsub.f32 %v7628_v47, %v3492_v2  ;;  %2230 = vmatpush2.msra.mxu1 %v487_v36  ;;  %2405 = vmatprep.subr.mxu0 %v378_v18  ;;  %v1357_v8 = vpop.f32.mrf.mxu1  ;;  %v2718_v47 = vadd.f32 1e-05, %v2717_v28  ;;  %v1467_v2 = vadd.f32 %v1466_v26, %v1353_v3  ;;  %v330_v28 = vld [vmem:[#allocation6 + $0x5f8] sm:$0xff]  ;;  %v424_v18 = vld [vmem:[#allocation6 + $0x8e8] sm:$0xff] }
 0x1bf   :  { %v3462_v62 = vmul.f32 0.035714287, %v3461_v14  ;;  %v3497_v58 = vmul.f32 %v7691_v37, %v7691_v37  ;;  %v3498_v29 = vmul.f32 %v7694_v46, %v7694_v46  ;;  %2231 = vmatprep.subr.mxu1 %v472_v0  ;;  %2406 = vmatpush1.msra.mxu0 %v377_v16  ;;  %v1470_v10 = vpop.f32.mrf.mxu0  ;;  %v3499_v31 = vmul.f32 %v7697_v12, %v7697_v12  ;;  %v329_v14 = vld [vmem:[#allocation6 + $0x5f0] sm:$0xff]  ;;  %v423_v16 = vld [vmem:[#allocation6 + $0x8e0] sm:$0xff]  ;;  %v314_v26 = vld [vmem:[#allocation6 + $0x578] sm:$0xff] }
 0x1c0   :  { %v3500_v57 = vmul.f32 %v7704_v56, %v7704_v56  ;;  %2232 = vmatpush2.msra.mxu1 %v471_v13  ;;  %2407 = vmatprep.subr.mxu0 %v362_v5  ;;  %v1471_v19 = vadd.f32 %v1470_v10, %v1357_v8  ;;  %v1359_v36 = vpop.f32.mrf.mxu1  ;;  %v313_v8 = vld [vmem:[#allocation6 + $0x570] sm:$0xff] }
 0x1c1   :  { %v3463_v63 = vadd.f32 1e-05, %v3462_v62  ;;  %v3501_v45 = vsel %vm3401_vm3, %v3498_v29, 0.0  ;;  %2233 = vmatprep.subr.mxu1 %v456_v32  ;;  %2408 = vmatpush1.msra.mxu0 %v361_v54  ;;  %v1472_v0 = vpop.f32.mrf.mxu0  ;;  %v7721_v32 = vld [vmem:[#allocation9] ss:$0 sm:$0xff]  ;;  %v408_v62 = vld [vmem:[#allocation6 + $0x868] sm:$0xff]  ;;  %v2672_v29 = vmul.f32 %v7710_v53, %v2662_v55 }
 0x1c2   :  { %v3502_v60 = vadd.f32 %v3501_v45, %v3497_v58  ;;  %2234 = vmatpush2.msra.mxu1 %v455_v35  ;;  %2409 = vmatprep.subr.mxu0 %v346_v17  ;;  %v1473_v13 = vadd.f32 %v1472_v0, %v1359_v36  ;;  %v2674_v58 = vmul.f32 %v7710_v53, %v2664_v7  ;;  %v3504_v35 = vsel %vm3401_vm3, %v3500_v57, 0.0  ;;  %v407_v17 = vld [vmem:[#allocation6 + $0x860] sm:$0xff]  ;;  %v297_v7 = vld [vmem:[#allocation6 + $0x4f0] sm:$0xff] }
 0x1c3   :  { %6730 = vrsqrt.f32 %v3463_v63  ;;  %2235 = vmatprep.subr.mxu1 %v440_v42  ;;  %v1363_v5 = vpop.f32.mrf.mxu1  ;;  %2410 = vmatpush1.msra.mxu0 %v345_v23  ;;  %v4170_v42 = vrot.slane %v1467_v2, 1  ;;  %v298_v63 = vld [vmem:[#allocation6 + $0x4f8] sm:$0xff]  ;;  %v281_v0 = vld [vmem:[#allocation6 + $0x470] sm:$0xff] }
 0x1c4   :  { %6732 = vrsqrt.f32 %v2718_v47  ;;  %v3503_v3 = vadd.f32 %v3502_v60, %v3499_v31  ;;  %2236 = vmatpush2.msra.mxu1 %v439_v9  ;;  %v1476_v54 = vpop.f32.mrf.mxu0  ;;  %2411 = vmatprep.subr.mxu0 %v330_v28  ;;  %v4171_v41 = vrot.slane %v1473_v13, 1  ;;  %v746_v9 = vld [vmem:[#allocation6 + $0x12f8] sm:$0xf]  ;;  %v2684_v36 = vadd.f32 %v7721_v32, %v2674_v58  ;;  %v8804_v60 = vld [vmem:[#allocation21_spill] sm:$0xff] }
 0x1c5   :  { %2237 = vmatprep.subr.mxu1 %v424_v18  ;;  %v7726_v4 = vadd.f32 %v1476_v54, %v1363_v5  ;;  %v1365_v47 = vpop.f32.mrf.mxu1  ;;  %2412 = vmatpush1.msra.mxu0 %v329_v14  ;;  %v282_v2 = vld [vmem:[#allocation6 + $0x478] sm:$0xff]  ;;  %v2665_v28 = vmul.f32 %v7688_v1, %v8804_v60  ;;  %v7737_v18 = vld [vmem:[#allocation2 + $0x8] sm:$0xff]  ;;  %v2682_v14 = vadd.f32 %v7721_v32, %v2672_v29 }
 0x1c6   :  { %v3505_v10 = vadd.f32 %v3504_v35, %v3503_v3  ;;  %2238 = vmatpush2.msra.mxu1 %v423_v16  ;;  %v1478_v45 = vpop.f32.mrf.mxu0  ;;  %2413 = vmatprep.subr.mxu0 %v314_v26  ;;  %v4172_v55 = vsel %vm3364_vm2, %v4170_v42, %v4171_v41  ;;  %v7729_v57 = vadd.f32 %v4171_v41, %v1471_v19  ;;  %v745_v19 = vld [vmem:[#allocation6 + $0x12f0] sm:$0xf]  ;;  %v7741_v3 = vld [vmem:[#allocation2] sm:$0xff]  ;;  %v266_v58 = vld [vmem:[#allocation6 + $0x3f8] sm:$0xff]  ;;  %v7748_v41 = vmax.f32 %v2684_v36, 0.0 }
 0x1c7   :  { %2239 = vmatprep.subr.mxu1 %v408_v62  ;;  %2414 = vmatpush1.msra.mxu0 %v313_v8  ;;  %v7733_v31 = vadd.f32 %v4172_v55, %v7686_v39  ;;  %v730_v39 = vld [vmem:[#allocation6 + $0x1278] sm:$0xff]  ;;  %v1479_v26 = vadd.f32 %v1478_v45, %v1365_v47  ;;  %v8805_v54 = vld [vmem:[#allocation18_spill] sm:$0xff]  ;;  %v2675_v47 = vmul.f32 %v7710_v53, %v2665_v28 }
 0x1c8   :  { %v3506_v23 = vrot.slane %v3505_v10, 4  ;;  %2240 = vmatpush2.msra.mxu1 %v407_v17  ;;  %2241 = vmatprep.mubr.f32.mxu1 %v7737_v18  ;;  %v1369_v16 = vpop.f32.mrf.mxu1  ;;  %v2663_v35 = vmul.f32 %v7688_v1, %v8805_v54  ;;  %v729_v42 = vld [vmem:[#allocation6 + $0x1270] sm:$0xff]  ;;  %v714_v1 = vld [vmem:[#allocation6 + $0x11f8] sm:$0xff] }
 0x1c9   :  { %2415 = vmatprep.subr.mxu0 %v298_v63  ;;  %v1482_v13 = vpop.f32.mrf.mxu0  ;;  %2242 = vmatmul.mubr.f32.vlgmr.msra.gmra.mxu1 %v7741_v3  ;;  %v7751_v63 = vld [vmem:[#allocation2 + $0x20] sm:$0xff]  ;;  %v265_v45 = vld [vmem:[#allocation6 + $0x3f0] sm:$0xff]  ;;  %v250_v55 = vld [vmem:[#allocation6 + $0x378] sm:$0xff] }
 0x1ca   :  { %v3507_v5 = vadd.f32 %v3506_v23, %v3505_v10  ;;  %2416 = vmatpush1.msra.mxu0 %v297_v7  ;;  %v1483_v62 = vadd.f32 %v1482_v13, %v1369_v16  ;;  %6425 = vmatprep.subr.msk.mxu1 %vm772_vm0, %v746_v9  ;;  %v1371_v8 = vpop.f32.mrf.mxu1  ;;  %v7755_v23 = vmax.f32 %v2682_v14, 0.0  ;;  %v4173_v9 = vrot.slane %v1479_v26, 1  ;;  %v713_v28 = vld [vmem:[#allocation6 + $0x11f0] sm:$0xff]  ;;  %v698_v14 = vld [vmem:[#allocation6 + $0x1178] sm:$0xff] }
 0x1cb   :  { %2417 = vmatprep.subr.mxu0 %v282_v2  ;;  %v1484_v29 = vpop.f32.mrf.mxu0  ;;  %6426 = vmatpush1.msk.msra.mxu1 %vm772_vm0, %v745_v19  ;;  %v249_v19 = vld [vmem:[#allocation6 + $0x370] sm:$0xff]  ;;  %v2738_v26 = vmul.f32 %v7748_v41, %v7748_v41 }
 0x1cc   :  { %v3508_v17 = vrot.slane %v3507_v5, 2  ;;  %2418 = vmatpush1.msra.mxu0 %v281_v0  ;;  %v1485_v10 = vadd.f32 %v1484_v29, %v1371_v8  ;;  %2538 = vmatprep.subr.mxu1 %v730_v39  ;;  %v2673_v0 = vmul.f32 %v7710_v53, %v2663_v35  ;;  %v7764_v39 = vld [vmem:[#allocation2 + $0x18] sm:$0xff] }
 0x1cd   :  { %2247 = vmatprep.mubr.f32.mxu1 %v7751_v63  ;;  %2360 = vmatprep.mubr.f32.mxu0 %v8800_v11  ;;  %v1375_v36 = vpop.f32.mrf.mxu1 }
 0x1ce   :  { %v3509_v7 = vadd.f32 %v3508_v17, %v3507_v5  ;;  %2419 = vmatprep.subr.mxu0 %v266_v58  ;;  %v4174_v2 = vrot.slane %v1485_v10, 1  ;;  %v1488_v60 = vpop.f32.mrf.mxu0  ;;  %2539 = vmatpush1.msra.mxu1 %v729_v42  ;;  %v234_v42 = vld [vmem:[#allocation6 + $0x2f8] sm:$0xff] }
 0x1cf   :  { %6418 = vmatmul.mubr.msk.f32.gmra.mxu0 %vm747_vm1, %v7578_v52  ;;  %v7760_v16 = vadd.f32 %v1488_v60, %v1375_v36  ;;  %2248 = vmatmul.mubr.f32.gmra.mxu1 %v7764_v39  ;;  %v1377_v54 = vpop.f32.mrf.mxu1  ;;  %v7788_v36 = vld [vmem:[#allocation2 + $0x38] sm:$0xff] }
 0x1d0   :  { %v7762_v13 = vpop.eup %6730  ;;  %v3510_v5 = vrot.slane %v3509_v7, 1  ;;  %2420 = vmatpush1.msra.mxu0 %v265_v45  ;;  %v4175_v52 = vsel %vm3364_vm2, %v4173_v9, %v4174_v2  ;;  %v7770_v58 = vadd.f32 %v4174_v2, %v1483_v62  ;;  %v1490_v35 = vpop.f32.mrf.mxu0  ;;  %2540 = vmatprep.subr.mxu1 %v714_v1  ;;  %v2685_v62 = vadd.f32 %v7721_v32, %v2675_v47  ;;  %v697_v9 = vld [vmem:[#allocation6 + $0x1170] sm:$0xff] }
 0x1d1   :  { %v7772_v8 = vpop.eup %6732  ;;  %v7776_v29 = vmul.f32 %v7762_v13, %v7631_v24  ;;  %v7780_v17 = vmul.f32 %v7762_v13, %v7634_v61  ;;  %2421 = vmatprep.subr.mxu0 %v250_v55  ;;  %v7783_v10 = vadd.f32 %v4175_v52, %v7726_v4  ;;  %2541 = vmatpush1.msra.mxu1 %v713_v28  ;;  %v1381_v2 = vpop.f32.mrf.mxu1 }
 0x1d2   :  { %v3511_v45 = vadd.f32 %v3510_v5, %v3509_v7  ;;  %2422 = vmatpush1.msra.mxu0 %v249_v19  ;;  %v2736_v24 = vmul.f32 %v7755_v23, %v7755_v23  ;;  %2542 = vmatprep.subr.mxu1 %v698_v14  ;;  %v2683_v61 = vadd.f32 %v7721_v32, %v2673_v0  ;;  %v1494_v1 = vpop.f32.mrf.mxu0  ;;  %v682_v7 = vld [vmem:[#allocation6 + $0x10f8] sm:$0xff]  ;;  %v233_v5 = vld [vmem:[#allocation6 + $0x2f0] sm:$0xff]  ;;  %v7801_v52 = vmax.f32 %v2685_v62, 0.0 }
 0x1d3   :  { %2253 = vmatprep.mubr.f32.mxu1 %v7788_v36  ;;  %v7794_v4 = vmul.f32 %v7762_v13, %v7619_v40  ;;  %2366 = vmatprep.mubr.f32.mxu0 %v8800_v11  ;;  %v1491_v55 = vadd.f32 %v1490_v35, %v1377_v54  ;;  %v1495_v60 = vadd.f32 %v1494_v1, %v1381_v2  ;;  %v1383_v28 = vpop.f32.mrf.mxu1  ;;  %v681_v0 = vld [vmem:[#allocation6 + $0x10f0] sm:$0xff]  ;;  %v218_v54 = vld [vmem:[#allocation6 + $0x278] sm:$0xff] }
 0x1d4   :  { %v3512_v47 = vmul.f32 0.035714287, %v3511_v45  ;;  %2423 = vmatprep.subr.mxu0 %v234_v42  ;;  %v2723_v19 = vmul.f32 %v7772_v8, %v7568_v49  ;;  %2543 = vmatpush1.msra.mxu1 %v697_v9  ;;  %v2722_v14 = vmul.f32 %v7772_v8, %v7554_v15  ;;  %v1496_v40 = vpop.f32.mrf.mxu0  ;;  %v7803_v42 = vld [vmem:[#allocation2 + $0x30] sm:$0xff]  ;;  %v666_v35 = vld [vmem:[#allocation6 + $0x1078] sm:$0xff] }
 0x1d5   :  { %2744 = vadd.xlane.f32.xlu0 %v2738_v26  ;;  %2740 = vadd.xlane.f32.xlu1 %v2736_v24  ;;  %v1497_v2 = vadd.f32 %v1496_v40, %v1383_v28  ;;  %v217_v49 = vld [vmem:[#allocation6 + $0x270] sm:$0xff]  ;;  %v7808_v26 = vmax.f32 %v2683_v61, 0.0  ;;  %v202_v15 = vld [vmem:[#allocation6 + $0x1f8] sm:$0xff]  ;;  %v4176_v62 = vrot.slane %v1491_v55, 1 }
 0x1d6   :  { %v3513_v45 = vadd.f32 1e-05, %v3512_v47  ;;  %2254 = vmatmul.mubr.f32.gmra.mxu1 %v7803_v42  ;;  %6419 = vmatmul.mubr.msk.f32.gmra.mxu0 %vm747_vm1, %v7598_v59  ;;  %v2727_v24 = vmul.f32 %v7710_v53, %v2723_v19  ;;  %v665_v1 = vld [vmem:[#allocation6 + $0x1070] sm:$0xff]  ;;  %v2726_v47 = vmul.f32 %v7710_v53, %v2722_v14  ;;  %v2739_v59 = vmul.f32 %v7801_v52, %v7801_v52  ;;  %v7828_v14 = vld [vmem:[#allocation2 + $0x48] sm:$0xff] }
 0x1d7   :  { %2544 = vmatprep.subr.mxu1 %v682_v7  ;;  %2424 = vmatpush1.msra.mxu0 %v233_v5  ;;  %v4177_v9 = vrot.slane %v1497_v2, 1  ;;  %v7812_v28 = vld [vmem:[#allocation2 + $0x50] sm:$0xff]  ;;  %v2737_v55 = vmul.f32 %v7808_v26, %v7808_v26 }
 0x1d8   :  { %6734 = vrsqrt.f32 %v3513_v45  ;;  %2545 = vmatpush1.msra.mxu1 %v681_v0  ;;  %2425 = vmatprep.subr.mxu0 %v218_v54  ;;  %v201_v5 = vld [vmem:[#allocation6 + $0x1f0] sm:$0xff]  ;;  %v2721_v0 = vmul.f32 %v7772_v8, %v7527_v25  ;;  %v2731_v40 = vadd.f32 %v7721_v32, %v2727_v24  ;;  %v2730_v45 = vadd.f32 %v7721_v32, %v2726_v47  ;;  %v7838_v25 = vld [vmem:[#allocation4 + $0x8] sm:$0xff]  ;;  %v7853_v24 = vld [vmem:[#allocation4 + $0x20] sm:$0xff] }
 0x1d9   :  { %2546 = vmatprep.subr.mxu1 %v666_v35  ;;  %2426 = vmatpush1.msra.mxu0 %v217_v49  ;;  %v4178_v61 = vsel %vm3364_vm2, %v4176_v62, %v4177_v9  ;;  %v7818_v7 = vadd.f32 %v4177_v9, %v1495_v60  ;;  %v186_v60 = vld [vmem:[#allocation6 + $0x178] sm:$0xff]  ;;  %v185_v54 = vld [vmem:[#allocation6 + $0x170] sm:$0xff] }
 0x1da   :  { %2259 = vmatprep.mubr.f32.mxu1 %v7812_v28  ;;  %2372 = vmatprep.mubr.f32.mxu0 %v8800_v11  ;;  %v7824_v19 = vadd.f32 %v4178_v61, %v7760_v16  ;;  %v2720_v16 = vmul.f32 %v7772_v8, %v7523_v22  ;;  %v170_v35 = vld [vmem:[#allocation6 + $0xf8] sm:$0xff]  ;;  %v169_v2 = vld [vmem:[#allocation6 + $0xf0] sm:$0xff]  ;;  %v2725_v49 = vmul.f32 %v7710_v53, %v2721_v0  ;;  %v7843_v22 = vld [vmem:[#allocation4] sm:$0xff]  ;;  %v7846_v8 = vmax.f32 %v2731_v40, 0.0 }
 0x1db   :  { %2427 = vmatprep.subr.mxu0 %v202_v15  ;;  %2547 = vmatpush1.msra.mxu1 %v665_v1  ;;  %v7848_v15 = vmax.f32 %v2730_v45, 0.0  ;;  %v153_v9 = vld [vmem:[#allocation6 + $0x70] sm:$0xff]  ;;  %v650_v1 = vld [vmem:[#allocation6 + $0xff8] sm:$0xff] }
 0x1dc   :  { %2746 = vadd.xlane.f32.xlu0 %v2739_v59  ;;  %2742 = vadd.xlane.f32.xlu1 %v2737_v55  ;;  %v2724_v62 = vmul.f32 %v7710_v53, %v2720_v16  ;;  %v649_v47 = vld [vmem:[#allocation6 + $0xff0] sm:$0xff]  ;;  %v2729_v59 = vadd.f32 %v7721_v32, %v2725_v49  ;;  %v7858_v55 = vld [vmem:[#allocation4 + $0x18] sm:$0xff]  ;;  %v1461_v49 = vadd.f32 %v7683_v34, %v7681_v6 }
 0x1dd   :  { %2260 = vmatmul.mubr.f32.gmra.mxu1 %v7828_v14  ;;  %6420 = vmatmul.mubr.msk.f32.gmra.mxu0 %vm747_vm1, %v7609_v38  ;;  %v154_v38 = vld [vmem:[#allocation6 + $0x78] sm:$0xff]  ;;  %v2750_v0 = vmul.f32 %v7848_v15, %v7848_v15  ;;  %v633_v45 = vld [vmem:[#allocation6 + $0xf70] sm:$0xff] }
 0x1de   :  { %6545 = vmatprep.subr.mxu1 %v7808_v26  ;;  %2428 = vmatpush1.msra.mxu0 %v201_v5  ;;  %v2751_v5 = vmul.f32 %v7846_v8, %v7846_v8  ;;  %v601_v6 = vld [vmem:[#allocation6 + $0xe70] sm:$0xff] }
 0x1df   :  { %2265 = vmatprep.mubr.f32.mxu1 %v7838_v25  ;;  %2429 = vmatprep.subr.mxu0 %v186_v60  ;;  %v2728_v60 = vadd.f32 %v7721_v32, %v2724_v62  ;;  %v1455_v62 = vadd.f32 %v7668_v44, %v7670_v50 }
 0x1e0   :  { %2378 = vmatprep.mubr.f32.mxu0 %v8800_v11  ;;  %2430 = vmatpush1.msra.mxu0 %v185_v54 }
 0x1e1   :  { %2266 = vmatmul.mubr.f32.gmra.mxu1 %v7843_v22  ;;  %2431 = vmatprep.subr.mxu0 %v170_v35  ;;  %v7877_v35 = vld [vmem:[#allocation4 + $0x38] sm:$0xff] }
 0x1e2   :  { %6421 = vmatmul.mubr.msk.f32.gmra.mxu0 %vm747_vm1, %v7624_v51  ;;  %2271 = vmatprep.mubr.f32.mxu1 %v7853_v24  ;;  %v634_v51 = vld [vmem:[#allocation6 + $0xf78] sm:$0xff] }
 0x1e3   :  { %2432 = vmatpush1.msra.mxu0 %v169_v2  ;;  %2384 = vmatprep.mubr.f32.mxu0 %v8800_v11  ;;  %v618_v2 = vld [vmem:[#allocation6 + $0xef8] sm:$0xff] }
 0x1e4   :  { %2433 = vmatprep.subr.mxu0 %v154_v38  ;;  %2758 = vadd.xlane.f32.xlu1 %v2751_v5  ;;  %v1678_v38 = vpop.f32.mrf.mxu1  ;;  %v4167_v5 = vrot.slane %v1455_v62, 1 }
 0x1e5   :  { %v6735_v61 = vpop.eup %6734  ;;  %2434 = vmatpush1.msra.mxu0 %v153_v9  ;;  %2272 = vmatmul.mubr.f32.gmra.mxu1 %v7858_v55  ;;  %v7892_v9 = vld [vmem:[#allocation4 + $0x30] sm:$0xff] }
 0x1e6   :  { %v7867_v40 = vmul.f32 %v6735_v61, %v7704_v56  ;;  %2435 = vmatprep.subr.mxu0 %v650_v1  ;;  %6422 = vmatmul.mubr.msk.f32.gmra.mxu0 %vm747_vm1, %v7650_v48  ;;  %v7872_v16 = vmul.f32 %v6735_v61, %v7697_v12  ;;  %v7875_v54 = vmul.f32 %v6735_v61, %v7694_v46  ;;  %v7886_v48 = vmax.f32 %v2729_v59, 0.0  ;;  %v617_v46 = vld [vmem:[#allocation6 + $0xef0] sm:$0xff]  ;;  %v586_v59 = vld [vmem:[#allocation6 + $0xdf8] sm:$0xff] }
 0x1e7   :  { %2436 = vmatpush2.msra.mxu0 %v649_v47  ;;  %2277 = vmatprep.mubr.f32.mxu1 %v7877_v35  ;;  %v7881_v56 = vmul.f32 %v6735_v61, %v7691_v37  ;;  %v7888_v12 = vmax.f32 %v2728_v60, 0.0  ;;  %v602_v37 = vld [vmem:[#allocation6 + $0xe78] sm:$0xff]  ;;  %v4168_v1 = vrot.slane %v1461_v49, 1  ;;  %v7897_v47 = vld [vmem:[#allocation4 + $0x50] sm:$0xff] }
 0x1e8   :  { %8806 = vst [vmem:[#allocation19_spill] sm:$0xff] %v7875_v54  ;;  %2437 = vmatprep.subr.mxu0 %v634_v51  ;;  %2390 = vmatprep.mubr.f32.mxu0 %v8800_v11  ;;  %v2749_v44 = vmul.f32 %v7886_v48, %v7886_v48  ;;  %v538_v54 = vld [vmem:[#allocation6 + $0xc78] sm:$0xff] }
 0x1e9   :  { %8807 = vst [vmem:[#allocation20_spill] sm:$0xff] %v7881_v56  ;;  %2438 = vmatpush2.msra.mxu0 %v633_v45  ;;  %2756 = vadd.xlane.f32.xlu0 %v2750_v0  ;;  %v2748_v61 = vmul.f32 %v7888_v12, %v7888_v12  ;;  %v585_v0 = vld [vmem:[#allocation6 + $0xdf0] sm:$0xff]  ;;  %v570_v45 = vld [vmem:[#allocation6 + $0xd78] sm:$0xff] }
 0x1ea   :  { %2439 = vmatprep.subr.mxu0 %v618_v2  ;;  %2278 = vmatmul.mubr.f32.gmra.mxu1 %v7892_v9  ;;  %v1565_v34 = vpop.f32.mrf.mxu0 }
 0x1eb   :  { %6423 = vmatmul.mubr.msk.f32.gmra.mxu0 %vm747_vm1, %v7662_v33  ;;  %2283 = vmatprep.mubr.f32.mxu1 %v7897_v47  ;;  %v1679_v50 = vadd.f32 %v1678_v38, %v1565_v34  ;;  %v1680_v33 = vpop.f32.mrf.mxu1  ;;  %v7906_v38 = vld [vmem:[#allocation4 + $0x48] sm:$0xff] }
 0x1ec   :  { %2440 = vmatpush2.msra.mxu0 %v617_v46  ;;  %2396 = vmatprep.mubr.f32.mxu0 %v8800_v11  ;;  %v1567_v51 = vpop.f32.mrf.mxu0  ;;  %v4169_v46 = vsel %vm3364_vm2, %v4167_v5, %v4168_v1 }
 0x1ed   :  { %2441 = vmatprep.subr.mxu0 %v602_v37  ;;  %2754 = vadd.xlane.f32.xlu1 %v2749_v44  ;;  %v1681_v60 = vadd.f32 %v1680_v33, %v1567_v51  ;;  %v569_v37 = vld [vmem:[#allocation6 + $0xd70] sm:$0xff]  ;;  %v4188_v44 = vadd.f32 %v4168_v1, %v7679_v20  ;;  %v4203_v33 = vrot.slane %v1679_v50, 2  ;;  %v4187_v56 = vadd.f32 %v4169_v46, %v7666_v30  ;;  %v522_v50 = vld [vmem:[#allocation6 + $0xbf8] sm:$0xff] }
 0x1ee   :  { %2442 = vmatpush2.msra.mxu0 %v601_v6  ;;  %2752 = vadd.xlane.f32.xlu0 %v2748_v61  ;;  %v1571_v2 = vpop.f32.mrf.mxu0  ;;  %v554_v6 = vld [vmem:[#allocation6 + $0xcf8] sm:$0xff]  ;;  %v553_v61 = vld [vmem:[#allocation6 + $0xcf0] sm:$0xff] }
 0x1ef   :  { %2443 = vmatprep.subr.mxu0 %v586_v59  ;;  %v1684_v49 = vpop.f32.mrf.mxu1  ;;  %2284 = vmatmul.mubr.f32.gmra.mxu1 %v7906_v38 }
 0x1f0   :  { %6424 = vmatmul.mubr.msk.f32.gmra.mxu0 %vm747_vm1, %v7675_v43  ;;  %v1685_v62 = vadd.f32 %v1684_v49, %v1571_v2  ;;  %2580 = vmatprep.mubr.f32.mxu1 %v8800_v11  ;;  %v1573_v34 = vpop.f32.mrf.mxu0  ;;  %v537_v2 = vld [vmem:[#allocation6 + $0xc70] sm:$0xff]  ;;  %v4240_v49 = vrot.slane %v1681_v60, 3 }
 0x1f1   :  { %2444 = vmatpush2.msra.mxu0 %v585_v0  ;;  %v1686_v59 = vpop.f32.mrf.mxu1  ;;  %2467 = vmatprep.mubr.f32.mxu0 %v7737_v18 }
 0x1f2   :  { %2445 = vmatprep.subr.mxu0 %v570_v45  ;;  %v4204_v51 = vrot.slane %v1685_v62, 2  ;;  %v1687_v5 = vadd.f32 %v1686_v59, %v1573_v34  ;;  %v521_v62 = vld [vmem:[#allocation6 + $0xbf0] sm:$0xff]  ;;  %v506_v34 = vld [vmem:[#allocation6 + $0xb78] sm:$0xff] }
 0x1f3   :  { %2446 = vmatpush2.msra.mxu0 %v569_v37  ;;  %v1577_v0 = vpop.f32.mrf.mxu0  ;;  %6427 = vmatmul.mubr.msk.f32.vlgmr.msra.gmra.mxu1 %vm747_vm1, %v7699_v21  ;;  %v1690_v18 = vpop.f32.mrf.mxu1 }
 0x1f4   :  { %2447 = vmatprep.subr.mxu0 %v554_v6  ;;  %v4205_v20 = vsel %vm3401_vm3, %v4203_v33, %v4204_v51  ;;  %v4224_v1 = vadd.f32 %v4204_v51, %v4188_v44  ;;  %v4241_v45 = vrot.slane %v1687_v5, 3  ;;  %6546 = vmatpush3.xpose.msra.mxu1 %v7808_v26  ;;  %v1691_v46 = vadd.f32 %v1690_v18, %v1577_v0  ;;  %v490_v51 = vld [vmem:[#allocation6 + $0xaf8] sm:$0xff] }
 0x1f5   :  { %2448 = vmatpush2.msra.mxu0 %v553_v61  ;;  %v4223_v30 = vadd.f32 %v4205_v20, %v4187_v56  ;;  %v1579_v37 = vpop.f32.mrf.mxu0  ;;  %6547 = vmatprep.subr.mxu1 %v7755_v23  ;;  %v1692_v60 = vpop.f32.mrf.mxu1  ;;  %v6860_v56 = vld [vmem:[#allocation2 + $0x28] sm:$0xff] }
 0x1f6   :  { %2449 = vmatprep.subr.mxu0 %v538_v54  ;;  %v4242_v21 = vsel %vm4239_vm4, %v4240_v49, %v4241_v45  ;;  %v7921_v6 = vadd.f32 %v4241_v45, %v4224_v1  ;;  %2586 = vmatprep.mubr.f32.mxu1 %v8800_v11  ;;  %v1693_v44 = vadd.f32 %v1692_v60, %v1579_v37  ;;  %v505_v54 = vld [vmem:[#allocation6 + $0xb70] sm:$0xff]  ;;  %v4206_v5 = vrot.slane %v1691_v46, 2  ;;  %v474_v1 = vld [vmem:[#allocation6 + $0xa78] sm:$0xff]  ;;  %v6861_v37 = vld [vmem:[#allocation2 + $0x40] sm:$0xff] }
 0x1f7   :  { %2450 = vmatpush2.msra.mxu0 %v537_v2  ;;  %v7924_v59 = vadd.f32 %v4242_v21, %v4223_v30  ;;  %v1583_v61 = vpop.f32.mrf.mxu0  ;;  %6428 = vmatmul.mubr.msk.f32.gmra.mxu1 %vm747_vm1, %v6860_v56  ;;  %v489_v49 = vld [vmem:[#allocation6 + $0xaf0] sm:$0xff]  ;;  %v458_v21 = vld [vmem:[#allocation6 + $0x9f8] sm:$0xff] }
 0x1f8   :  { %2451 = vmatprep.subr.mxu0 %v522_v50  ;;  %v1696_v33 = vpop.f32.mrf.mxu1  ;;  %6548 = vmatpush3.xpose.msra.mxu1 %v7755_v23  ;;  %v4243_v45 = vrot.slane %v1693_v44, 3  ;;  %v473_v46 = vld [vmem:[#allocation6 + $0xa70] sm:$0xff] }
 0x1f9   :  { %2452 = vmatpush2.msra.mxu0 %v521_v62  ;;  %v1697_v0 = vadd.f32 %v1696_v33, %v1583_v61  ;;  %v1585_v2 = vpop.f32.mrf.mxu0  ;;  %6552 = vmatprep.subr.mxu1 %v7801_v52  ;;  %v3466_v33 = vmul.f32 %v7762_v13, %v7622_v27  ;;  %v426_v27 = vld [vmem:[#allocation6 + $0x8f8] sm:$0xff] }
 0x1fa   :  { %2453 = vmatprep.subr.mxu0 %v506_v34  ;;  %v1698_v20 = vpop.f32.mrf.mxu1  ;;  %2592 = vmatprep.mubr.f32.mxu1 %v8800_v11 }
 0x1fb   :  { %2454 = vmatpush2.msra.mxu0 %v505_v54  ;;  %v4207_v18 = vrot.slane %v1697_v0, 2  ;;  %v1699_v50 = vadd.f32 %v1698_v20, %v1585_v2  ;;  %v1589_v30 = vpop.f32.mrf.mxu0  ;;  %6429 = vmatmul.mubr.msk.f32.gmra.mxu1 %vm747_vm1, %v6861_v37  ;;  %v457_v54 = vld [vmem:[#allocation6 + $0x9f0] sm:$0xff]  ;;  %v442_v2 = vld [vmem:[#allocation6 + $0x978] sm:$0xff] }
 0x1fc   :  { %2455 = vmatprep.subr.mxu0 %v490_v51  ;;  %v1702_v62 = vpop.f32.mrf.mxu1  ;;  %2598 = vmatprep.mubr.f32.mxu1 %v8800_v11 }
 0x1fd   :  { %2456 = vmatpush2.msra.mxu0 %v489_v49  ;;  %v4208_v60 = vsel %vm3401_vm3, %v4206_v5, %v4207_v18  ;;  %v4226_v34 = vadd.f32 %v4207_v18, %v7729_v57  ;;  %v4244_v61 = vrot.slane %v1699_v50, 3  ;;  %v1703_v56 = vadd.f32 %v1702_v62, %v1589_v30  ;;  %v1591_v44 = vpop.f32.mrf.mxu0  ;;  %v6862_v57 = vld [vmem:[#allocation2 + $0x58] sm:$0xff] }
 0x1fe   :  { %2457 = vmatprep.subr.mxu0 %v474_v1  ;;  %v4225_v51 = vadd.f32 %v4208_v60, %v7733_v31  ;;  %v1704_v0 = vpop.f32.mrf.mxu1  ;;  %v441_v1 = vld [vmem:[#allocation6 + $0x970] sm:$0xff] }
 0x1ff   :  { %2458 = vmatpush2.msra.mxu0 %v473_v46  ;;  %v4245_v49 = vsel %vm4239_vm4, %v4243_v45, %v4244_v61  ;;  %v7938_v20 = vadd.f32 %v4244_v61, %v4226_v34  ;;  %v1705_v5 = vadd.f32 %v1704_v0, %v1591_v44  ;;  %v1595_v37 = vpop.f32.mrf.mxu0  ;;  %6430 = vmatmul.mubr.msk.f32.gmra.mxu1 %vm747_vm1, %v6862_v57  ;;  %v4209_v31 = vrot.slane %v1703_v56, 2  ;;  %v425_v45 = vld [vmem:[#allocation6 + $0x8f0] sm:$0xff] }
 0x200   :  { %2459 = vmatprep.subr.mxu0 %v458_v21  ;;  %v7941_v18 = vadd.f32 %v4245_v49, %v4225_v51  ;;  %v1708_v50 = vpop.f32.mrf.mxu1  ;;  %2604 = vmatprep.mubr.f32.mxu1 %v8800_v11  ;;  %v3470_v46 = vmul.f32 %v7710_v53, %v3466_v33  ;;  %v410_v21 = vld [vmem:[#allocation6 + $0x878] sm:$0xff]  ;;  %v6863_v44 = vld [vmem:[#allocation4 + $0x10] sm:$0xff] }
 0x201   :  { %2460 = vmatpush2.msra.mxu0 %v457_v54  ;;  %v1709_v13 = vadd.f32 %v1708_v50, %v1595_v37  ;;  %v1597_v30 = vpop.f32.mrf.mxu0  ;;  %v4246_v60 = vrot.slane %v1705_v5, 3  ;;  %v409_v54 = vld [vmem:[#allocation6 + $0x870] sm:$0xff] }
 0x202   :  { %2461 = vmatprep.subr.mxu0 %v442_v2  ;;  %v1710_v62 = vpop.f32.mrf.mxu1  ;;  %v3474_v2 = vadd.f32 %v7721_v32, %v3470_v46 }
 0x203   :  { %2462 = vmatpush2.msra.mxu0 %v441_v1  ;;  %v4210_v34 = vrot.slane %v1709_v13, 2  ;;  %v1711_v61 = vadd.f32 %v1710_v62, %v1597_v30  ;;  %6431 = vmatmul.mubr.msk.f32.gmra.mxu1 %vm747_vm1, %v6863_v44 }
 0x204   :  { %2463 = vmatprep.subr.mxu0 %v426_v27  ;;  %2610 = vmatprep.mubr.f32.mxu1 %v8800_v11  ;;  %v1601_v53 = vpop.f32.mrf.mxu0  ;;  %v7962_v32 = vmax.f32 %v3474_v2, 0.0 }
 0x205   :  { %2464 = vmatpush2.msra.mxu0 %v425_v45  ;;  %v4211_v56 = vsel %vm3401_vm3, %v4209_v31, %v4210_v34  ;;  %v4228_v51 = vadd.f32 %v4210_v34, %v7770_v58  ;;  %v4247_v0 = vrot.slane %v1711_v61, 3  ;;  %v1714_v33 = vpop.f32.mrf.mxu1  ;;  %v6864_v31 = vld [vmem:[#allocation4 + $0x28] sm:$0xff]  ;;  %v6865_v45 = vld [vmem:[#allocation4 + $0x40] sm:$0xff] }
 0x206   :  { %2465 = vmatprep.subr.mxu0 %v410_v21  ;;  %v4227_v49 = vadd.f32 %v4211_v56, %v7783_v10  ;;  %v1715_v5 = vadd.f32 %v1714_v33, %v1601_v53  ;;  %v1603_v1 = vpop.f32.mrf.mxu0 }
 0x207   :  { %2466 = vmatpush2.msra.mxu0 %v409_v54  ;;  %v4248_v37 = vsel %vm4239_vm4, %v4246_v60, %v4247_v0  ;;  %v7952_v57 = vadd.f32 %v4247_v0, %v4228_v51  ;;  %v1716_v50 = vpop.f32.mrf.mxu1  ;;  %6432 = vmatmul.mubr.msk.f32.gmra.mxu1 %vm747_vm1, %v6864_v31 }
 0x208   :  { %2468 = vmatmul.mubr.f32.vlgmr.msra.gmra.mxu0 %v7741_v3  ;;  %6573 = vmatprep.subr.mxu0 %v8800_v11  ;;  %v7956_v58 = vadd.f32 %v4248_v37, %v4227_v49  ;;  %v1717_v27 = vadd.f32 %v1716_v50, %v1603_v1  ;;  %v4212_v13 = vrot.slane %v1715_v5, 2 }
 0x209   :  { %6574 = vmatpush3.msra.mxu0 %v7886_v48  ;;  %2473 = vmatprep.mubr.f32.mxu0 %v7751_v63 }
 0x20a   :  { %6575 = vmatprep.subr.mxu0 %v8800_v11  ;;  %2616 = vmatprep.mubr.f32.mxu1 %v8800_v11  ;;  %v1607_v3 = vpop.f32.mrf.mxu0  ;;  %v4249_v62 = vrot.slane %v1717_v27, 3 }
 0x20b   :  { %6576 = vmatpush3.msra.mxu0 %v7888_v12  ;;  %v1720_v10 = vpop.f32.mrf.mxu1  ;;  %6433 = vmatmul.mubr.msk.f32.gmra.mxu1 %vm747_vm1, %v6865_v45 }
 0x20c   :  { %2474 = vmatmul.mubr.f32.gmra.mxu0 %v7764_v39  ;;  %6587 = vmatprep.subr.mxu0 %v7962_v32  ;;  %v1721_v30 = vadd.f32 %v1720_v10, %v1607_v3  ;;  %v1609_v63 = vpop.f32.mrf.mxu0 }
 0x20d   :  { %2479 = vmatprep.mubr.f32.mxu0 %v7788_v36  ;;  %v1722_v46 = vpop.f32.mrf.mxu1  ;;  %2622 = vmatprep.mubr.f32.mxu1 %v8800_v11 }
 0x20e   :  { %v4213_v21 = vrot.slane %v1721_v30, 2  ;;  %v1723_v60 = vadd.f32 %v1722_v46, %v1609_v63 }
 0x20f   :  { %6434 = vmatmul.mubr.msk.f32.gmra.mxu1 %vm747_vm1, %v7675_v43 }
 0x210   :  { %2480 = vmatmul.mubr.f32.gmra.mxu0 %v7803_v42  ;;  %v4214_v39 = vsel %vm3401_vm3, %v4212_v13, %v4213_v21  ;;  %v4230_v34 = vadd.f32 %v4213_v21, %v7818_v7  ;;  %v4250_v61 = vrot.slane %v1723_v60, 3  ;;  %6549 = vmatprep.mubr.f32.mxu1 %v7888_v12  ;;  %v1904_v43 = vpop.f32.mrf.mxu0 }
 0x211   :  { %2485 = vmatprep.mubr.f32.mxu0 %v7812_v28  ;;  %v4229_v36 = vadd.f32 %v4214_v39, %v7824_v19 }
 0x212   :  { %v4251_v44 = vsel %vm4239_vm4, %v4249_v62, %v4250_v61  ;;  %v7980_v54 = vadd.f32 %v4250_v61, %v4230_v34  ;;  %v1906_v28 = vpop.f32.mrf.mxu0 }
 0x213   :  { %v7982_v56 = vadd.f32 %v4251_v44, %v4229_v36  ;;  %6550 = vmatmul.mubr.f32.vlgmr.msra.gmra.mxu1 %v7886_v48 }
 0x214   :  { %2486 = vmatmul.mubr.f32.gmra.mxu0 %v7828_v14  ;;  %6553 = vmatpush3.xpose.msra.mxu1 %v7801_v52 }
 0x215   :  { %2491 = vmatprep.mubr.f32.mxu0 %v7838_v25  ;;  %6556 = vmatprep.mubr.f32.mxu1 %v7848_v15 }
 0x216   :  { %6554 = vmatprep.subr.mxu1 %v7748_v41 }
 0x218   :  { %2492 = vmatmul.mubr.f32.gmra.mxu0 %v7843_v22  ;;  %6555 = vmatpush3.xpose.msra.mxu1 %v7748_v41 }
 0x219   :  { %2497 = vmatprep.mubr.f32.mxu0 %v7853_v24  ;;  %6559 = vmatprep.subr.mxu1 %v8800_v11 }
 0x21b   :  { %6557 = vmatmul.mubr.f32.vlgmr.msra.gmra.mxu1 %v7846_v8 }
 0x21c   :  { %2498 = vmatmul.mubr.f32.gmra.mxu0 %v7858_v55  ;;  %6560 = vmatpush3.msra.mxu1 %v7808_v26 }
 0x21d   :  { %2503 = vmatprep.mubr.f32.mxu0 %v7877_v35  ;;  %v1791_v42 = vpop.f32.mrf.mxu1  ;;  %6561 = vmatprep.subr.mxu1 %v8800_v11 }
 0x21e   :  { %v1905_v7 = vadd.f32 %v1904_v43, %v1791_v42  ;;  %6562 = vmatpush3.msra.mxu1 %v7755_v23  ;;  %6563 = vmatprep.mubr.msk.f32.mxu1 %vm7030_vm5, %v8800_v11 }
 0x21f   :  { %v1793_v19 = vpop.f32.mrf.mxu1  ;;  %6566 = vmatprep.subr.mxu1 %v8800_v11 }
 0x220   :  { %2504 = vmatmul.mubr.f32.gmra.mxu0 %v7892_v9  ;;  %v8001_v14 = vadd.f32 %v1906_v28, %v1793_v19  ;;  %v4276_v35 = vrot.slane %v1905_v7, 4 }
 0x221   :  { %2509 = vmatprep.mubr.f32.mxu0 %v7897_v47  ;;  %v1797_v25 = vpop.f32.mrf.mxu1 }
 0x222   :  { %v1910_v22 = vpop.f32.mrf.mxu0 }
 0x223   :  { %v1911_v24 = vadd.f32 %v1910_v22, %v1797_v25  ;;  %v1799_v26 = vpop.f32.mrf.mxu1 }
 0x224   :  { %2510 = vmatmul.mubr.f32.gmra.mxu0 %v7906_v38  ;;  %v1912_v55 = vpop.f32.mrf.mxu0 }
 0x225   :  { %v4277_v48 = vrot.slane %v1911_v24, 4  ;;  %v8006_v12 = vadd.f32 %v1912_v55, %v1799_v26  ;;  %6577 = vmatprep.mubr.msk.f32.mxu0 %vm7030_vm5, %v8800_v11 }
 0x226   :  { %v1803_v51 = vpop.f32.mrf.mxu1 }
 0x227   :  { %v4278_v23 = vsel %vm772_vm0, %v4276_v35, %v4277_v48  ;;  %v8010_v9 = vadd.f32 %v4277_v48, %v7921_v6  ;;  %v1916_v47 = vpop.f32.mrf.mxu0 }
 0x228   :  { %v8013_v0 = vadd.f32 %v4278_v23, %v7924_v59  ;;  %v1917_v53 = vadd.f32 %v1916_v47, %v1803_v51  ;;  %v1805_v33 = vpop.f32.mrf.mxu1 }
 0x229   :  { %v4304_v38 = vsel %vm772_vm0, %v8010_v9, 0.0  ;;  %v1918_v2 = vpop.f32.mrf.mxu0 }
 0x22a   :  { %v4305_v49 = vadd.f32 %v4304_v38, %v8013_v0  ;;  %v8018_v5 = vadd.f32 %v1918_v2, %v1805_v33  ;;  %v1809_v37 = vpop.f32.mrf.mxu1  ;;  %v4279_v31 = vrot.slane %v1917_v53, 4 }
 0x22b   :  { %v1922_v1 = vpop.f32.mrf.mxu0 }
 0x22c   :  { %v1923_v50 = vadd.f32 %v1922_v1, %v1809_v37  ;;  %v1811_v6 = vpop.f32.mrf.mxu1 }
 0x22d   :  { %v1924_v27 = vpop.f32.mrf.mxu0 }
 0x22e   :  { %v4280_v3 = vrot.slane %v1923_v50, 4  ;;  %v8020_v10 = vadd.f32 %v1924_v27, %v1811_v6 }
 0x22f   :  { %v1815_v59 = vpop.f32.mrf.mxu1 }
 0x230   :  { %v1928_v13 = vpop.f32.mrf.mxu0  ;;  %v4281_v30 = vsel %vm772_vm0, %v4279_v31, %v4280_v3  ;;  %v4299_v45 = vadd.f32 %v4280_v3, %v7938_v20 }
 0x231   :  { %v1929_v63 = vadd.f32 %v1928_v13, %v1815_v59  ;;  %v1817_v46 = vpop.f32.mrf.mxu1  ;;  %v4298_v62 = vadd.f32 %v4281_v30, %v7941_v18 }
 0x232   :  { %v1930_v21 = vpop.f32.mrf.mxu0  ;;  %v4307_v34 = vsel %vm772_vm0, %v4299_v45, 0.0 }
 0x233   :  { %v8025_v60 = vadd.f32 %v1930_v21, %v1817_v46  ;;  %v4306_v39 = vadd.f32 %v4305_v49, %v4298_v62  ;;  %v4282_v19 = vrot.slane %v1929_v63, 4 }
 0x234   :  { %v1821_v61 = vpop.f32.mrf.mxu1 }
 0x235   :  { %v1934_v36 = vpop.f32.mrf.mxu0  ;;  %v4308_v44 = vadd.f32 %v4307_v34, %v4306_v39 }
 0x236   :  { %v1935_v43 = vadd.f32 %v1934_v36, %v1821_v61  ;;  %v1823_v42 = vpop.f32.mrf.mxu1 }
 0x237   :  { %v1936_v28 = vpop.f32.mrf.mxu0  ;;  %v4309_v7 = vrot.slane %v4308_v44, 4 }
 0x238   :  { %v4283_v25 = vrot.slane %v1935_v43, 4  ;;  %v8028_v20 = vadd.f32 %v1936_v28, %v1823_v42 }
 0x239   :  { %v4310_v22 = vadd.f32 %v4309_v7, %v4308_v44  ;;  %v1827_v26 = vpop.f32.mrf.mxu1 }
 0x23a   :  { %v4284_v18 = vsel %vm772_vm0, %v4282_v19, %v4283_v25  ;;  %v4301_v24 = vadd.f32 %v4283_v25, %v7952_v57  ;;  %v1940_v55 = vpop.f32.mrf.mxu0 }
 0x23b   :  { %v4300_v35 = vadd.f32 %v4284_v18, %v7956_v58  ;;  %v1941_v48 = vadd.f32 %v1940_v55, %v1827_v26  ;;  %v4311_v23 = vrot.slane %v4310_v22, 2  ;;  %v1829_v47 = vpop.f32.mrf.mxu1 }
 0x23c   :  { %v4355_v51 = vsel %vm772_vm0, %v4301_v24, 0.0  ;;  %v1942_v53 = vpop.f32.mrf.mxu0 }
 0x23d   :  { %v4356_v38 = vadd.f32 %v4355_v51, %v4300_v35  ;;  %v8034_v33 = vadd.f32 %v1942_v53, %v1829_v47  ;;  %v4312_v2 = vadd.f32 %v4311_v23, %v4310_v22  ;;  %v1833_v49 = vpop.f32.mrf.mxu1  ;;  %v4285_v31 = vrot.slane %v1941_v48, 4 }
 0x23e   :  { %v1946_v37 = vpop.f32.mrf.mxu0 }
 0x23f   :  { %v4313_v1 = vrot.slane %v4312_v2, 1  ;;  %v1947_v50 = vadd.f32 %v1946_v37, %v1833_v49  ;;  %v1835_v6 = vpop.f32.mrf.mxu1 }
 0x240   :  { %v1948_v57 = vpop.f32.mrf.mxu0 }
 0x241   :  { %v4314_v27 = vadd.f32 %v4313_v1, %v4312_v2  ;;  %v4286_v3 = vrot.slane %v1947_v50, 4  ;;  %v8036_v58 = vadd.f32 %v1948_v57, %v1835_v6 }
 0x242   :  { %v2130_v51 = vpop.f32.mrf.mxu1 }
 0x243   :  { %v4316_v59 = vmul.f32 0.041666668, %v4314_v27  ;;  %v4287_v13 = vsel %vm772_vm0, %v4285_v31, %v4286_v3  ;;  %v4303_v30 = vadd.f32 %v4286_v3, %v7980_v54 }
 0x244   :  { %v4302_v63 = vadd.f32 %v4287_v13, %v7982_v56  ;;  %v2132_v6 = vpop.f32.mrf.mxu1 }
 0x245   :  { %v8042_v46 = vsub.f32 %v8013_v0, %v4316_v59  ;;  %v8045_v21 = vsub.f32 %v8010_v9, %v4316_v59  ;;  %v8047_v39 = vsub.f32 %v4298_v62, %v4316_v59  ;;  %v8049_v34 = vsub.f32 %v4299_v45, %v4316_v59 }
 0x246   :  { %v4357_v61 = vadd.f32 %v4356_v38, %v4302_v63  ;;  %v4358_v54 = vsel %vm772_vm0, %v4303_v30, 0.0 }
 0x247   :  { %v4321_v36 = vmul.f32 %v8042_v46, %v8042_v46  ;;  %v4322_v44 = vmul.f32 %v8045_v21, %v8045_v21  ;;  %v4324_v0 = vmul.f32 %v8049_v34, %v8049_v34  ;;  %v4323_v62 = vmul.f32 %v8047_v39, %v8047_v39 }
 0x248   :  { %v4359_v56 = vadd.f32 %v4358_v54, %v4357_v61 }
 0x249   :  { %v4325_v9 = vsel %vm772_vm0, %v4322_v44, 0.0  ;;  %v4328_v7 = vsel %vm772_vm0, %v4324_v0, 0.0 }
 0x24a   :  { %v4326_v45 = vadd.f32 %v4325_v9, %v4321_v36  ;;  %v4360_v43 = vrot.slane %v4359_v56, 4 }
 0x24c   :  { %v4327_v42 = vadd.f32 %v4326_v45, %v4323_v62  ;;  %v4361_v28 = vadd.f32 %v4360_v43, %v4359_v56 }
 0x24e   :  { %v4329_v19 = vadd.f32 %v4328_v7, %v4327_v42  ;;  %v4362_v25 = vrot.slane %v4361_v28, 2 }
 0x250   :  { %v4330_v22 = vrot.slane %v4329_v19, 4  ;;  %v4363_v18 = vadd.f32 %v4362_v25, %v4361_v28 }
 0x252   :  { %v4331_v26 = vadd.f32 %v4330_v22, %v4329_v19  ;;  %v4364_v55 = vrot.slane %v4363_v18, 1 }
 0x254   :  { %v4332_v48 = vrot.slane %v4331_v26, 2  ;;  %v4365_v23 = vadd.f32 %v4364_v55, %v4363_v18 }
 0x256   :  { %v4333_v47 = vadd.f32 %v4332_v48, %v4331_v26  ;;  %v4366_v53 = vmul.f32 0.041666668, %v4365_v23  ;;  %v2017_v38 = vpop.f32.mrf.mxu0 }
 0x257   :  { %v2131_v2 = vadd.f32 %v2130_v51, %v2017_v38 }
 0x258   :  { %v4334_v49 = vrot.slane %v4333_v47, 1  ;;  %v8062_v37 = vsub.f32 %v4300_v35, %v4366_v53  ;;  %v8064_v1 = vsub.f32 %v4301_v24, %v4366_v53  ;;  %v8066_v50 = vsub.f32 %v4302_v63, %v4366_v53  ;;  %v2019_v57 = vpop.f32.mrf.mxu0 }
 0x259   :  { %v8068_v27 = vsub.f32 %v4303_v30, %v4366_v53  ;;  %v2133_v31 = vadd.f32 %v2132_v6, %v2019_v57  ;;  %v5041_v54 = vrot.slane %v2131_v2, 1 }
 0x25a   :  { %v4335_v3 = vadd.f32 %v4334_v49, %v4333_v47  ;;  %v4371_v59 = vmul.f32 %v8062_v37, %v8062_v37  ;;  %v4372_v13 = vmul.f32 %v8064_v1, %v8064_v1  ;;  %v2023_v61 = vpop.f32.mrf.mxu0  ;;  %v4373_v0 = vmul.f32 %v8066_v50, %v8066_v50 }
 0x25b   :  { %v2136_v36 = vpop.f32.mrf.mxu1  ;;  %v4374_v24 = vmul.f32 %v8068_v27, %v8068_v27  ;;  %v5077_v42 = vrot.slane %v2133_v31, 2 }
 0x25c   :  { %v2137_v35 = vadd.f32 %v2136_v36, %v2023_v61  ;;  %v4336_v63 = vmul.f32 0.041666668, %v4335_v3  ;;  %v4375_v44 = vsel %vm772_vm0, %v4372_v13, 0.0  ;;  %v2025_v30 = vpop.f32.mrf.mxu0 }
 0x25d   :  { %v2138_v56 = vpop.f32.mrf.mxu1  ;;  %v4376_v9 = vadd.f32 %v4375_v44, %v4371_v59  ;;  %v4378_v19 = vsel %vm772_vm0, %v4374_v24, 0.0 }
 0x25e   :  { %v5042_v62 = vrot.slane %v2137_v35, 1  ;;  %v2139_v45 = vadd.f32 %v2138_v56, %v2025_v30  ;;  %v4337_v43 = vadd.f32 1e-05, %v4336_v63 }
 0x25f   :  { %v2029_v28 = vpop.f32.mrf.mxu0  ;;  %v4377_v7 = vadd.f32 %v4376_v9, %v4373_v0  ;;  %v2142_v18 = vpop.f32.mrf.mxu1 }
 0x260   :  { %v5043_v25 = vsel %vm3364_vm2, %v5041_v54, %v5042_v62  ;;  %v5062_v22 = vadd.f32 %v5042_v62, %v8006_v12  ;;  %6736 = vrsqrt.f32 %v4337_v43  ;;  %v5078_v55 = vrot.slane %v2139_v45, 2 }
 0x261   :  { %v5061_v26 = vadd.f32 %v5043_v25, %v8001_v14  ;;  %v2143_v48 = vadd.f32 %v2142_v18, %v2029_v28  ;;  %v2031_v23 = vpop.f32.mrf.mxu0  ;;  %v4379_v51 = vadd.f32 %v4378_v19, %v4377_v7  ;;  %v2144_v47 = vpop.f32.mrf.mxu1 }
 0x262   :  { %v5079_v53 = vsel %vm3401_vm3, %v5077_v42, %v5078_v55  ;;  %v8084_v38 = vadd.f32 %v5078_v55, %v5062_v22  ;;  %v2145_v2 = vadd.f32 %v2144_v47, %v2031_v23 }
 0x263   :  { %v2035_v49 = vpop.f32.mrf.mxu0  ;;  %v4380_v6 = vrot.slane %v4379_v51, 4  ;;  %v8086_v57 = vadd.f32 %v5079_v53, %v5061_v26  ;;  %v5044_v12 = vrot.slane %v2143_v48, 1 }
 0x264   :  { %v2148_v31 = vpop.f32.mrf.mxu1  ;;  %v5080_v61 = vrot.slane %v2145_v2, 2 }
 0x265   :  { %v2149_v3 = vadd.f32 %v2148_v31, %v2035_v49  ;;  %v2037_v59 = vpop.f32.mrf.mxu0  ;;  %v4381_v13 = vadd.f32 %v4380_v6, %v4379_v51 }
 0x266   :  { %v2150_v14 = vpop.f32.mrf.mxu1 }
 0x267   :  { %v5045_v36 = vrot.slane %v2149_v3, 1  ;;  %v2151_v24 = vadd.f32 %v2150_v14, %v2037_v59  ;;  %v2041_v35 = vpop.f32.mrf.mxu0  ;;  %v4382_v63 = vrot.slane %v4381_v13, 2 }
 0x268   :  { %v2154_v44 = vpop.f32.mrf.mxu1 }
 0x269   :  { %v5046_v54 = vsel %vm3364_vm2, %v5044_v12, %v5045_v36  ;;  %v5064_v30 = vadd.f32 %v5045_v36, %v8020_v10  ;;  %v5081_v56 = vrot.slane %v2151_v24, 2  ;;  %v2043_v0 = vpop.f32.mrf.mxu0  ;;  %v4383_v9 = vadd.f32 %v4382_v63, %v4381_v13 }
 0x26a   :  { %v5063_v62 = vadd.f32 %v5046_v54, %v8018_v5  ;;  %v2155_v45 = vadd.f32 %v2154_v44, %v2041_v35  ;;  %v2156_v43 = vpop.f32.mrf.mxu1 }
 0x26b   :  { %v5082_v42 = vsel %vm3401_vm3, %v5080_v61, %v5081_v56  ;;  %v8092_v28 = vadd.f32 %v5081_v56, %v5064_v30  ;;  %v2157_v7 = vadd.f32 %v2156_v43, %v2043_v0  ;;  %v2047_v19 = vpop.f32.mrf.mxu0  ;;  %v4384_v25 = vrot.slane %v4383_v9, 1 }
 0x26c   :  { %v8094_v22 = vadd.f32 %v5082_v42, %v5063_v62  ;;  %v2160_v18 = vpop.f32.mrf.mxu1  ;;  %v5047_v26 = vrot.slane %v2155_v45, 1 }
 0x26d   :  { %v2161_v55 = vadd.f32 %v2160_v18, %v2047_v19  ;;  %v2049_v10 = vpop.f32.mrf.mxu0  ;;  %v6737_v48 = vpop.eup %6736  ;;  %v4385_v23 = vadd.f32 %v4384_v25, %v4383_v9  ;;  %v5083_v51 = vrot.slane %v2157_v7, 2 }
 0x26e   :  { %v2162_v47 = vpop.f32.mrf.mxu1  ;;  %v8097_v5 = vmul.f32 %v6737_v48, %v8047_v39  ;;  %v8100_v53 = vmul.f32 %v6737_v48, %v8049_v34  ;;  %v8103_v31 = vmul.f32 %v6737_v48, %v8045_v21  ;;  %v8106_v12 = vmul.f32 %v6737_v48, %v8042_v46 }
 0x26f   :  { %v5048_v2 = vrot.slane %v2161_v55, 1  ;;  %v2163_v49 = vadd.f32 %v2162_v47, %v2049_v10  ;;  %v4386_v6 = vmul.f32 0.041666668, %v4385_v23 }
 0x270   :  { %v2053_v14 = vpop.f32.mrf.mxu0 }
 0x271   :  { %v5049_v3 = vsel %vm3364_vm2, %v5047_v26, %v5048_v2  ;;  %v5066_v59 = vadd.f32 %v5048_v2, %v8028_v20  ;;  %v5084_v13 = vrot.slane %v2163_v49, 2  ;;  %v2166_v39 = vpop.f32.mrf.mxu1  ;;  %v4387_v61 = vadd.f32 1e-05, %v4386_v6 }
 0x272   :  { %v5065_v34 = vadd.f32 %v5049_v3, %v8025_v60  ;;  %v2167_v36 = vadd.f32 %v2166_v39, %v2053_v14  ;;  %v2055_v21 = vpop.f32.mrf.mxu0 }
 0x273   :  { %v5085_v24 = vsel %vm3401_vm3, %v5083_v51, %v5084_v13  ;;  %v8112_v35 = vadd.f32 %v5084_v13, %v5066_v59  ;;  %6738 = vrsqrt.f32 %v4387_v61  ;;  %v2168_v46 = vpop.f32.mrf.mxu1 }
 0x274   :  { %v8114_v63 = vadd.f32 %v5085_v24, %v5065_v34  ;;  %v2169_v44 = vadd.f32 %v2168_v46, %v2055_v21  ;;  %v5050_v20 = vrot.slane %v2167_v36, 1 }
 0x276   :  { %v2059_v54 = vpop.f32.mrf.mxu0  ;;  %v5086_v62 = vrot.slane %v2169_v44, 2 }
 0x277   :  { %v2172_v30 = vpop.f32.mrf.mxu1 }
 0x278   :  { %v2173_v56 = vadd.f32 %v2172_v30, %v2059_v54  ;;  %v2061_v0 = vpop.f32.mrf.mxu0 }
 0x279   :  { %v2174_v9 = vpop.f32.mrf.mxu1 }
 0x27a   :  { %v5051_v45 = vrot.slane %v2173_v56, 1  ;;  %v2175_v60 = vadd.f32 %v2174_v9, %v2061_v0 }
 0x27c   :  { %v5052_v43 = vsel %vm3364_vm2, %v5050_v20, %v5051_v45  ;;  %v5068_v42 = vadd.f32 %v5051_v45, %v8036_v58  ;;  %v5087_v7 = vrot.slane %v2175_v60, 2  ;;  %vm3017_vm2 = vcmask 130048  }
 0x27d   :  { %v5067_v19 = vadd.f32 %v5052_v43, %v8034_v33  ;;  %v2356_v33 = vpop.f32.mrf.mxu0 }
 0x27e   :  { %v5088_v25 = vsel %vm3401_vm3, %v5086_v62, %v5087_v7  ;;  %v8120_v18 = vadd.f32 %v5087_v7, %v5068_v42 }
 0x27f   :  { %v8122_v26 = vadd.f32 %v5088_v25, %v5067_v19  ;;  %v2358_v47 = vpop.f32.mrf.mxu0 }
 0x280   :  { %v6739_v55 = vpop.eup %6738 }
 0x281   :  { %v8125_v10 = vmul.f32 %v6739_v55, %v8068_v27  ;;  %v8128_v48 = vmul.f32 %v6739_v55, %v8066_v50  ;;  %v8131_v23 = vmul.f32 %v6739_v55, %v8064_v1  ;;  %v8134_v58 = vmul.f32 %v6739_v55, %v8062_v37 }
 0x283   :  { %8808 = vst [vmem:[#allocation17_spill] sm:$0xff] %v8128_v48  ;;  %8809 = vst [vmem:[#allocation21_spill] sm:$0xff] %v8134_v58 }
 0x289   :  { %v2243_v51 = vpop.f32.mrf.mxu1 }
 0x28a   :  { %v2357_v2 = vadd.f32 %v2356_v33, %v2243_v51 }
 0x28b   :  { %v2245_v49 = vpop.f32.mrf.mxu1 }
 0x28c   :  { %v2359_v6 = vadd.f32 %v2358_v47, %v2245_v49  ;;  %v5113_v39 = vrot.slane %v2357_v2, 3 }
 0x28e   :  { %v5149_v34 = vrot.slane %v2359_v6, 4 }
 0x28f   :  { %v2362_v3 = vpop.f32.mrf.mxu0  ;;  %v2249_v59 = vpop.f32.mrf.mxu1 }
 0x290   :  { %v2363_v13 = vadd.f32 %v2362_v3, %v2249_v59 }
 0x291   :  { %v2364_v27 = vpop.f32.mrf.mxu0  ;;  %v2251_v14 = vpop.f32.mrf.mxu1 }
 0x292   :  { %v5114_v50 = vrot.slane %v2363_v13, 3  ;;  %v2365_v61 = vadd.f32 %v2364_v27, %v2251_v14 }
 0x294   :  { %v5115_v1 = vsel %vm4239_vm4, %v5113_v39, %v5114_v50  ;;  %v5134_v37 = vadd.f32 %v5114_v50, %v8084_v38  ;;  %v5150_v36 = vrot.slane %v2365_v61, 4 }
 0x295   :  { %v5133_v24 = vadd.f32 %v5115_v1, %v8086_v57 }
 0x296   :  { %v2255_v21 = vpop.f32.mrf.mxu1  ;;  %v5151_v46 = vsel %vm772_vm0, %v5149_v34, %v5150_v36  ;;  %v8140_v44 = vadd.f32 %v5150_v36, %v5134_v37  ;;  %v2368_v54 = vpop.f32.mrf.mxu0 }
 0x297   :  { %v8142_v30 = vadd.f32 %v5151_v46, %v5133_v24  ;;  %v2369_v20 = vadd.f32 %v2368_v54, %v2255_v21 }
 0x298   :  { %v2257_v56 = vpop.f32.mrf.mxu1  ;;  %v2370_v0 = vpop.f32.mrf.mxu0 }
 0x299   :  { %v2371_v9 = vadd.f32 %v2370_v0, %v2257_v56  ;;  %v5116_v43 = vrot.slane %v2369_v20, 3 }
 0x29b   :  { %v5152_v25 = vrot.slane %v2371_v9, 4 }
 0x29d   :  { %v2261_v38 = vpop.f32.mrf.mxu1  ;;  %v2374_v57 = vpop.f32.mrf.mxu0 }
 0x29e   :  { %v2375_v62 = vadd.f32 %v2374_v57, %v2261_v38 }
 0x29f   :  { %v2263_v45 = vpop.f32.mrf.mxu1  ;;  %v2376_v60 = vpop.f32.mrf.mxu0 }
 0x2a0   :  { %v5117_v42 = vrot.slane %v2375_v62, 3  ;;  %v2377_v7 = vadd.f32 %v2376_v60, %v2263_v45 }
 0x2a1   :  { %v2267_v19 = vpop.f32.mrf.mxu1 }
 0x2a2   :  { %v2380_v55 = vpop.f32.mrf.mxu0  ;;  %v5118_v33 = vsel %vm4239_vm4, %v5116_v43, %v5117_v42  ;;  %v5136_v51 = vadd.f32 %v5117_v42, %v8092_v28  ;;  %v5153_v47 = vrot.slane %v2377_v7, 4 }
 0x2a3   :  { %v2381_v2 = vadd.f32 %v2380_v55, %v2267_v19  ;;  %v2269_v49 = vpop.f32.mrf.mxu1  ;;  %v5135_v6 = vadd.f32 %v5118_v33, %v8094_v22 }
 0x2a4   :  { %v2382_v3 = vpop.f32.mrf.mxu0  ;;  %v5154_v59 = vsel %vm772_vm0, %v5152_v25, %v5153_v47  ;;  %v8152_v13 = vadd.f32 %v5153_v47, %v5136_v51 }
 0x2a5   :  { %v2383_v27 = vadd.f32 %v2382_v3, %v2269_v49  ;;  %v2273_v14 = vpop.f32.mrf.mxu1  ;;  %v8154_v39 = vadd.f32 %v5154_v59, %v5135_v6  ;;  %v5119_v37 = vrot.slane %v2381_v2, 3 }
 0x2a6   :  { %v2386_v50 = vpop.f32.mrf.mxu0 }
 0x2a7   :  { %v2387_v61 = vadd.f32 %v2386_v50, %v2273_v14  ;;  %v2275_v34 = vpop.f32.mrf.mxu1  ;;  %v5155_v24 = vrot.slane %v2383_v27, 4 }
 0x2a8   :  { %v2388_v1 = vpop.f32.mrf.mxu0 }
 0x2a9   :  { %v5120_v28 = vrot.slane %v2387_v61, 3  ;;  %v2389_v36 = vadd.f32 %v2388_v1, %v2275_v34 }
 0x2aa   :  { %v2279_v54 = vpop.f32.mrf.mxu1 }
 0x2ab   :  { %v5121_v21 = vsel %vm4239_vm4, %v5119_v37, %v5120_v28  ;;  %v5138_v22 = vadd.f32 %v5120_v28, %v8112_v35  ;;  %v5156_v46 = vrot.slane %v2389_v36, 4  ;;  %v2392_v20 = vpop.f32.mrf.mxu0  ;;  %v2914_v28 = vlaneseq }
 0x2ac   :  { %v5137_v56 = vadd.f32 %v5121_v21, %v8114_v63  ;;  %v2393_v0 = vadd.f32 %v2392_v20, %v2279_v54  ;;  %v2281_v57 = vpop.f32.mrf.mxu1 }
 0x2ad   :  { %v5157_v9 = vsel %vm772_vm0, %v5155_v24, %v5156_v46  ;;  %v8160_v38 = vadd.f32 %v5156_v46, %v5138_v22  ;;  %v2394_v62 = vpop.f32.mrf.mxu0  ;;  %v2741_v24 = vpop.xlane.xlu1 %2740 }
 0x2ae   :  { %v8162_v45 = vadd.f32 %v5157_v9, %v5137_v56  ;;  %v2395_v60 = vadd.f32 %v2394_v62, %v2281_v57  ;;  %v5122_v25 = vrot.slane %v2393_v0, 3  ;;  %v8180_v9 = vshrl.u32 %v2914_v28, 7 }
 0x2af   :  { %v2285_v43 = vpop.f32.mrf.mxu1 }
 0x2b0   :  { %v2398_v42 = vpop.f32.mrf.mxu0  ;;  %v5158_v63 = vrot.slane %v2395_v60, 4  ;;  %8810 = vst [vmem:[#allocation18_spill] sm:$0xff] %v8180_v9 }
 0x2b1   :  { %v2399_v7 = vadd.f32 %v2398_v42, %v2285_v43  ;;  %v2287_v19 = vpop.f32.mrf.mxu1  ;;  %v2743_v20 = vpop.xlane.xlu1 %2742 }
 0x2b2   :  { %v2400_v35 = vpop.f32.mrf.mxu0 }
 0x2b3   :  { %v5123_v55 = vrot.slane %v2399_v7, 3  ;;  %v2401_v33 = vadd.f32 %v2400_v35, %v2287_v19  ;;  %v2582_v51 = vpop.f32.mrf.mxu1 }
 0x2b5   :  { %v5124_v47 = vsel %vm4239_vm4, %v5122_v25, %v5123_v55  ;;  %v5140_v2 = vadd.f32 %v5123_v55, %v8120_v18  ;;  %v5159_v49 = vrot.slane %v2401_v33, 4  ;;  %v2584_v3 = vpop.f32.mrf.mxu1  ;;  %v8174_v18 = vpop.xlane.xlu0 %2744  ;;  %vm2936_vm4 = vcmask 1041409  }
 0x2b6   :  { %v5139_v6 = vadd.f32 %v5124_v47, %v8122_v26  ;;  %v2915_v26 = vand.u32 127, %v2914_v28  ;;  %v8189_v19 = vpop.xlane.xlu1 %2758 }
 0x2b7   :  { %v5160_v59 = vsel %vm772_vm0, %v5158_v63, %v5159_v49  ;;  %v8168_v27 = vadd.f32 %v5159_v49, %v5140_v2  ;;  %v2588_v50 = vpop.f32.mrf.mxu1 }
 0x2b8   :  { %v8170_v14 = vadd.f32 %v5160_v59, %v5139_v6  ;;  %v2920_v46 = vadd.s32 4294967288, %v2915_v26  ;;  %v8194_v33 = vsub.s32 %v2915_v26, %v8180_v9 }
 0x2b9   :  { %v2590_v61 = vpop.f32.mrf.mxu1  ;;  %v8182_v62 = vpop.xlane.xlu0 %2746 }
 0x2ba   :  { %v8187_v42 = vsub.s32 %v2920_v46, %v8180_v9 }
 0x2bb   :  { %v2594_v34 = vpop.f32.mrf.mxu1 }
 0x2bc   :  { %v2924_v6 = vrot.slane %v2743_v20, %v8187_v42 }
 0x2bd   :  { %v2596_v1 = vpop.f32.mrf.mxu1 }
 0x2bf   :  { %v2600_v37 = vpop.f32.mrf.mxu1 }
 0x2c1   :  { %v2602_v36 = vpop.f32.mrf.mxu1 }
 0x2c3   :  { %v8172_v21 = vpop.f32.mrf.mxu1 }
 0x2c5   :  { %v8176_v22 = vpop.f32.mrf.mxu1 }
 0x2c7   :  { %v8178_v0 = vpop.f32.mrf.mxu1 }
 0x2c8   :  { %v2469_v54 = vpop.f32.mrf.mxu0 }
 0x2c9   :  { %v2583_v56 = vadd.f32 %v2582_v51, %v2469_v54  ;;  %v8184_v43 = vpop.f32.mrf.mxu1  ;;  %v2757_v51 = vpop.xlane.xlu0 %2756 }
 0x2ca   :  { %v2471_v57 = vpop.f32.mrf.mxu0 }
 0x2cb   :  { %v2585_v60 = vadd.f32 %v2584_v3, %v2471_v57  ;;  %v8191_v25 = vpop.f32.mrf.mxu1  ;;  %v5186_v63 = vrot.slane %v2583_v56, 5 }
 0x2cc   :  { %v2475_v7 = vpop.f32.mrf.mxu0 }
 0x2cd   :  { %v2589_v35 = vadd.f32 %v2588_v50, %v2475_v7  ;;  %v8196_v49 = vpop.f32.mrf.mxu1  ;;  %v5223_v3 = vrot.slane %v2585_v60, 6  ;;  %v2755_v7 = vpop.xlane.xlu1 %2754 }
 0x2ce   :  { %v2477_v55 = vpop.f32.mrf.mxu0 }
 0x2cf   :  { %v5187_v47 = vrot.slane %v2589_v35, 5  ;;  %v2591_v2 = vadd.f32 %v2590_v61, %v2477_v55  ;;  %v8201_v57 = vpop.f32.mrf.mxu1  ;;  %v2919_v61 = vrot.slane %v2741_v24, %v8194_v33 }
 0x2d0   :  { %v2481_v59 = vpop.f32.mrf.mxu0 }
 0x2d1   :  { %v5188_v50 = vsel %vm5185_vm6, %v5186_v63, %v5187_v47  ;;  %v5207_v28 = vadd.f32 %v5187_v47, %v8140_v44  ;;  %v5224_v46 = vrot.slane %v2591_v2, 6  ;;  %v2595_v54 = vadd.f32 %v2594_v34, %v2481_v59  ;;  %v8208_v55 = vpop.f32.mrf.mxu1  ;;  %v2753_v47 = vpop.xlane.xlu0 %2752 }
 0x2d2   :  { %v5206_v26 = vadd.f32 %v5188_v50, %v8142_v30  ;;  %v2483_v56 = vpop.f32.mrf.mxu0  ;;  %v2926_v34 = vsel %vm2925_vm8, %v2924_v6, %v2919_v61 }
 0x2d3   :  { %v5225_v20 = vsel %vm5222_vm7, %v5223_v3, %v5224_v46  ;;  %v8206_v60 = vadd.f32 %v5224_v46, %v5207_v28  ;;  %v2597_v35 = vadd.f32 %v2596_v1, %v2483_v56  ;;  %v6551_v59 = vpop.f32.mrf.mxu1  ;;  %v2958_v24 = vadd.f32 %v2926_v34, %v2755_v7 }
 0x2d4   :  { %v8210_v63 = vadd.f32 %v5225_v20, %v5206_v26  ;;  %v2487_v44 = vpop.f32.mrf.mxu0  ;;  %v2962_v3 = vmul.f32 2.0, %v6551_v59  ;;  %v2934_v1 = vrot.slane %v8182_v62, %v8187_v42  ;;  %v5189_v46 = vrot.slane %v2595_v54, 5 }
 0x2d5   :  { %v5251_v30 = vsel %vm5222_vm7, %v8206_v60, 0.0  ;;  %v2601_v2 = vadd.f32 %v2600_v37, %v2487_v44  ;;  %v2826_v20 = vpop.f32.mrf.mxu1  ;;  %v2957_v9 = vadd.f32 %v2926_v34, %v2753_v47  ;;  %v5226_v6 = vrot.slane %v2597_v35, 6 }
 0x2d6   :  { %v5252_v50 = vadd.f32 %v5251_v30, %v8210_v63  ;;  %v2489_v28 = vpop.f32.mrf.mxu0  ;;  %v2966_v61 = vsub.f32 %v2958_v24, %v2962_v3  ;;  %v2961_v58 = vmul.f32 2.0, %v2826_v20  ;;  %v2930_v59 = vrot.slane %v8174_v18, %v8194_v33 }
 0x2d7   :  { %v5190_v26 = vrot.slane %v2601_v2, 5  ;;  %v2603_v56 = vadd.f32 %v2602_v36, %v2489_v28 }
 0x2d8   :  { %v2493_v48 = vpop.f32.mrf.mxu0  ;;  %v2970_v54 = vmax.f32 %v2966_v61, 0.0  ;;  %v2965_v36 = vsub.f32 %v2957_v9, %v2961_v58  ;;  %v2935_v24 = vsel %vm2925_vm8, %v2934_v1, %v2930_v59 }
 0x2d9   :  { %v5191_v37 = vsel %vm5185_vm6, %v5189_v46, %v5190_v26  ;;  %v5209_v7 = vadd.f32 %v5190_v26, %v8152_v13  ;;  %v5227_v44 = vrot.slane %v2603_v56, 6  ;;  %v2607_v30 = vadd.f32 %v8172_v21, %v2493_v48 }
 0x2da   :  { %v5208_v62 = vadd.f32 %v5191_v37, %v8154_v39  ;;  %v2495_v2 = vpop.f32.mrf.mxu0  ;;  %v8229_v13 = vadd.f32 1e-06, %v2970_v54  ;;  %v2969_v48 = vmax.f32 %v2965_v36, 0.0  ;;  %v2960_v18 = vadd.f32 %v2935_v24, %v8189_v19 }
 0x2db   :  { %v5228_v35 = vsel %vm5222_vm7, %v5226_v6, %v5227_v44  ;;  %v8225_v34 = vadd.f32 %v5227_v44, %v5209_v7  ;;  %v2609_v47 = vadd.f32 %v8176_v22, %v2495_v2  ;;  %v2959_v39 = vadd.f32 %v2935_v24, %v2757_v51  ;;  %v6558_v9 = vpop.f32.mrf.mxu1 }
 0x2dc   :  { %v8231_v3 = vadd.f32 %v5228_v35, %v5208_v62  ;;  %v2499_v21 = vpop.f32.mrf.mxu0  ;;  %v5192_v28 = vrot.slane %v2607_v30, 5  ;;  %6740 = vrsqrt.f32 %v8229_v13  ;;  %v8237_v22 = vadd.f32 1e-06, %v2969_v48 }
 0x2dd   :  { %v2613_v58 = vadd.f32 %v8178_v0, %v2499_v21  ;;  %v2964_v1 = vmul.f32 2.0, %v6558_v9  ;;  %v5254_v56 = vsel %vm5222_vm7, %v8225_v34, 0.0  ;;  %v5229_v20 = vrot.slane %v2609_v47, 6  ;;  %v2901_v51 = vpop.f32.mrf.mxu1 }
 0x2de   :  { %v5253_v46 = vadd.f32 %v5252_v50, %v8231_v3  ;;  %v2501_v26 = vpop.f32.mrf.mxu0  ;;  %6742 = vrsqrt.f32 %v8237_v22  ;;  %v2963_v37 = vmul.f32 2.0, %v2901_v51  ;;  %vm2986_vm9 = vcmp.eq.f32.partialorder %v8229_v13, inf }
 0x2df   :  { %v5193_v6 = vrot.slane %v2613_v58, 5  ;;  %v2615_v19 = vadd.f32 %v8184_v43, %v2501_v26  ;;  %v2968_v0 = vsub.f32 %v2960_v18, %v2964_v1  ;;  %vm2988_vm10 = vcmp.eq.f32.partialorder %v8229_v13, 0.0 }
 0x2e0   :  { %v5255_v61 = vadd.f32 %v5254_v56, %v5253_v46  ;;  %v2505_v7 = vpop.f32.mrf.mxu0  ;;  %v2967_v2 = vsub.f32 %v2959_v39, %v2963_v37  ;;  %vm2979_vm11 = vcmp.eq.f32.partialorder %v8237_v22, inf  ;;  %vm2981_vm13 = vcmp.eq.f32.partialorder %v8237_v22, 0.0 }
 0x2e1   :  { %v5194_v50 = vsel %vm5185_vm6, %v5192_v28, %v5193_v6  ;;  %v5211_v44 = vadd.f32 %v5193_v6, %v8160_v38  ;;  %v5230_v30 = vrot.slane %v2615_v19, 6  ;;  %v2619_v59 = vadd.f32 %v8191_v25, %v2505_v7 }
 0x2e2   :  { %v5256_v62 = vrot.slane %v5255_v61, 4  ;;  %v5210_v54 = vadd.f32 %v5194_v50, %v8162_v45  ;;  %v2972_v36 = vmax.f32 %v2968_v0, 0.0  ;;  %v2507_v43 = vpop.f32.mrf.mxu0  ;;  %v2971_v38 = vmax.f32 %v2967_v2, 0.0 }
 0x2e3   :  { %v5231_v35 = vsel %vm5222_vm7, %v5229_v20, %v5230_v30  ;;  %v8248_v47 = vadd.f32 %v5230_v30, %v5211_v44  ;;  %v2621_v24 = vadd.f32 %v8196_v49, %v2507_v43  ;;  %v5195_v46 = vrot.slane %v2619_v59, 5 }
 0x2e4   :  { %v5257_v48 = vadd.f32 %v5256_v62, %v5255_v61  ;;  %v8251_v21 = vadd.f32 1e-06, %v2972_v36  ;;  %v8253_v18 = vadd.f32 %v5231_v35, %v5210_v54  ;;  %v2511_v28 = vpop.f32.mrf.mxu0  ;;  %v8260_v9 = vadd.f32 1e-06, %v2971_v38 }
 0x2e5   :  { %v5302_v25 = vsel %vm5222_vm7, %v8248_v47, 0.0  ;;  %v2625_v45 = vadd.f32 %v8201_v57, %v2511_v28  ;;  %v5232_v20 = vrot.slane %v2621_v24, 6 }
 0x2e6   :  { %v5258_v39 = vrot.slane %v5257_v48, 2  ;;  %6744 = vrsqrt.f32 %v8251_v21  ;;  %v5303_v58 = vadd.f32 %v5302_v25, %v8253_v18  ;;  %v2513_v49 = vpop.f32.mrf.mxu0  ;;  %v2982_v25 = vand.u32 2147483648, %v8237_v22 }
 0x2e7   :  { %v5196_v1 = vrot.slane %v2625_v45, 5  ;;  %v2627_v26 = vadd.f32 %v8208_v55, %v2513_v49  ;;  %6746 = vrsqrt.f32 %v8260_v9  ;;  %vm3000_vm12 = vcmp.eq.f32.partialorder %v8251_v21, inf }
 0x2e8   :  { %v5259_v56 = vadd.f32 %v5258_v39, %v5257_v48  ;;  %vm3002_vm14 = vcmp.eq.f32.partialorder %v8251_v21, 0.0  ;;  %vm2993_vm15 = vcmp.eq.f32.partialorder %v8260_v9, inf  ;;  %vm2995_vm1 = vcmp.eq.f32.partialorder %v8260_v9, 0.0 }
 0x2e9   :  { %v5197_v6 = vsel %vm5185_vm6, %v5195_v46, %v5196_v1  ;;  %v5213_v57 = vadd.f32 %v5196_v1, %v8168_v27  ;;  %v5233_v19 = vrot.slane %v2627_v26, 6  ;;  %v6741_v0 = vpop.eup %6740  ;;  %v2989_v27 = vand.u32 2147483648, %v8229_v13 }
 0x2ea   :  { %v5260_v51 = vrot.slane %v5259_v56, 1  ;;  %v5212_v61 = vadd.f32 %v5197_v6, %v8170_v14  ;;  %v2985_v50 = vmul.f32 %v6741_v0, %v8229_v13  ;;  %v2996_v0 = vand.u32 2147483648, %v8260_v9 }
 0x2eb   :  { %v5234_v37 = vsel %vm5222_vm7, %v5232_v20, %v5233_v19  ;;  %v8268_v7 = vadd.f32 %v5233_v19, %v5213_v57  ;;  %v6743_v30 = vpop.eup %6742  ;;  %v3003_v20 = vand.u32 2147483648, %v8251_v21 }
 0x2ec   :  { %v5261_v55 = vadd.f32 %v5260_v51, %v5259_v56  ;;  %v8271_v44 = vadd.f32 %v5234_v37, %v5212_v61  ;;  %v2978_v14 = vmul.f32 %v6743_v30, %v8237_v22  ;;  %v2987_v54 = vsel %vm2986_vm9, %v8229_v13, %v2985_v50 }
 0x2ed   :  { %v5305_v36 = vsel %vm5222_vm7, %v8268_v7, 0.0  ;;  %v2990_v2 = vsel %vm2988_vm10, %v2989_v27, %v2987_v54 }
 0x2ee   :  { %v5263_v59 = vmul.f32 0.05, %v5261_v55  ;;  %v5304_v62 = vadd.f32 %v5303_v58, %v8271_v44  ;;  %v3006_v13 = vadd.f32 1.0, %v2990_v2  ;;  %v2980_v28 = vsel %vm2979_vm11, %v8237_v22, %v2978_v14  ;;  %v8321_v2 = vld [vmem:[#allocation7] ss:$0 sm:$0xff] }
 0x2ef   :  { %v2983_v39 = vsel %vm2981_vm13, %v2982_v25, %v2980_v28 }
 0x2f0   :  { %v8283_v43 = vsub.f32 %v8210_v63, %v5263_v59  ;;  %v8286_v35 = vsub.f32 %v8206_v60, %v5263_v59  ;;  %v8289_v24 = vsub.f32 %v8231_v3, %v5263_v59  ;;  %v8292_v48 = vsub.f32 %v8225_v34, %v5263_v59 }
 0x2f1   :  { %v5306_v38 = vadd.f32 %v5305_v36, %v5304_v62  ;;  %6748 = vrcp.f32 %v3006_v13  ;;  %v3005_v46 = vadd.f32 1.0, %v2983_v39 }
 0x2f2   :  { %v5268_v45 = vmul.f32 %v8283_v43, %v8283_v43  ;;  %v5269_v63 = vmul.f32 %v8286_v35, %v8286_v35  ;;  %v5271_v34 = vmul.f32 %v8292_v48, %v8292_v48  ;;  %v5270_v26 = vmul.f32 %v8289_v24, %v8289_v24 }
 0x2f3   :  { %v6745_v60 = vpop.eup %6744  ;;  %v5307_v3 = vrot.slane %v5306_v38, 4  ;;  %6750 = vrcp.f32 %v3005_v46 }
 0x2f4   :  { %v5272_v58 = vsel %vm5222_vm7, %v5269_v63, 0.0  ;;  %v2999_v49 = vmul.f32 %v6745_v60, %v8251_v21  ;;  %v6747_v1 = vpop.eup %6746  ;;  %v5275_v37 = vsel %vm5222_vm7, %v5271_v34, 0.0 }
 0x2f5   :  { %v5273_v56 = vadd.f32 %v5272_v58, %v5268_v45  ;;  %v5308_v22 = vadd.f32 %v5307_v3, %v5306_v38  ;;  %v2992_v6 = vmul.f32 %v6747_v1, %v8260_v9  ;;  %v3472_v38 = vmul.f32 %v8321_v2, %v7780_v17 }
 0x2f6   :  { %v3001_v57 = vsel %vm3000_vm12, %v8251_v21, %v2999_v49  ;;  %v3471_v17 = vmul.f32 %v8321_v2, %v7776_v29  ;;  %v8343_v49 = vld [vmem:[#allocation9] ss:$0 sm:$0xff] }
 0x2f7   :  { %v5274_v19 = vadd.f32 %v5273_v56, %v5270_v26  ;;  %v5309_v51 = vrot.slane %v5308_v22, 2  ;;  %v3004_v61 = vsel %vm3002_vm14, %v3003_v20, %v3001_v57  ;;  %v2994_v55 = vsel %vm2993_vm15, %v8260_v9, %v2992_v6 }
 0x2f8   :  { %v3008_v50 = vadd.f32 1.0, %v3004_v61  ;;  %v2997_v59 = vsel %vm2995_vm1, %v2996_v0, %v2994_v55  ;;  %v3475_v20 = vadd.f32 %v8343_v49, %v3471_v17  ;;  %vm3809_vm1 = vcmask 111616  }
 0x2f9   :  { %v5276_v30 = vadd.f32 %v5275_v37, %v5274_v19  ;;  %v5310_v27 = vadd.f32 %v5309_v51, %v5308_v22  ;;  %v3007_v14 = vadd.f32 1.0, %v2997_v59  ;;  %v3522_v37 = vmul.f32 %v8321_v2, %v7867_v40 }
 0x2fa   :  { %6752 = vrcp.f32 %v3008_v50  ;;  %v3469_v59 = vmul.f32 %v8321_v2, %v7794_v4 }
 0x2fb   :  { %v5277_v62 = vrot.slane %v5276_v30, 4  ;;  %v5311_v54 = vrot.slane %v5310_v27, 1  ;;  %6754 = vrcp.f32 %v3007_v14 }
 0x2fd   :  { %v5278_v36 = vadd.f32 %v5277_v62, %v5276_v30  ;;  %v5312_v21 = vadd.f32 %v5311_v54, %v5310_v27  ;;  %v8363_v54 = vmax.f32 %v3475_v20, 0.0 }
 0x2fe   :  { %v6749_v25 = vpop.eup %6748 }
 0x2ff   :  { %v5279_v13 = vrot.slane %v5278_v36, 2  ;;  %v5313_v28 = vmul.f32 0.05, %v5312_v21 }
 0x300   :  { %v6751_v3 = vpop.eup %6750 }
 0x301   :  { %v5280_v9 = vadd.f32 %v5279_v13, %v5278_v36  ;;  %v8326_v45 = vsub.f32 %v8253_v18, %v5313_v28  ;;  %v8329_v63 = vsub.f32 %v8248_v47, %v5313_v28  ;;  %v8332_v60 = vsub.f32 %v8271_v44, %v5313_v28 }
 0x302   :  { %v8335_v34 = vsub.f32 %v8268_v7, %v5313_v28  ;;  %v3476_v47 = vadd.f32 %v8343_v49, %v3472_v38  ;;  %v3019_v44 = vsel %vm3017_vm2, %v6749_v25, 0.0  ;;  %v3018_v7 = vsel %vm3017_vm2, %v6751_v3, 0.0  ;;  %v8811_v25 = vld [vmem:[#allocation19_spill] sm:$0xff] }
 0x303   :  { %v5281_v39 = vrot.slane %v5280_v9, 1  ;;  %v5318_v58 = vmul.f32 %v8326_v45, %v8326_v45  ;;  %v5319_v18 = vmul.f32 %v8329_v63, %v8329_v63  ;;  %v3020_v26 = vadd.f32 %v3019_v44, %v3018_v7 }
 0x304   :  { %v5321_v29 = vmul.f32 %v8335_v34, %v8335_v34  ;;  %v5320_v56 = vmul.f32 %v8332_v60, %v8332_v60  ;;  %v8354_v51 = vmax.f32 %v3476_v47, 0.0  ;;  %v3526_v13 = vadd.f32 %v8343_v49, %v3522_v37 }
 0x305   :  { %v5282_v46 = vadd.f32 %v5281_v39, %v5280_v9  ;;  %v5322_v1 = vsel %vm5222_vm7, %v5319_v18, 0.0  ;;  %v3021_v19 = vrot.slane %v3020_v26, 4  ;;  %v3521_v28 = vmul.f32 %v8321_v2, %v7872_v16 }
 0x306   :  { %v5323_v22 = vadd.f32 %v5322_v1, %v5318_v58  ;;  %v5325_v30 = vsel %vm5222_vm7, %v5321_v29, 0.0  ;;  %v3534_v40 = vmul.f32 %v8354_v51, %v8354_v51  ;;  %v3520_v4 = vmul.f32 %v8321_v2, %v8811_v25 }
 0x307   :  { %v6753_v6 = vpop.eup %6752  ;;  %v5283_v57 = vmul.f32 0.05, %v5282_v46  ;;  %v3022_v27 = vadd.f32 %v3021_v19, %v3020_v26  ;;  %v3473_v3 = vadd.f32 %v8343_v49, %v3469_v59  ;;  %v3533_v58 = vmul.f32 %v8363_v54, %v8363_v54 }
 0x308   :  { %v5324_v61 = vadd.f32 %v5323_v22, %v5320_v56  ;;  %v3028_v0 = vsel %vm3017_vm2, %v6753_v6, 0.0  ;;  %v6755_v50 = vpop.eup %6754  ;;  %v3542_v46 = vsel %vm3401_vm3, %v3534_v40, 0.0  ;;  %v3532_v16 = vmul.f32 %v7962_v32, %v7962_v32  ;;  %v8812_v6 = vld [vmem:[#allocation20_spill] sm:$0xff] }
 0x309   :  { %v5284_v55 = vadd.f32 1e-05, %v5283_v57  ;;  %3042 = vadd.xlane.f32.xlu1 %v3028_v0  ;;  %v3027_v62 = vsel %vm3017_vm2, %v6755_v50, 0.0  ;;  %v3023_v21 = vrot.slane %v3022_v27, 2  ;;  %v8378_v1 = vmax.f32 %v3526_v13, 0.0 }
 0x30a   :  { %v5326_v14 = vadd.f32 %v5325_v30, %v5324_v61  ;;  %v3029_v36 = vadd.f32 %v3028_v0, %v3027_v62  ;;  %3040 = vadd.xlane.f32.xlu0 %v3027_v62  ;;  %v3524_v26 = vadd.f32 %v8343_v49, %v3520_v4  ;;  %v8382_v20 = vmax.f32 %v3473_v3, 0.0 }
 0x30b   :  { %6756 = vrsqrt.f32 %v5284_v55  ;;  %v3024_v17 = vadd.f32 %v3023_v21, %v3022_v27  ;;  %v3537_v61 = vsel %vm3401_vm3, %v3532_v16, 0.0  ;;  %v3548_v37 = vmul.f32 %v8378_v1, %v8378_v1 }
 0x30c   :  { %v5327_v38 = vrot.slane %v5326_v14, 4  ;;  %v3030_v9 = vrot.slane %v3029_v36, 4  ;;  %v8395_v55 = vmax.f32 %v3524_v26, 0.0  ;;  %v3531_v27 = vmul.f32 %v8382_v20, %v8382_v20 }
 0x30d   :  { %3038 = vadd.xlane.f32.xlu1 %v3019_v44  ;;  %v3025_v47 = vrot.slane %v3024_v17, 1  ;;  %v3525_v44 = vadd.f32 %v8343_v49, %v3521_v28  ;;  %v3556_v21 = vsel %vm3401_vm3, %v3548_v37, 0.0 }
 0x30e   :  { %v5328_v39 = vadd.f32 %v5327_v38, %v5326_v14  ;;  %v3031_v18 = vadd.f32 %v3030_v9, %v3029_v36  ;;  %3036 = vadd.xlane.f32.xlu0 %v3018_v7  ;;  %v3519_v7 = vmul.f32 %v8321_v2, %v8812_v6  ;;  %v3546_v38 = vmul.f32 %v8395_v55, %v8395_v55 }
 0x30f   :  { %v3026_v22 = vadd.f32 %v3025_v47, %v3024_v17  ;;  %v8393_v50 = vmax.f32 %v3525_v44, 0.0 }
 0x310   :  { %v5329_v29 = vrot.slane %v5328_v39, 2  ;;  %v3032_v56 = vrot.slane %v3031_v18, 2  ;;  %v3523_v59 = vadd.f32 %v8343_v49, %v3519_v7 }
 0x311   :  { %3543 = vadd.xlane.f32.xlu1 %v3542_v46  ;;  %6564 = vmatmul.mubr.msk.f32.vlgmr.msra.gmra.mxu1 %vm3017_vm2, %v3026_v22  ;;  %v3547_v40 = vmul.f32 %v8393_v50, %v8393_v50 }
 0x312   :  { %v5330_v57 = vadd.f32 %v5329_v29, %v5328_v39  ;;  %v3033_v19 = vadd.f32 %v3032_v56, %v3031_v18  ;;  %3540 = vadd.xlane.f32.xlu0 %v3533_v58  ;;  %6567 = vmatpush3.msra.mxu1 %v7801_v52 }
 0x313   :  { %6570 = vmatprep.mubr.msk.f32.mxu1 %vm7030_vm5, %v8800_v11  ;;  %6568 = vmatprep.subr.mxu1 %v8800_v11 }
 0x314   :  { %v5331_v0 = vrot.slane %v5330_v57, 1  ;;  %v3034_v30 = vrot.slane %v3033_v19, 1  ;;  %6569 = vmatpush3.msra.mxu1 %v7748_v41  ;;  %v8415_v41 = vmax.f32 %v3523_v59, 0.0 }
 0x315   :  { %3538 = vadd.xlane.f32.xlu1 %v3537_v61  ;;  %6580 = vmatprep.subr.mxu1 %v8800_v11 }
 0x316   :  { %v5332_v52 = vadd.f32 %v5331_v0, %v5330_v57  ;;  %v3035_v14 = vadd.f32 %v3034_v30, %v3033_v19  ;;  %3535 = vadd.xlane.f32.xlu0 %v3531_v27 }
 0x318   :  { %v6757_v62 = vpop.eup %6756  ;;  %v5333_v36 = vmul.f32 0.05, %v5332_v52  ;;  %6571 = vmatmul.mubr.msk.f32.vlgmr.msra.gmra.mxu1 %vm3017_vm2, %v3035_v14 }
 0x319   :  { %v8409_v13 = vmul.f32 %v6757_v62, %v8289_v24  ;;  %v8412_v28 = vmul.f32 %v6757_v62, %v8292_v48  ;;  %3557 = vadd.xlane.f32.xlu1 %v3556_v21  ;;  %v8418_v25 = vmul.f32 %v6757_v62, %v8286_v35  ;;  %6581 = vmatpush3.msra.mxu1 %v7846_v8  ;;  %v3551_v48 = vsel %vm3401_vm3, %v3546_v38, 0.0 }
 0x31a   :  { %v5334_v4 = vadd.f32 1e-05, %v5333_v36  ;;  %6584 = vmatprep.mubr.msk.f32.mxu1 %vm7030_vm5, %v8800_v11  ;;  %v8424_v24 = vmul.f32 %v6757_v62, %v8283_v43  ;;  %6582 = vmatprep.subr.mxu1 %v8800_v11  ;;  %v3545_v8 = vmul.f32 %v8415_v41, %v8415_v41 }
 0x31b   :  { %3554 = vadd.xlane.f32.xlu0 %v3547_v40  ;;  %6583 = vmatpush3.msra.mxu1 %v7848_v15 }
 0x31c   :  { %6758 = vrsqrt.f32 %v5334_v4  ;;  %6594 = vmatprep.subr.mxu1 %v8354_v51 }
 0x31d   :  { %3552 = vadd.xlane.f32.xlu1 %v3551_v48 }
 0x31f   :  { %3549 = vadd.xlane.f32.xlu0 %v3545_v8 }
 0x329   :  { %v6759_v35 = vpop.eup %6758 }
 0x32a   :  { %v8433_v9 = vmul.f32 %v6759_v35, %v8335_v34  ;;  %v8436_v43 = vmul.f32 %v6759_v35, %v8332_v60  ;;  %v8439_v17 = vmul.f32 %v6759_v35, %v8329_v63  ;;  %v8442_v15 = vmul.f32 %v6759_v35, %v8326_v45 }
 0x392   :  { %v3043_v3 = vpop.xlane.xlu1 %3042 }
 0x393   :  { %v3041_v39 = vpop.xlane.xlu0 %3040  ;;  %v3282_v58 = vrot.slane %v3043_v3, %v8187_v42 }
 0x394   :  { %v3278_v18 = vrot.slane %v3041_v39, %v8194_v33 }
 0x396   :  { %v3039_v47 = vpop.xlane.xlu1 %3038  ;;  %v3283_v46 = vsel %vm2925_vm8, %v3282_v58, %v3278_v18 }
 0x397   :  { %6585 = vmatmul.mubr.msk.f32.vlgmr.msra.gmra.mxu1 %vm3017_vm2, %v3283_v46  ;;  %v3037_v34 = vpop.xlane.xlu0 %3036  ;;  %v3199_v60 = vrot.slane %v3039_v47, %v8187_v42 }
 0x398   :  { %v3195_v63 = vrot.slane %v3037_v34, %v8194_v33  ;;  %6595 = vmatpush3.xpose.msra.mxu1 %v8354_v51  ;;  %6598 = vmatprep.mubr.f32.mxu1 %v8393_v50 }
 0x399   :  { %6596 = vmatprep.subr.mxu1 %v8363_v54 }
 0x39a   :  { %v3200_v45 = vsel %vm2925_vm8, %v3199_v60, %v3195_v63  ;;  %v3544_v56 = vpop.xlane.xlu1 %3543 }
 0x39b   :  { %6578 = vmatmul.mubr.msk.f32.vlgmr.msra.gmra.mxu0 %vm3017_vm2, %v3200_v45  ;;  %v3541_v22 = vpop.xlane.xlu0 %3540  ;;  %v3729_v27 = vrot.slane %v3544_v56, %v8187_v42  ;;  %vm3807_vm2 = vcmask 113664  }
 0x39c   :  { %6597 = vmatpush3.xpose.msra.mxu1 %v8363_v54  ;;  %6588 = vmatpush3.xpose.msra.mxu0 %v7962_v32  ;;  %v3725_v61 = vrot.slane %v3541_v22, %v8194_v33 }
 0x39d   :  { %6589 = vmatprep.subr.mxu0 %v8382_v20  ;;  %6591 = vmatprep.mubr.f32.mxu0 %v8415_v41 }
 0x39e   :  { %6608 = vmatprep.subr.mxu1 %v8800_v11  ;;  %v3730_v62 = vsel %vm2925_vm8, %v3729_v27, %v3725_v61 }
 0x39f   :  { %6599 = vmatmul.mubr.f32.vlgmr.msra.gmra.mxu1 %v8378_v1  ;;  %v3536_v6 = vpop.xlane.xlu0 %3535 }
 0x3a0   :  { %6590 = vmatpush3.xpose.msra.mxu0 %v8382_v20  ;;  %6609 = vmatpush3.msk.msra.mxu1 %vm3401_vm3, %v8354_v51  ;;  %v3716_v14 = vrot.slane %v3536_v6, %v8194_v33 }
 0x3a1   :  { %6610 = vmatprep.subr.mxu1 %v8800_v11  ;;  %6601 = vmatprep.subr.mxu0 %v8800_v11 }
 0x3a2   :  { %6611 = vmatpush3.msra.mxu1 %v8363_v54  ;;  %6612 = vmatprep.mubr.msk.f32.mxu1 %vm7030_vm5, %v8800_v11 }
 0x3a3   :  { %6592 = vmatmul.mubr.f32.vlgmr.msra.gmra.mxu0 %v8395_v55  ;;  %6622 = vmatprep.subr.mxu1 %v8800_v11 }
 0x3a4   :  { %6602 = vmatpush3.msk.msra.mxu0 %vm3401_vm3, %v7962_v32  ;;  %6605 = vmatprep.mubr.msk.f32.mxu0 %vm7030_vm5, %v8800_v11  ;;  %v3539_v32 = vpop.xlane.xlu1 %3538  ;;  %v3555_v37 = vpop.xlane.xlu0 %3554 }
 0x3a5   :  { %6603 = vmatprep.subr.mxu0 %v8800_v11  ;;  %v3720_v4 = vrot.slane %v3539_v32, %v8187_v42  ;;  %v3749_v35 = vadd.f32 %v3730_v62, %v3555_v37 }
 0x3a6   :  { %6604 = vmatpush3.msra.mxu0 %v8382_v20 }
 0x3a7   :  { %6615 = vmatprep.subr.mxu0 %v8800_v11  ;;  %v3721_v18 = vsel %vm2925_vm8, %v3720_v4, %v3716_v14 }
 0x3a8   :  { %v3558_v20 = vpop.xlane.xlu1 %3557  ;;  %v3550_v3 = vpop.xlane.xlu0 %3549 }
 0x3a9   :  { %v3750_v40 = vadd.f32 %v3730_v62, %v3558_v20  ;;  %v3747_v45 = vadd.f32 %v3721_v18, %v3550_v3 }
 0x3ac   :  { %v3553_v48 = vpop.xlane.xlu1 %3552 }
 0x3ad   :  { %v3748_v46 = vadd.f32 %v3721_v18, %v3553_v48 }
 0x3d1   :  { %v3113_v51 = vpop.f32.mrf.mxu1 }
 0x3d3   :  { %v6565_v54 = vpop.f32.mrf.mxu1 }
 0x3d8   :  { %v3186_v16 = vpop.f32.mrf.mxu1 }
 0x3d9   :  { %v5982_v29 = vrot.slane %v3186_v16, 7 }
 0x3da   :  { %v6572_v44 = vpop.f32.mrf.mxu1 }
 0x3db   :  { %v5983_v26 = vsel %vm2936_vm4, %v5982_v29, %v3113_v51 }
 0x457   :  { %v3352_v7 = vpop.f32.mrf.mxu1 }
 0x458   :  { %v6002_v19 = vrot.slane %v3352_v7, 7 }
 0x459   :  { %v6586_v57 = vpop.f32.mrf.mxu1 }
 0x45b   :  { %v3269_v0 = vpop.f32.mrf.mxu0 }
 0x45c   :  { %v6003_v30 = vsel %vm2936_vm4, %v6002_v19, %v3269_v0 }
 0x45d   :  { %v6016_v59 = vrot.slane %v6003_v30, 6  ;;  %v6579_v52 = vpop.f32.mrf.mxu0 }
 0x45f   :  { %v6600_v36 = vpop.f32.mrf.mxu1  ;;  %v8485_v21 = vsel %vm5222_vm7, %v5983_v26, %v6016_v59 }
 0x460   :  { %v3754_v38 = vmul.f32 2.0, %v6600_v36 }
 0x461   :  { %v3700_v8 = vpop.f32.mrf.mxu1 }
 0x462   :  { %v3758_v39 = vsub.f32 %v3750_v40, %v3754_v38  ;;  %v3753_v58 = vmul.f32 2.0, %v3700_v8 }
 0x463   :  { %v6593_v47 = vpop.f32.mrf.mxu0 }
 0x464   :  { %v3762_v34 = vmax.f32 %v3758_v39, 0.0  ;;  %v3757_v60 = vsub.f32 %v3749_v35, %v3753_v58  ;;  %v3752_v63 = vmul.f32 2.0, %v6593_v47 }
 0x465   :  { %v3625_v51 = vpop.f32.mrf.mxu0 }
 0x466   :  { %v3766_v54 = vadd.f32 1e-06, %v3762_v34  ;;  %v3761_v16 = vmax.f32 %v3757_v60, 0.0  ;;  %v3756_v29 = vsub.f32 %v3748_v46, %v3752_v63  ;;  %v3751_v44 = vmul.f32 2.0, %v3625_v51 }
 0x467   :  { %v4346_v46 = vmul.f32 %v8321_v2, %v8100_v53  ;;  %v4345_v60 = vmul.f32 %v8321_v2, %v8097_v5  ;;  %v4344_v63 = vmul.f32 %v8321_v2, %v8103_v31  ;;  %v4396_v53 = vmul.f32 %v8321_v2, %v8125_v10 }
 0x468   :  { %6760 = vrsqrt.f32 %v3766_v54  ;;  %v3765_v26 = vadd.f32 1e-06, %v3761_v16  ;;  %v3760_v56 = vmax.f32 %v3756_v29, 0.0  ;;  %v3755_v22 = vsub.f32 %v3747_v45, %v3751_v44 }
 0x469   :  { %vm3790_vm6 = vcmp.eq.f32.partialorder %v3766_v54, inf  ;;  %v3793_v20 = vand.u32 2147483648, %v3766_v54  ;;  %vm3792_vm9 = vcmp.eq.f32.partialorder %v3766_v54, 0.0  ;;  %v4350_v34 = vadd.f32 %v8343_v49, %v4346_v46 }
 0x46a   :  { %6762 = vrsqrt.f32 %v3765_v26  ;;  %v3764_v32 = vadd.f32 1e-06, %v3760_v56  ;;  %v3759_v6 = vmax.f32 %v3755_v22, 0.0  ;;  %vm3783_vm10 = vcmp.eq.f32.partialorder %v3765_v26, inf }
 0x46b   :  { %v3786_v59 = vand.u32 2147483648, %v3765_v26  ;;  %vm3785_vm11 = vcmp.eq.f32.partialorder %v3765_v26, 0.0  ;;  %v8496_v51 = vmax.f32 %v4350_v34, 0.0  ;;  %v4343_v16 = vmul.f32 %v8321_v2, %v8106_v12 }
 0x46c   :  { %6764 = vrsqrt.f32 %v3764_v32  ;;  %v3763_v7 = vadd.f32 1e-06, %v3759_v6  ;;  %vm3776_vm12 = vcmp.eq.f32.partialorder %v3764_v32, inf  ;;  %vm3778_vm13 = vcmp.eq.f32.partialorder %v3764_v32, 0.0 }
 0x46d   :  { %v3779_v38 = vand.u32 2147483648, %v3764_v32  ;;  %v4348_v5 = vadd.f32 %v8343_v49, %v4344_v63  ;;  %v4408_v22 = vmul.f32 %v8496_v51, %v8496_v51  ;;  %v4347_v12 = vadd.f32 %v8343_v49, %v4343_v16 }
 0x46e   :  { %6766 = vrsqrt.f32 %v3763_v7  ;;  %vm3769_vm14 = vcmp.eq.f32.partialorder %v3763_v7, inf  ;;  %v3772_v3 = vand.u32 2147483648, %v3763_v7  ;;  %vm3771_vm15 = vcmp.eq.f32.partialorder %v3763_v7, 0.0 }
 0x46f   :  { %v8512_v6 = vmax.f32 %v4348_v5, 0.0 }
 0x475   :  { %v6761_v57 = vpop.eup %6760 }
 0x476   :  { %v3789_v19 = vmul.f32 %v6761_v57, %v3766_v54  ;;  %v4394_v57 = vmul.f32 %v8321_v2, %v8131_v23  ;;  %v8525_v23 = vmax.f32 %v4347_v12, 0.0 }
 0x477   :  { %v6763_v61 = vpop.eup %6762 }
 0x478   :  { %v3782_v0 = vmul.f32 %v6763_v61, %v3765_v26  ;;  %v3791_v37 = vsel %vm3790_vm6, %v3766_v54, %v3789_v19  ;;  %v4349_v54 = vadd.f32 %v8343_v49, %v4345_v60 }
 0x479   :  { %v6765_v30 = vpop.eup %6764  ;;  %v3794_v27 = vsel %vm3792_vm9, %v3793_v20, %v3791_v37  ;;  %v8813_v20 = vld [vmem:[#allocation17_spill] sm:$0xff] }
 0x47a   :  { %v3775_v52 = vmul.f32 %v6765_v30, %v3764_v32  ;;  %v3798_v14 = vadd.f32 1.0, %v3794_v27  ;;  %v3784_v62 = vsel %vm3783_vm10, %v3765_v26, %v3782_v0  ;;  %v4395_v0 = vmul.f32 %v8321_v2, %v8813_v20 }
 0x47b   :  { %v6767_v36 = vpop.eup %6766  ;;  %v3787_v40 = vsel %vm3785_vm11, %v3786_v59, %v3784_v62  ;;  %v4416_v59 = vsel %vm772_vm0, %v4408_v22, 0.0 }
 0x47c   :  { %v3768_v4 = vmul.f32 %v6767_v36, %v3763_v7  ;;  %6768 = vrcp.f32 %v3798_v14  ;;  %v3797_v48 = vadd.f32 1.0, %v3787_v40  ;;  %v3777_v8 = vsel %vm3776_vm12, %v3764_v32, %v3775_v52 }
 0x47d   :  { %v3780_v35 = vsel %vm3778_vm13, %v3779_v38, %v3777_v8  ;;  %v8508_v32 = vmax.f32 %v4349_v54, 0.0  ;;  %v4406_v14 = vmul.f32 %v8512_v6, %v8512_v6  ;;  %v4398_v36 = vadd.f32 %v8343_v49, %v4394_v57 }
 0x47e   :  { %6770 = vrcp.f32 %v3797_v48  ;;  %v3796_v39 = vadd.f32 1.0, %v3780_v35  ;;  %v3770_v58 = vsel %vm3769_vm14, %v3763_v7, %v3768_v4  ;;  %v4400_v7 = vadd.f32 %v8343_v49, %v4396_v53  ;;  %v8814_v48 = vld [vmem:[#allocation21_spill] sm:$0xff] }
 0x47f   :  { %v3773_v18 = vsel %vm3771_vm15, %v3772_v3, %v3770_v58  ;;  %v4407_v52 = vmul.f32 %v8508_v32, %v8508_v32  ;;  %v4399_v4 = vadd.f32 %v8343_v49, %v4395_v0  ;;  %v4393_v8 = vmul.f32 %v8321_v2, %v8814_v48 }
 0x480   :  { %6772 = vrcp.f32 %v3796_v39  ;;  %v3795_v47 = vadd.f32 1.0, %v3773_v18  ;;  %v8527_v62 = vmax.f32 %v4400_v7, 0.0  ;;  %v4411_v39 = vsel %vm772_vm0, %v4406_v14, 0.0 }
 0x481   :  { %v4405_v58 = vmul.f32 %v8525_v23, %v8525_v23  ;;  %v8540_v60 = vmax.f32 %v4399_v4, 0.0  ;;  %v4397_v63 = vadd.f32 %v8343_v49, %v4393_v8  ;;  %vm4683_vm15 = vcmask 93184  }
 0x482   :  { %6774 = vrcp.f32 %v3795_v47  ;;  %v4422_v18 = vmul.f32 %v8527_v62, %v8527_v62  ;;  %v8538_v47 = vmax.f32 %v4398_v36, 0.0 }
 0x483   :  { %v4421_v5 = vmul.f32 %v8540_v60, %v8540_v60 }
 0x484   :  { %v4430_v16 = vsel %vm772_vm0, %v4422_v18, 0.0  ;;  %v4420_v53 = vmul.f32 %v8538_v47, %v8538_v47 }
 0x489   :  { %v6769_v45 = vpop.eup %6768 }
 0x48a   :  { %v3819_v29 = vsel %vm3809_vm1, %v6769_v45, 0.0 }
 0x48b   :  { %v6771_v44 = vpop.eup %6770  ;;  %3833 = vadd.xlane.f32.xlu1 %v3819_v29 }
 0x48c   :  { %v3818_v31 = vsel %vm3807_vm2, %v6771_v44, 0.0  ;;  %v8549_v44 = vmax.f32 %v4397_v63, 0.0 }
 0x48d   :  { %v6773_v26 = vpop.eup %6772  ;;  %v3820_v56 = vadd.f32 %v3819_v29, %v3818_v31  ;;  %3831 = vadd.xlane.f32.xlu0 %v3818_v31 }
 0x48e   :  { %v3810_v10 = vsel %vm3809_vm1, %v6773_v26, 0.0  ;;  %v4425_v26 = vsel %vm772_vm0, %v4420_v53, 0.0  ;;  %vm4681_vm1 = vcmask 97280  }
 0x48f   :  { %v6775_v19 = vpop.eup %6774  ;;  %v3821_v61 = vrot.slane %v3820_v56, 4  ;;  %3829 = vadd.xlane.f32.xlu1 %v3810_v10 }
 0x490   :  { %v3808_v37 = vsel %vm3807_vm2, %v6775_v19, 0.0 }
 0x491   :  { %v3822_v30 = vadd.f32 %v3821_v61, %v3820_v56  ;;  %3827 = vadd.xlane.f32.xlu0 %v3808_v37  ;;  %v3811_v27 = vadd.f32 %v3810_v10, %v3808_v37  ;;  %v4419_v56 = vmul.f32 %v8549_v44, %v8549_v44 }
 0x493   :  { %v3823_v40 = vrot.slane %v3822_v30, 2  ;;  %v3812_v38 = vrot.slane %v3811_v27, 4  ;;  %4417 = vadd.xlane.f32.xlu1 %v4416_v59 }
 0x495   :  { %v3824_v35 = vadd.f32 %v3823_v40, %v3822_v30  ;;  %v3813_v3 = vadd.f32 %v3812_v38, %v3811_v27  ;;  %4414 = vadd.xlane.f32.xlu0 %v4407_v52 }
 0x497   :  { %v3825_v46 = vrot.slane %v3824_v35, 1  ;;  %v3814_v34 = vrot.slane %v3813_v3, 2  ;;  %4412 = vadd.xlane.f32.xlu1 %v4411_v39 }
 0x499   :  { %v3826_v45 = vadd.f32 %v3825_v46, %v3824_v35  ;;  %v3815_v54 = vadd.f32 %v3814_v34, %v3813_v3  ;;  %4409 = vadd.xlane.f32.xlu0 %v4405_v58 }
 0x49b   :  { %v3816_v29 = vrot.slane %v3815_v54, 1  ;;  %6613 = vmatmul.mubr.msk.f32.vlgmr.msra.gmra.mxu1 %vm3807_vm2, %v3826_v45  ;;  %4431 = vadd.xlane.f32.xlu1 %v4430_v16 }
 0x49c   :  { %6623 = vmatpush3.msk.msra.mxu1 %vm3401_vm3, %v8378_v1  ;;  %6626 = vmatprep.mubr.msk.f32.mxu1 %vm7030_vm5, %v8800_v11 }
 0x49d   :  { %v3817_v31 = vadd.f32 %v3816_v29, %v3815_v54  ;;  %6624 = vmatprep.subr.mxu1 %v8800_v11  ;;  %4428 = vadd.xlane.f32.xlu0 %v4421_v5 }
 0x49e   :  { %6625 = vmatpush3.msra.mxu1 %v8393_v50 }
 0x49f   :  { %6636 = vmatprep.subr.mxu1 %v8496_v51  ;;  %4426 = vadd.xlane.f32.xlu1 %v4425_v26 }
 0x4a0   :  { %6606 = vmatmul.mubr.msk.f32.vlgmr.msra.gmra.mxu0 %vm3807_vm2, %v3817_v31 }
 0x4a1   :  { %6616 = vmatpush3.msk.msra.mxu0 %vm3401_vm3, %v8395_v55  ;;  %4423 = vadd.xlane.f32.xlu0 %v4419_v56 }
 0x4a2   :  { %6617 = vmatprep.subr.mxu0 %v8800_v11  ;;  %6619 = vmatprep.mubr.msk.f32.mxu0 %vm7030_vm5, %v8800_v11 }
 0x4a3   :  { %6618 = vmatpush3.msra.mxu0 %v8415_v41 }
 0x4a4   :  { %6629 = vmatprep.subr.mxu0 %v8512_v6 }
 0x514   :  { %v3834_v1 = vpop.xlane.xlu1 %3833 }
 0x515   :  { %v4082_v22 = vrot.slane %v3834_v1, %v8187_v42 }
 0x516   :  { %v3832_v50 = vpop.xlane.xlu0 %3831 }
 0x517   :  { %v4078_v12 = vrot.slane %v3832_v50, %v8194_v33 }
 0x518   :  { %v3830_v10 = vpop.xlane.xlu1 %3829 }
 0x519   :  { %v4083_v7 = vsel %vm2925_vm8, %v4082_v22, %v4078_v12  ;;  %v3996_v57 = vrot.slane %v3830_v10, %v8187_v42 }
 0x51a   :  { %6627 = vmatmul.mubr.msk.f32.vlgmr.msra.gmra.mxu1 %vm3807_vm2, %v4083_v7  ;;  %v3828_v55 = vpop.xlane.xlu0 %3827 }
 0x51b   :  { %6637 = vmatpush3.xpose.msra.mxu1 %v8496_v51  ;;  %v3992_v41 = vrot.slane %v3828_v55, %v8194_v33  ;;  %6640 = vmatprep.mubr.f32.mxu1 %v8540_v60 }
 0x51c   :  { %6638 = vmatprep.subr.mxu1 %v8508_v32  ;;  %v4418_v30 = vpop.xlane.xlu1 %4417 }
 0x51d   :  { %v3997_v19 = vsel %vm2925_vm8, %v3996_v57, %v3992_v41  ;;  %v4603_v8 = vrot.slane %v4418_v30, %v8187_v42 }
 0x51e   :  { %6620 = vmatmul.mubr.msk.f32.vlgmr.msra.gmra.mxu0 %vm3807_vm2, %v3997_v19  ;;  %v4415_v27 = vpop.xlane.xlu0 %4414 }
 0x51f   :  { %6630 = vmatpush3.xpose.msra.mxu0 %v8512_v6  ;;  %6639 = vmatpush3.xpose.msra.mxu1 %v8508_v32  ;;  %v4599_v40 = vrot.slane %v4415_v27, %v8194_v33 }
 0x520   :  { %6631 = vmatprep.subr.mxu0 %v8525_v23  ;;  %6633 = vmatprep.mubr.f32.mxu0 %v8549_v44  ;;  %v4413_v59 = vpop.xlane.xlu1 %4412 }
 0x521   :  { %6650 = vmatprep.subr.mxu1 %v8800_v11  ;;  %v4604_v58 = vsel %vm2925_vm8, %v4603_v8, %v4599_v40  ;;  %v4594_v45 = vrot.slane %v4413_v59, %v8187_v42 }
 0x522   :  { %6641 = vmatmul.mubr.f32.vlgmr.msra.gmra.mxu1 %v8527_v62 }
 0x523   :  { %6632 = vmatpush3.xpose.msra.mxu0 %v8525_v23  ;;  %6651 = vmatpush3.msk.msra.mxu1 %vm772_vm0, %v8496_v51 }
 0x524   :  { %6652 = vmatprep.subr.mxu1 %v8800_v11  ;;  %6643 = vmatprep.subr.mxu0 %v8800_v11  ;;  %v4432_v38 = vpop.xlane.xlu1 %4431 }
 0x525   :  { %6653 = vmatpush3.msra.mxu1 %v8508_v32  ;;  %6654 = vmatprep.mubr.msk.f32.mxu1 %vm7030_vm5, %v8800_v11  ;;  %v4624_v34 = vadd.f32 %v4604_v58, %v4432_v38 }
 0x526   :  { %6634 = vmatmul.mubr.f32.vlgmr.msra.gmra.mxu0 %v8538_v47  ;;  %6664 = vmatprep.subr.mxu1 %v8800_v11 }
 0x527   :  { %6644 = vmatpush3.msk.msra.mxu0 %vm772_vm0, %v8512_v6  ;;  %6647 = vmatprep.mubr.msk.f32.mxu0 %vm7030_vm5, %v8800_v11  ;;  %v4410_v6 = vpop.xlane.xlu0 %4409 }
 0x528   :  { %6645 = vmatprep.subr.mxu0 %v8800_v11  ;;  %v4590_v39 = vrot.slane %v4410_v6, %v8194_v33  ;;  %v4427_v54 = vpop.xlane.xlu1 %4426 }
 0x529   :  { %6646 = vmatpush3.msra.mxu0 %v8525_v23 }
 0x52a   :  { %6657 = vmatprep.subr.mxu0 %v8800_v11  ;;  %v4595_v26 = vsel %vm2925_vm8, %v4594_v45, %v4590_v39 }
 0x52b   :  { %v4429_v4 = vpop.xlane.xlu0 %4428  ;;  %v4622_v1 = vadd.f32 %v4595_v26, %v4427_v54 }
 0x52c   :  { %v4623_v53 = vadd.f32 %v4604_v58, %v4429_v4 }
 0x52f   :  { %v4424_v29 = vpop.xlane.xlu0 %4423 }
 0x530   :  { %v4621_v10 = vadd.f32 %v4595_v26, %v4424_v29  ;;  %v5293_v29 = vmul.f32 %v8321_v2, %v8412_v28  ;;  %v5343_v28 = vmul.f32 %v8321_v2, %v8433_v9 }
 0x532   :  { %v5297_v26 = vadd.f32 %v8343_v49, %v5293_v29 }
 0x55b   :  { %v3983_v51 = vpop.f32.mrf.mxu1 }
 0x55c   :  { %v5987_v61 = vrot.slane %v3983_v51, 7 }
 0x55d   :  { %v6614_v32 = vpop.f32.mrf.mxu1 }
 0x560   :  { %v3907_v20 = vpop.f32.mrf.mxu0 }
 0x561   :  { %v5988_v0 = vsel %vm2936_vm4, %v5987_v61, %v3907_v20 }
 0x562   :  { %v6607_v37 = vpop.f32.mrf.mxu0 }
 0x5da   :  { %v4155_v52 = vpop.f32.mrf.mxu1 }
 0x5db   :  { %v6006_v36 = vrot.slane %v4155_v52, 7 }
 0x5dc   :  { %v6628_v14 = vpop.f32.mrf.mxu1 }
 0x5de   :  { %v4069_v23 = vpop.f32.mrf.mxu0 }
 0x5df   :  { %v6007_v48 = vsel %vm2936_vm4, %v6006_v36, %v4069_v23 }
 0x5e0   :  { %v6017_v35 = vrot.slane %v6007_v48, 6  ;;  %v6621_v3 = vpop.f32.mrf.mxu0 }
 0x5e2   :  { %v6642_v18 = vpop.f32.mrf.mxu1  ;;  %v8610_v46 = vsel %vm5222_vm7, %v5988_v0, %v6017_v35 }
 0x5e3   :  { %v4628_v63 = vmul.f32 2.0, %v6642_v18 }
 0x5e4   :  { %v4574_v16 = vpop.f32.mrf.mxu1 }
 0x5e5   :  { %v4632_v5 = vsub.f32 %v4624_v34, %v4628_v63  ;;  %v4627_v31 = vmul.f32 2.0, %v4574_v16 }
 0x5e6   :  { %v6635_v56 = vpop.f32.mrf.mxu0 }
 0x5e7   :  { %v4636_v50 = vmax.f32 %v4632_v5, 0.0  ;;  %v4631_v22 = vsub.f32 %v4623_v53, %v4627_v31  ;;  %v4626_v12 = vmul.f32 2.0, %v6635_v56  ;;  %v5292_v5 = vmul.f32 %v8321_v2, %v8409_v13 }
 0x5e8   :  { %v4499_v7 = vpop.f32.mrf.mxu0  ;;  %v5291_v31 = vmul.f32 %v8321_v2, %v8418_v25 }
 0x5e9   :  { %v4640_v55 = vadd.f32 1e-06, %v4636_v50  ;;  %v4635_v57 = vmax.f32 %v4631_v22, 0.0  ;;  %v4630_v41 = vsub.f32 %v4622_v1, %v4626_v12  ;;  %v4625_v19 = vmul.f32 2.0, %v4499_v7 }
 0x5ea   :  { %v5296_v1 = vadd.f32 %v8343_v49, %v5292_v5  ;;  %v5295_v50 = vadd.f32 %v8343_v49, %v5291_v31  ;;  %v5290_v22 = vmul.f32 %v8321_v2, %v8424_v24  ;;  %v8628_v12 = vmax.f32 %v5297_v26, 0.0 }
 0x5eb   :  { %6776 = vrsqrt.f32 %v4640_v55  ;;  %v4639_v51 = vadd.f32 1e-06, %v4635_v57  ;;  %v4634_v32 = vmax.f32 %v4630_v41, 0.0  ;;  %v4629_v61 = vsub.f32 %v4621_v10, %v4625_v19 }
 0x5ec   :  { %vm4664_vm3 = vcmp.eq.f32.partialorder %v4640_v55, inf  ;;  %v4667_v6 = vand.u32 2147483648, %v4640_v55  ;;  %vm4666_vm6 = vcmp.eq.f32.partialorder %v4640_v55, 0.0  ;;  %v8631_v57 = vmax.f32 %v5296_v1, 0.0 }
 0x5ed   :  { %6778 = vrsqrt.f32 %v4639_v51  ;;  %v4638_v20 = vadd.f32 1e-06, %v4634_v32  ;;  %v4633_v0 = vmax.f32 %v4629_v61, 0.0  ;;  %vm4657_vm9 = vcmp.eq.f32.partialorder %v4639_v51, inf }
 0x5ee   :  { %v4660_v38 = vand.u32 2147483648, %v4639_v51  ;;  %vm4659_vm10 = vcmp.eq.f32.partialorder %v4639_v51, 0.0  ;;  %v8633_v41 = vmax.f32 %v5295_v50, 0.0  ;;  %v5294_v24 = vadd.f32 %v8343_v49, %v5290_v22 }
 0x5ef   :  { %6780 = vrsqrt.f32 %v4638_v20  ;;  %v4637_v37 = vadd.f32 1e-06, %v4633_v0  ;;  %vm4650_vm11 = vcmp.eq.f32.partialorder %v4638_v20, inf  ;;  %vm4652_vm12 = vcmp.eq.f32.partialorder %v4638_v20, 0.0 }
 0x5f0   :  { %v4653_v3 = vand.u32 2147483648, %v4638_v20  ;;  %v5355_v9 = vmul.f32 %v8628_v12, %v8628_v12  ;;  %v5341_v32 = vmul.f32 %v8321_v2, %v8439_v17  ;;  %v5342_v0 = vmul.f32 %v8321_v2, %v8436_v43 }
 0x5f1   :  { %6782 = vrsqrt.f32 %v4637_v37  ;;  %vm4643_vm13 = vcmp.eq.f32.partialorder %v4637_v37, inf  ;;  %v4646_v63 = vand.u32 2147483648, %v4637_v37  ;;  %vm4645_vm14 = vcmp.eq.f32.partialorder %v4637_v37, 0.0 }
 0x5f2   :  { %v5353_v17 = vmul.f32 %v8633_v41, %v8633_v41 }
 0x5f8   :  { %v6777_v30 = vpop.eup %6776 }
 0x5f9   :  { %v4663_v27 = vmul.f32 %v6777_v30, %v4640_v55 }
 0x5fa   :  { %v6779_v59 = vpop.eup %6778 }
 0x5fb   :  { %v4656_v52 = vmul.f32 %v6779_v59, %v4639_v51  ;;  %v4665_v14 = vsel %vm4664_vm3, %v4640_v55, %v4663_v27  ;;  %v5354_v59 = vmul.f32 %v8631_v57, %v8631_v57 }
 0x5fc   :  { %v6781_v36 = vpop.eup %6780  ;;  %v4668_v40 = vsel %vm4666_vm6, %v4667_v6, %v4665_v14  ;;  %v8647_v6 = vmax.f32 %v5294_v24, 0.0 }
 0x5fd   :  { %v4649_v23 = vmul.f32 %v6781_v36, %v4638_v20  ;;  %v4672_v4 = vadd.f32 1.0, %v4668_v40  ;;  %v4658_v48 = vsel %vm4657_vm9, %v4639_v51, %v4656_v52  ;;  %v5347_v51 = vadd.f32 %v8343_v49, %v5343_v28 }
 0x5fe   :  { %v6783_v8 = vpop.eup %6782  ;;  %v4661_v35 = vsel %vm4659_vm10, %v4660_v38, %v4658_v48  ;;  %v5363_v52 = vsel %vm5222_vm7, %v5355_v9, 0.0  ;;  %v5345_v36 = vadd.f32 %v8343_v49, %v5341_v32  ;;  %v5346_v38 = vadd.f32 %v8343_v49, %v5342_v0 }
 0x5ff   :  { %v4642_v39 = vmul.f32 %v6783_v8, %v4637_v37  ;;  %6784 = vrcp.f32 %v4672_v4  ;;  %v4671_v58 = vadd.f32 1.0, %v4661_v35  ;;  %v4651_v18 = vsel %vm4650_vm11, %v4638_v20, %v4649_v23 }
 0x600   :  { %v4654_v34 = vsel %vm4652_vm12, %v4653_v3, %v4651_v18  ;;  %v8652_v14 = vmax.f32 %v5347_v51, 0.0  ;;  %v5340_v23 = vmul.f32 %v8321_v2, %v8442_v15  ;;  %v5358_v8 = vsel %vm5222_vm7, %v5353_v17, 0.0 }
 0x601   :  { %6786 = vrcp.f32 %v4671_v58  ;;  %v4670_v45 = vadd.f32 1.0, %v4654_v34  ;;  %v4644_v54 = vsel %vm4643_vm13, %v4637_v37, %v4642_v39  ;;  %v5352_v35 = vmul.f32 %v8647_v6, %v8647_v6 }
 0x602   :  { %v4647_v16 = vsel %vm4645_vm14, %v4646_v63, %v4644_v54  ;;  %v5369_v3 = vmul.f32 %v8652_v14, %v8652_v14  ;;  %v8663_v39 = vmax.f32 %v5345_v36, 0.0  ;;  %v8665_v34 = vmax.f32 %v5346_v38, 0.0 }
 0x603   :  { %6788 = vrcp.f32 %v4670_v45  ;;  %v4669_v53 = vadd.f32 1.0, %v4647_v16  ;;  %v5344_v2 = vadd.f32 %v8343_v49, %v5340_v23  ;;  %vm5630_vm13 = vcmask 74752  }
 0x604   :  { %v5377_v45 = vsel %vm5222_vm7, %v5369_v3, 0.0  ;;  %v5367_v54 = vmul.f32 %v8663_v39, %v8663_v39  ;;  %vm5628_vm14 = vcmask 80896  }
 0x605   :  { %6790 = vrcp.f32 %v4669_v53  ;;  %v5368_v53 = vmul.f32 %v8665_v34, %v8665_v34  ;;  %v8674_v29 = vmax.f32 %v5344_v2, 0.0 }
 0x606   :  { %v5372_v5 = vsel %vm5222_vm7, %v5367_v54, 0.0 }
 0x607   :  { %v5366_v31 = vmul.f32 %v8674_v29, %v8674_v29 }
 0x60c   :  { %v6785_v56 = vpop.eup %6784 }
 0x60d   :  { %v4693_v13 = vsel %vm4683_vm15, %v6785_v56, 0.0 }
 0x60e   :  { %v6787_v25 = vpop.eup %6786  ;;  %4707 = vadd.xlane.f32.xlu1 %v4693_v13 }
 0x60f   :  { %v4692_v10 = vsel %vm4681_vm1, %v6787_v25, 0.0 }
 0x610   :  { %v6789_v7 = vpop.eup %6788  ;;  %4705 = vadd.xlane.f32.xlu0 %v4692_v10  ;;  %v4694_v55 = vadd.f32 %v4693_v13, %v4692_v10 }
 0x611   :  { %v4684_v19 = vsel %vm4683_vm15, %v6789_v7, 0.0 }
 0x612   :  { %v6791_v61 = vpop.eup %6790  ;;  %v4695_v20 = vrot.slane %v4694_v55, 4  ;;  %4703 = vadd.xlane.f32.xlu1 %v4684_v19 }
 0x613   :  { %v4682_v37 = vsel %vm4681_vm1, %v6791_v61, 0.0 }
 0x614   :  { %v4696_v30 = vadd.f32 %v4695_v20, %v4694_v55  ;;  %4701 = vadd.xlane.f32.xlu0 %v4682_v37  ;;  %v4685_v27 = vadd.f32 %v4684_v19, %v4682_v37 }
 0x616   :  { %v4697_v43 = vrot.slane %v4696_v30, 2  ;;  %v4686_v40 = vrot.slane %v4685_v27, 4  ;;  %5364 = vadd.xlane.f32.xlu1 %v5363_v52 }
 0x618   :  { %v4698_v4 = vadd.f32 %v4697_v43, %v4696_v30  ;;  %v4687_v48 = vadd.f32 %v4686_v40, %v4685_v27  ;;  %5361 = vadd.xlane.f32.xlu0 %v5354_v59 }
 0x61a   :  { %v4699_v58 = vrot.slane %v4698_v4, 1  ;;  %v4688_v18 = vrot.slane %v4687_v48, 2  ;;  %5359 = vadd.xlane.f32.xlu1 %v5358_v8 }
 0x61c   :  { %v4700_v15 = vadd.f32 %v4699_v58, %v4698_v4  ;;  %v4689_v63 = vadd.f32 %v4688_v18, %v4687_v48  ;;  %5356 = vadd.xlane.f32.xlu0 %v5352_v35 }
 0x61e   :  { %v4690_v16 = vrot.slane %v4689_v63, 1  ;;  %5378 = vadd.xlane.f32.xlu1 %v5377_v45  ;;  %6655 = vmatmul.mubr.msk.f32.vlgmr.msra.gmra.mxu1 %vm4681_vm1, %v4700_v15 }
 0x61f   :  { %6665 = vmatpush3.msk.msra.mxu1 %vm772_vm0, %v8527_v62  ;;  %6668 = vmatprep.mubr.msk.f32.mxu1 %vm7030_vm5, %v8800_v11 }
 0x620   :  { %v4691_v49 = vadd.f32 %v4690_v16, %v4689_v63  ;;  %6666 = vmatprep.subr.mxu1 %v8800_v11  ;;  %5375 = vadd.xlane.f32.xlu0 %v5368_v53 }
 0x621   :  { %6667 = vmatpush3.msra.mxu1 %v8540_v60 }
 0x622   :  { %6678 = vmatprep.subr.mxu1 %v8628_v12  ;;  %5373 = vadd.xlane.f32.xlu1 %v5372_v5 }
 0x623   :  { %6648 = vmatmul.mubr.msk.f32.vlgmr.msra.gmra.mxu0 %vm4681_vm1, %v4691_v49 }
 0x624   :  { %6658 = vmatpush3.msk.msra.mxu0 %vm772_vm0, %v8538_v47  ;;  %5370 = vadd.xlane.f32.xlu0 %v5366_v31 }
 0x625   :  { %6659 = vmatprep.subr.mxu0 %v8800_v11  ;;  %6661 = vmatprep.mubr.msk.f32.mxu0 %vm7030_vm5, %v8800_v11 }
 0x626   :  { %6660 = vmatpush3.msra.mxu0 %v8549_v44 }
 0x627   :  { %6671 = vmatprep.subr.mxu0 %v8633_v41 }
 0x697   :  { %v4708_v62 = vpop.xlane.xlu1 %4707 }
 0x698   :  { %v4956_v26 = vrot.slane %v4708_v62, %v8187_v42 }
 0x699   :  { %v4706_v60 = vpop.xlane.xlu0 %4705 }
 0x69a   :  { %v4952_v56 = vrot.slane %v4706_v60, %v8194_v33 }
 0x69b   :  { %v4704_v1 = vpop.xlane.xlu1 %4703 }
 0x69c   :  { %v4957_v50 = vsel %vm2925_vm8, %v4956_v26, %v4952_v56  ;;  %v4870_v22 = vrot.slane %v4704_v1, %v8187_v42 }
 0x69d   :  { %6669 = vmatmul.mubr.msk.f32.vlgmr.msra.gmra.mxu1 %vm4681_vm1, %v4957_v50  ;;  %v4702_v47 = vpop.xlane.xlu0 %4701 }
 0x69e   :  { %6679 = vmatpush3.xpose.msra.mxu1 %v8628_v12  ;;  %v4866_v44 = vrot.slane %v4702_v47, %v8194_v33  ;;  %6682 = vmatprep.mubr.f32.mxu1 %v8665_v34 }
 0x69f   :  { %6680 = vmatprep.subr.mxu1 %v8631_v57 }
 0x6a0   :  { %v4871_v28 = vsel %vm2925_vm8, %v4870_v22, %v4866_v44 }
 0x6a1   :  { %6662 = vmatmul.mubr.msk.f32.vlgmr.msra.gmra.mxu0 %vm4681_vm1, %v4871_v28  ;;  %v5362_v24 = vpop.xlane.xlu0 %5361 }
 0x6a2   :  { %6672 = vmatpush3.xpose.msra.mxu0 %v8633_v41  ;;  %6681 = vmatpush3.xpose.msra.mxu1 %v8631_v57  ;;  %v5546_v61 = vrot.slane %v5362_v24, %v8194_v33 }
 0x6a3   :  { %6673 = vmatprep.subr.mxu0 %v8647_v6  ;;  %6675 = vmatprep.mubr.f32.mxu0 %v8674_v29 }
 0x6a4   :  { %6692 = vmatprep.subr.mxu1 %v8800_v11 }
 0x6a5   :  { %6683 = vmatmul.mubr.f32.vlgmr.msra.gmra.mxu1 %v8652_v14 }
 0x6a6   :  { %6674 = vmatpush3.xpose.msra.mxu0 %v8647_v6  ;;  %6693 = vmatpush3.msk.msra.mxu1 %vm5222_vm7, %v8628_v12 }
 0x6a7   :  { %6694 = vmatprep.subr.mxu1 %v8800_v11  ;;  %6685 = vmatprep.subr.mxu0 %v8800_v11 }
 0x6a8   :  { %6695 = vmatpush3.msra.mxu1 %v8631_v57  ;;  %6696 = vmatprep.mubr.msk.f32.mxu1 %vm7030_vm5, %v8800_v11  ;;  %v5365_v57 = vpop.xlane.xlu1 %5364 }
 0x6a9   :  { %6676 = vmatmul.mubr.f32.vlgmr.msra.gmra.mxu0 %v8663_v39  ;;  %6706 = vmatprep.subr.mxu1 %v8800_v11  ;;  %v5550_v27 = vrot.slane %v5365_v57, %v8187_v42 }
 0x6aa   :  { %6686 = vmatpush3.msk.msra.mxu0 %vm5222_vm7, %v8633_v41  ;;  %6689 = vmatprep.mubr.msk.f32.mxu0 %vm7030_vm5, %v8800_v11  ;;  %v5357_v41 = vpop.xlane.xlu0 %5356 }
 0x6ab   :  { %6687 = vmatprep.subr.mxu0 %v8800_v11  ;;  %v5537_v52 = vrot.slane %v5357_v41, %v8194_v33  ;;  %v5551_v17 = vsel %vm2925_vm8, %v5550_v27, %v5546_v61 }
 0x6ac   :  { %6688 = vmatpush3.msra.mxu0 %v8647_v6  ;;  %v5360_v19 = vpop.xlane.xlu1 %5359 }
 0x6ad   :  { %6699 = vmatprep.subr.mxu0 %v8800_v11  ;;  %v5541_v23 = vrot.slane %v5360_v19, %v8187_v42 }
 0x6ae   :  { %v5376_v37 = vpop.xlane.xlu0 %5375 }
 0x6af   :  { %v5570_v8 = vadd.f32 %v5551_v17, %v5376_v37  ;;  %v5542_v18 = vsel %vm2925_vm8, %v5541_v23, %v5537_v52 }
 0x6b0   :  { %v5379_v20 = vpop.xlane.xlu1 %5378 }
 0x6b1   :  { %v5571_v40 = vadd.f32 %v5551_v17, %v5379_v20 }
 0x6b2   :  { %v5371_v35 = vpop.xlane.xlu0 %5370 }
 0x6b3   :  { %v5568_v16 = vadd.f32 %v5542_v18, %v5371_v35 }
 0x6b4   :  { %v5374_v4 = vpop.xlane.xlu1 %5373 }
 0x6b5   :  { %v5569_v15 = vadd.f32 %v5542_v18, %v5374_v4 }
 0x6de   :  { %v4857_v13 = vpop.f32.mrf.mxu1 }
 0x6df   :  { %v5992_v25 = vrot.slane %v4857_v13, 7 }
 0x6e0   :  { %v6656_v12 = vpop.f32.mrf.mxu1 }
 0x6e3   :  { %v4781_v10 = vpop.f32.mrf.mxu0 }
 0x6e4   :  { %v5993_v7 = vsel %vm2936_vm4, %v5992_v25, %v4781_v10 }
 0x6e5   :  { %v6649_v55 = vpop.f32.mrf.mxu0 }
 0x75d   :  { %v5029_v9 = vpop.f32.mrf.mxu1 }
 0x75e   :  { %v6010_v32 = vrot.slane %v5029_v9, 7 }
 0x75f   :  { %v6670_v51 = vpop.f32.mrf.mxu1 }
 0x761   :  { %v4943_v0 = vpop.f32.mrf.mxu0 }
 0x762   :  { %v6011_v30 = vsel %vm2936_vm4, %v6010_v32, %v4943_v0 }
 0x763   :  { %v6018_v59 = vrot.slane %v6011_v30, 6  ;;  %v6663_v6 = vpop.f32.mrf.mxu0 }
 0x765   :  { %v6684_v36 = vpop.f32.mrf.mxu1  ;;  %v8735_v43 = vsel %vm5222_vm7, %v5993_v7, %v6018_v59 }
 0x766   :  { %v5575_v38 = vmul.f32 2.0, %v6684_v36 }
 0x767   :  { %v5521_v48 = vpop.f32.mrf.mxu1 }
 0x768   :  { %v5579_v3 = vsub.f32 %v5571_v40, %v5575_v38  ;;  %v5574_v58 = vmul.f32 2.0, %v5521_v48 }
 0x769   :  { %v6677_v2 = vpop.f32.mrf.mxu0 }
 0x76a   :  { %v5583_v63 = vmax.f32 %v5579_v3, 0.0  ;;  %v5578_v45 = vsub.f32 %v5570_v8, %v5574_v58  ;;  %v5573_v54 = vmul.f32 2.0, %v6677_v2 }
 0x76b   :  { %v5446_v53 = vpop.f32.mrf.mxu0 }
 0x76c   :  { %v5587_v49 = vadd.f32 1e-06, %v5583_v63  ;;  %v5582_v5 = vmax.f32 %v5578_v45, 0.0  ;;  %v5577_v31 = vsub.f32 %v5569_v15, %v5573_v54  ;;  %v5572_v62 = vmul.f32 2.0, %v5446_v53 }
 0x76e   :  { %6792 = vrsqrt.f32 %v5587_v49  ;;  %v5586_v60 = vadd.f32 1e-06, %v5582_v5  ;;  %v5581_v26 = vmax.f32 %v5577_v31, 0.0  ;;  %v5576_v56 = vsub.f32 %v5568_v16, %v5572_v62  ;;  %v6059_v31 = vld [vmem:[#allocation10 + $0xf8] sm:$0xff] }
 0x76f   :  { %vm5611_vm0 = vcmp.eq.f32.partialorder %v5587_v49, inf  ;;  %v5614_v13 = vand.u32 2147483648, %v5587_v49  ;;  %vm5613_vm2 = vcmp.eq.f32.partialorder %v5587_v49, 0.0 }
 0x770   :  { %6794 = vrsqrt.f32 %v5586_v60  ;;  %v5585_v1 = vadd.f32 1e-06, %v5581_v26  ;;  %v5580_v50 = vmax.f32 %v5576_v56, 0.0  ;;  %vm5604_vm3 = vcmp.eq.f32.partialorder %v5586_v60, inf }
 0x771   :  { %v5607_v55 = vand.u32 2147483648, %v5586_v60  ;;  %vm5606_vm6 = vcmp.eq.f32.partialorder %v5586_v60, 0.0 }
 0x772   :  { %6796 = vrsqrt.f32 %v5585_v1  ;;  %v5584_v47 = vadd.f32 1e-06, %v5580_v50  ;;  %vm5597_vm9 = vcmp.eq.f32.partialorder %v5585_v1, inf  ;;  %vm5599_vm10 = vcmp.eq.f32.partialorder %v5585_v1, 0.0  ;;  %v6121_v50 = vld [vmem:[#allocation10 + $0x2e8] sm:$0xff] }
 0x773   :  { %v5600_v51 = vand.u32 2147483648, %v5585_v1 }
 0x774   :  { %6798 = vrsqrt.f32 %v5584_v47  ;;  %vm5590_vm11 = vcmp.eq.f32.partialorder %v5584_v47, inf  ;;  %v5593_v37 = vand.u32 2147483648, %v5584_v47  ;;  %vm5592_vm12 = vcmp.eq.f32.partialorder %v5584_v47, 0.0 }
 0x77b   :  { %v6793_v22 = vpop.eup %6792 }
 0x77c   :  { %v5610_v44 = vmul.f32 %v6793_v22, %v5587_v49 }
 0x77d   :  { %v6795_v28 = vpop.eup %6794 }
 0x77e   :  { %v5603_v12 = vmul.f32 %v6795_v28, %v5586_v60  ;;  %v5612_v25 = vsel %vm5611_vm0, %v5587_v49, %v5610_v44  ;;  %v6119_v44 = vld [vmem:[#allocation10 + $0x2d8] sm:$0xff]  ;;  %v6058_v28 = vld [vmem:[#allocation10 + $0xf0] sm:$0xff] }
 0x77f   :  { %v6797_v10 = vpop.eup %6796  ;;  %v5615_v7 = vsel %vm5613_vm2, %v5614_v13, %v5612_v25  ;;  %v6118_v25 = vld [vmem:[#allocation10 + $0x2d0] sm:$0xff] }
 0x780   :  { %v5596_v57 = vmul.f32 %v6797_v10, %v5585_v1  ;;  %v5619_v24 = vadd.f32 1.0, %v5615_v7  ;;  %v5605_v19 = vsel %vm5604_vm3, %v5586_v60, %v5603_v12  ;;  %v6057_v12 = vld [vmem:[#allocation10 + $0xe8] sm:$0xff]  ;;  %v6056_v10 = vld [vmem:[#allocation10 + $0xe0] sm:$0xff] }
 0x781   :  { %v6799_v41 = vpop.eup %6798  ;;  %v5608_v9 = vsel %vm5606_vm6, %v5607_v55, %v5605_v19  ;;  %v6117_v7 = vld [vmem:[#allocation10 + $0x2c8] sm:$0xff]  ;;  %v6116_v55 = vld [vmem:[#allocation10 + $0x2c0] sm:$0xff]  ;;  %v6114_v19 = vld [vmem:[#allocation10 + $0x2b0] sm:$0xff] }
 0x782   :  { %v5589_v32 = vmul.f32 %v6799_v41, %v5584_v47  ;;  %6800 = vrcp.f32 %v5619_v24  ;;  %v5618_v61 = vadd.f32 1.0, %v5608_v9  ;;  %v5598_v20 = vsel %vm5597_vm9, %v5585_v1, %v5596_v57  ;;  %v6122_v1 = vld [vmem:[#allocation10 + $0x2f0] sm:$0xff]  ;;  %v6115_v57 = vld [vmem:[#allocation10 + $0x2b8] sm:$0xff]  ;;  %v6053_v24 = vld [vmem:[#allocation10 + $0xc8] sm:$0xff] }
 0x783   :  { %v5601_v0 = vsel %vm5599_vm10, %v5600_v51, %v5598_v20  ;;  %v6052_v41 = vld [vmem:[#allocation10 + $0xc0] sm:$0xff]  ;;  %v6113_v9 = vld [vmem:[#allocation10 + $0x2a8] sm:$0xff]  ;;  %v6051_v51 = vld [vmem:[#allocation10 + $0xb8] sm:$0xff] }
 0x784   :  { %6802 = vrcp.f32 %v5618_v61  ;;  %v5617_v30 = vadd.f32 1.0, %v5601_v0  ;;  %v5591_v27 = vsel %vm5590_vm11, %v5584_v47, %v5589_v32  ;;  %v6112_v32 = vld [vmem:[#allocation10 + $0x2a0] sm:$0xff]  ;;  %v6111_v61 = vld [vmem:[#allocation10 + $0x298] sm:$0xff]  ;;  %v6049_v20 = vld [vmem:[#allocation10 + $0xa8] sm:$0xff] }
 0x785   :  { %v5594_v59 = vsel %vm5592_vm12, %v5593_v37, %v5591_v27  ;;  %v6110_v0 = vld [vmem:[#allocation10 + $0x290] sm:$0xff]  ;;  %v6048_v37 = vld [vmem:[#allocation10 + $0xa0] sm:$0xff]  ;;  %v6047_v27 = vld [vmem:[#allocation10 + $0x98] sm:$0xff] }
 0x786   :  { %6804 = vrcp.f32 %v5617_v30  ;;  %v5616_v6 = vadd.f32 1.0, %v5594_v59  ;;  %v6109_v30 = vld [vmem:[#allocation10 + $0x288] sm:$0xff]  ;;  %v6108_v59 = vld [vmem:[#allocation10 + $0x280] sm:$0xff] }
 0x788   :  { %6806 = vrcp.f32 %v5616_v6  ;;  %v6046_v6 = vld [vmem:[#allocation10 + $0x90] sm:$0xff] }
 0x78f   :  { %v6801_v52 = vpop.eup %6800 }
 0x790   :  { %v5640_v17 = vsel %vm5630_vm13, %v6801_v52, 0.0  ;;  %v6107_v52 = vld [vmem:[#allocation10 + $0x278] sm:$0xff] }
 0x791   :  { %v6803_v36 = vpop.eup %6802  ;;  %5654 = vadd.xlane.f32.xlu1 %v5640_v17 }
 0x792   :  { %v5639_v40 = vsel %vm5628_vm14, %v6803_v36, 0.0  ;;  %v6106_v36 = vld [vmem:[#allocation10 + $0x270] sm:$0xff] }
 0x793   :  { %v6805_v38 = vpop.eup %6804  ;;  %5652 = vadd.xlane.f32.xlu0 %v5639_v40  ;;  %v5641_v23 = vadd.f32 %v5640_v17, %v5639_v40  ;;  %v6045_v17 = vld [vmem:[#allocation10 + $0x88] sm:$0xff]  ;;  %v6044_v40 = vld [vmem:[#allocation10 + $0x80] sm:$0xff] }
 0x794   :  { %v5631_v4 = vsel %vm5630_vm13, %v6805_v38, 0.0  ;;  %v6105_v38 = vld [vmem:[#allocation10 + $0x268] sm:$0xff] }
 0x795   :  { %v6807_v48 = vpop.eup %6806  ;;  %v5642_v8 = vrot.slane %v5641_v23, 4  ;;  %5650 = vadd.xlane.f32.xlu1 %v5631_v4 }
 0x796   :  { %v5629_v35 = vsel %vm5628_vm14, %v6807_v48, 0.0  ;;  %v6042_v48 = vld [vmem:[#allocation10 + $0x70] sm:$0xff] }
 0x797   :  { %v5643_v3 = vadd.f32 %v5642_v8, %v5641_v23  ;;  %5648 = vadd.xlane.f32.xlu0 %v5629_v35  ;;  %v5632_v58 = vadd.f32 %v5631_v4, %v5629_v35  ;;  %v6043_v23 = vld [vmem:[#allocation10 + $0x78] sm:$0xff]  ;;  %v6104_v4 = vld [vmem:[#allocation10 + $0x260] sm:$0xff]  ;;  %v6041_v35 = vld [vmem:[#allocation10 + $0x68] sm:$0xff] }
 0x798   :  { %v6103_v8 = vld [vmem:[#allocation10 + $0x258] sm:$0xff] }
 0x799   :  { %v5644_v18 = vrot.slane %v5643_v3, 2  ;;  %v5633_v2 = vrot.slane %v5632_v58, 4 }
 0x79b   :  { %v5645_v15 = vadd.f32 %v5644_v18, %v5643_v3  ;;  %v5634_v63 = vadd.f32 %v5633_v2, %v5632_v58  ;;  %v6102_v3 = vld [vmem:[#allocation10 + $0x250] sm:$0xff]  ;;  %v6040_v58 = vld [vmem:[#allocation10 + $0x60] sm:$0xff]  ;;  %v6101_v18 = vld [vmem:[#allocation10 + $0x248] sm:$0xff] }
 0x79c   :  { %v6039_v2 = vld [vmem:[#allocation10 + $0x58] sm:$0xff] }
 0x79d   :  { %v5646_v45 = vrot.slane %v5645_v15, 1  ;;  %v5635_v54 = vrot.slane %v5634_v63, 2 }
 0x79f   :  { %v5647_v16 = vadd.f32 %v5646_v45, %v5645_v15  ;;  %v5636_v53 = vadd.f32 %v5635_v54, %v5634_v63  ;;  %v6100_v15 = vld [vmem:[#allocation10 + $0x240] sm:$0xff]  ;;  %v6038_v63 = vld [vmem:[#allocation10 + $0x50] sm:$0xff]  ;;  %v6099_v45 = vld [vmem:[#allocation10 + $0x238] sm:$0xff] }
 0x7a0   :  { %v6037_v54 = vld [vmem:[#allocation10 + $0x48] sm:$0xff] }
 0x7a1   :  { %v5637_v49 = vrot.slane %v5636_v53, 1  ;;  %6697 = vmatmul.mubr.msk.f32.vlgmr.msra.gmra.mxu1 %vm5628_vm14, %v5647_v16  ;;  %v6098_v16 = vld [vmem:[#allocation10 + $0x230] sm:$0xff] }
 0x7a2   :  { %6707 = vmatpush3.msk.msra.mxu1 %vm5222_vm7, %v8652_v14  ;;  %6710 = vmatprep.mubr.msk.f32.mxu1 %vm7030_vm5, %v8800_v11  ;;  %v6123_v14 = vld [vmem:[#allocation10 + $0x2f8] sm:$0xff] }
 0x7a3   :  { %v5638_v5 = vadd.f32 %v5637_v49, %v5636_v53  ;;  %6708 = vmatprep.subr.mxu1 %v8800_v11  ;;  %v6036_v53 = vld [vmem:[#allocation10 + $0x40] sm:$0xff]  ;;  %v6097_v49 = vld [vmem:[#allocation10 + $0x228] sm:$0xff] }
 0x7a4   :  { %6709 = vmatpush3.msra.mxu1 %v8665_v34 }
 0x7a5   :  { %6690 = vmatmul.mubr.msk.f32.vlgmr.msra.gmra.mxu0 %vm5628_vm14, %v5638_v5  ;;  %6239 = vmatprep.subr.mxu1 %v6123_v14  ;;  %v6035_v5 = vld [vmem:[#allocation10 + $0x38] sm:$0xff]  ;;  %v6034_v14 = vld [vmem:[#allocation10 + $0x30] sm:$0xff] }
 0x7a6   :  { %6700 = vmatpush3.msk.msra.mxu0 %vm5222_vm7, %v8663_v39  ;;  %6703 = vmatprep.mubr.msk.f32.mxu0 %vm7030_vm5, %v8800_v11  ;;  %vm6330_vm5 = vcmask 1043458  }
 0x7a7   :  { %6701 = vmatprep.subr.mxu0 %v8800_v11  ;;  %v6120_v11 = vld [vmem:[#allocation10 + $0x2e0] sm:$0xff] }
 0x7a8   :  { %6702 = vmatpush3.msra.mxu0 %v8674_v29 }
 0x7a9   :  { %6168 = vmatprep.subr.mxu0 %v6059_v31  ;;  %v6096_v31 = vld [vmem:[#allocation10 + $0x220] sm:$0xff] }
 0x81a   :  { %v5655_v62 = vpop.xlane.xlu1 %5654 }
 0x81b   :  { %v5903_v34 = vrot.slane %v5655_v62, %v8187_v42  ;;  %v6095_v62 = vld [vmem:[#allocation10 + $0x218] sm:$0xff] }
 0x81c   :  { %v5653_v60 = vpop.xlane.xlu0 %5652 }
 0x81d   :  { %v5899_v26 = vrot.slane %v5653_v60, %v8194_v33  ;;  %v6033_v60 = vld [vmem:[#allocation10 + $0x28] sm:$0xff] }
 0x81e   :  { %v5651_v56 = vpop.xlane.xlu1 %5650 }
 0x81f   :  { %v5904_v39 = vsel %vm2925_vm8, %v5903_v34, %v5899_v26  ;;  %v5817_v29 = vrot.slane %v5651_v56, %v8187_v42  ;;  %v6055_v42 = vld [vmem:[#allocation10 + $0xd8] sm:$0xff]  ;;  %v6094_v34 = vld [vmem:[#allocation10 + $0x210] sm:$0xff]  ;;  %v6032_v26 = vld [vmem:[#allocation10 + $0x20] sm:$0xff] }
 0x820   :  { %6711 = vmatmul.mubr.msk.f32.vlgmr.msra.gmra.mxu1 %vm5628_vm14, %v5904_v39  ;;  %v5649_v47 = vpop.xlane.xlu0 %5648  ;;  %v6093_v56 = vld [vmem:[#allocation10 + $0x208] sm:$0xff]  ;;  %v6092_v39 = vld [vmem:[#allocation10 + $0x200] sm:$0xff] }
 0x821   :  { %v5813_v22 = vrot.slane %v5649_v47, %v8194_v33  ;;  %6240 = vmatpush1.msra.mxu1 %v6122_v1  ;;  %v6054_v33 = vld [vmem:[#allocation10 + $0xd0] sm:$0xff]  ;;  %v6031_v1 = vld [vmem:[#allocation10 + $0x18] sm:$0xff] }
 0x822   :  { %6241 = vmatprep.subr.mxu1 %v6121_v50  ;;  %v6030_v50 = vld [vmem:[#allocation10 + $0x10] sm:$0xff]  ;;  %v6155_v47 = vld [vmem:[#allocation10 + $0x3f8] sm:$0xff] }
 0x823   :  { %v5818_v13 = vsel %vm2925_vm8, %v5817_v29, %v5813_v22  ;;  %6242 = vmatpush1.msra.mxu1 %v6120_v11  ;;  %v6029_v11 = vld [vmem:[#allocation10 + $0x8] sm:$0xff]  ;;  %v6154_v29 = vld [vmem:[#allocation10 + $0x3f0] sm:$0xff]  ;;  %v6028_v22 = vld [vmem:[#allocation10] sm:$0xff]  ;;  %vm6345_vm8 = vcmask 1024  }
 0x824   :  { %6704 = vmatmul.mubr.msk.f32.vlgmr.msra.gmra.mxu0 %vm5628_vm14, %v5818_v13  ;;  %6243 = vmatprep.subr.mxu1 %v6119_v44  ;;  %v6153_v44 = vld [vmem:[#allocation10 + $0x3e8] sm:$0xff]  ;;  %v6152_v13 = vld [vmem:[#allocation10 + $0x3e0] sm:$0xff] }
 0x825   :  { %6169 = vmatpush1.msra.mxu0 %v6058_v28  ;;  %6232 = vmatprep.mubr.f32.mxu0 %v8610_v46  ;;  %v6050_v46 = vld [vmem:[#allocation10 + $0xb0] sm:$0xff]  ;;  %v6091_v28 = vld [vmem:[#allocation10 + $0x1f8] sm:$0xff] }
 0x826   :  { %6170 = vmatprep.subr.mxu0 %v6057_v12  ;;  %6244 = vmatpush1.msra.mxu1 %v6118_v25  ;;  %v6090_v12 = vld [vmem:[#allocation10 + $0x1f0] sm:$0xff]  ;;  %v6151_v25 = vld [vmem:[#allocation10 + $0x3d8] sm:$0xff] }
 0x827   :  { %6171 = vmatpush1.msra.mxu0 %v6056_v10  ;;  %6245 = vmatprep.subr.mxu1 %v6117_v7  ;;  %v6089_v10 = vld [vmem:[#allocation10 + $0x1e8] sm:$0xff]  ;;  %v6150_v7 = vld [vmem:[#allocation10 + $0x3d0] sm:$0xff] }
 0x828   :  { %6172 = vmatprep.subr.mxu0 %v6055_v42  ;;  %6246 = vmatpush1.msra.mxu1 %v6116_v55  ;;  %v6088_v42 = vld [vmem:[#allocation10 + $0x1e0] sm:$0xff]  ;;  %v6149_v55 = vld [vmem:[#allocation10 + $0x3c8] sm:$0xff] }
 0x829   :  { %6173 = vmatpush1.msra.mxu0 %v6054_v33  ;;  %6247 = vmatprep.subr.mxu1 %v6115_v57  ;;  %v6087_v33 = vld [vmem:[#allocation10 + $0x1d8] sm:$0xff]  ;;  %v6148_v57 = vld [vmem:[#allocation10 + $0x3c0] sm:$0xff] }
 0x82a   :  { %6174 = vmatprep.subr.mxu0 %v6053_v24  ;;  %6248 = vmatpush1.msra.mxu1 %v6114_v19  ;;  %v6086_v24 = vld [vmem:[#allocation10 + $0x1d0] sm:$0xff]  ;;  %v6147_v19 = vld [vmem:[#allocation10 + $0x3b8] sm:$0xff] }
 0x82b   :  { %6175 = vmatpush1.msra.mxu0 %v6052_v41  ;;  %6249 = vmatprep.subr.mxu1 %v6113_v9  ;;  %v6085_v41 = vld [vmem:[#allocation10 + $0x1c8] sm:$0xff]  ;;  %v6146_v9 = vld [vmem:[#allocation10 + $0x3b0] sm:$0xff] }
 0x82c   :  { %6176 = vmatprep.subr.mxu0 %v6051_v51  ;;  %6250 = vmatpush1.msra.mxu1 %v6112_v32  ;;  %v6084_v51 = vld [vmem:[#allocation10 + $0x1c0] sm:$0xff]  ;;  %v6145_v32 = vld [vmem:[#allocation10 + $0x3a8] sm:$0xff] }
 0x82d   :  { %6177 = vmatpush1.msra.mxu0 %v6050_v46  ;;  %6251 = vmatprep.subr.mxu1 %v6111_v61  ;;  %v6083_v46 = vld [vmem:[#allocation10 + $0x1b8] sm:$0xff]  ;;  %v6144_v61 = vld [vmem:[#allocation10 + $0x3a0] sm:$0xff] }
 0x82e   :  { %6178 = vmatprep.subr.mxu0 %v6049_v20  ;;  %6252 = vmatpush1.msra.mxu1 %v6110_v0  ;;  %v6082_v20 = vld [vmem:[#allocation10 + $0x1b0] sm:$0xff]  ;;  %v6143_v0 = vld [vmem:[#allocation10 + $0x398] sm:$0xff] }
 0x82f   :  { %6179 = vmatpush1.msra.mxu0 %v6048_v37  ;;  %6253 = vmatprep.subr.mxu1 %v6109_v30  ;;  %v6081_v37 = vld [vmem:[#allocation10 + $0x1a8] sm:$0xff]  ;;  %v6142_v30 = vld [vmem:[#allocation10 + $0x390] sm:$0xff] }
 0x830   :  { %6180 = vmatprep.subr.mxu0 %v6047_v27  ;;  %6254 = vmatpush1.msra.mxu1 %v6108_v59  ;;  %v6080_v27 = vld [vmem:[#allocation10 + $0x1a0] sm:$0xff]  ;;  %v6141_v59 = vld [vmem:[#allocation10 + $0x388] sm:$0xff] }
 0x831   :  { %6181 = vmatpush1.msra.mxu0 %v6046_v6  ;;  %6255 = vmatprep.subr.mxu1 %v6107_v52  ;;  %v6079_v6 = vld [vmem:[#allocation10 + $0x198] sm:$0xff]  ;;  %v6140_v52 = vld [vmem:[#allocation10 + $0x380] sm:$0xff] }
 0x832   :  { %6182 = vmatprep.subr.mxu0 %v6045_v17  ;;  %6256 = vmatpush1.msra.mxu1 %v6106_v36  ;;  %v6078_v17 = vld [vmem:[#allocation10 + $0x190] sm:$0xff]  ;;  %v6139_v36 = vld [vmem:[#allocation10 + $0x378] sm:$0xff] }
 0x833   :  { %6183 = vmatpush1.msra.mxu0 %v6044_v40  ;;  %6257 = vmatprep.subr.mxu1 %v6105_v38  ;;  %v6077_v40 = vld [vmem:[#allocation10 + $0x188] sm:$0xff]  ;;  %v6138_v38 = vld [vmem:[#allocation10 + $0x370] sm:$0xff] }
 0x834   :  { %6184 = vmatprep.subr.mxu0 %v6043_v23  ;;  %6258 = vmatpush1.msra.mxu1 %v6104_v4  ;;  %v6076_v23 = vld [vmem:[#allocation10 + $0x180] sm:$0xff]  ;;  %v6137_v4 = vld [vmem:[#allocation10 + $0x368] sm:$0xff] }
 0x835   :  { %6185 = vmatpush1.msra.mxu0 %v6042_v48  ;;  %6259 = vmatprep.subr.mxu1 %v6103_v8  ;;  %v6075_v48 = vld [vmem:[#allocation10 + $0x178] sm:$0xff]  ;;  %v6136_v8 = vld [vmem:[#allocation10 + $0x360] sm:$0xff] }
 0x836   :  { %6186 = vmatprep.subr.mxu0 %v6041_v35  ;;  %6260 = vmatpush1.msra.mxu1 %v6102_v3  ;;  %v6074_v35 = vld [vmem:[#allocation10 + $0x170] sm:$0xff]  ;;  %v6135_v3 = vld [vmem:[#allocation10 + $0x358] sm:$0xff] }
 0x837   :  { %6187 = vmatpush1.msra.mxu0 %v6040_v58  ;;  %6261 = vmatprep.subr.mxu1 %v6101_v18  ;;  %v6073_v58 = vld [vmem:[#allocation10 + $0x168] sm:$0xff]  ;;  %v6134_v18 = vld [vmem:[#allocation10 + $0x350] sm:$0xff] }
 0x838   :  { %6188 = vmatprep.subr.mxu0 %v6039_v2  ;;  %6262 = vmatpush1.msra.mxu1 %v6100_v15  ;;  %v6072_v2 = vld [vmem:[#allocation10 + $0x160] sm:$0xff]  ;;  %v6071_v15 = vld [vmem:[#allocation10 + $0x158] sm:$0xff] }
 0x839   :  { %6189 = vmatpush1.msra.mxu0 %v6038_v63  ;;  %6263 = vmatprep.subr.mxu1 %v6099_v45  ;;  %v6070_v63 = vld [vmem:[#allocation10 + $0x150] sm:$0xff]  ;;  %v6069_v45 = vld [vmem:[#allocation10 + $0x148] sm:$0xff] }
 0x83a   :  { %6190 = vmatprep.subr.mxu0 %v6037_v54  ;;  %6264 = vmatpush1.msra.mxu1 %v6098_v16  ;;  %v6068_v54 = vld [vmem:[#allocation10 + $0x140] sm:$0xff]  ;;  %v6067_v16 = vld [vmem:[#allocation10 + $0x138] sm:$0xff] }
 0x83b   :  { %6191 = vmatpush1.msra.mxu0 %v6036_v53  ;;  %6265 = vmatprep.subr.mxu1 %v6097_v49  ;;  %v6066_v53 = vld [vmem:[#allocation10 + $0x130] sm:$0xff]  ;;  %v6065_v49 = vld [vmem:[#allocation10 + $0x128] sm:$0xff] }
 0x83c   :  { %6192 = vmatprep.subr.mxu0 %v6035_v5  ;;  %6266 = vmatpush1.msra.mxu1 %v6096_v31  ;;  %v6064_v5 = vld [vmem:[#allocation10 + $0x120] sm:$0xff]  ;;  %v6063_v31 = vld [vmem:[#allocation10 + $0x118] sm:$0xff] }
 0x83d   :  { %6193 = vmatpush1.msra.mxu0 %v6034_v14  ;;  %6267 = vmatprep.subr.mxu1 %v6095_v62  ;;  %v6062_v14 = vld [vmem:[#allocation10 + $0x110] sm:$0xff]  ;;  %v6061_v62 = vld [vmem:[#allocation10 + $0x108] sm:$0xff] }
 0x83e   :  { %6194 = vmatprep.subr.mxu0 %v6033_v60  ;;  %6268 = vmatpush1.msra.mxu1 %v6094_v34  ;;  %v6060_v60 = vld [vmem:[#allocation10 + $0x100] sm:$0xff] }
 0x83f   :  { %6195 = vmatpush1.msra.mxu0 %v6032_v26  ;;  %6269 = vmatprep.subr.mxu1 %v6093_v56  ;;  %v6133_v26 = vld [vmem:[#allocation10 + $0x348] sm:$0xff]  ;;  %v6132_v56 = vld [vmem:[#allocation10 + $0x340] sm:$0xff] }
 0x840   :  { %6196 = vmatprep.subr.mxu0 %v6031_v1  ;;  %6270 = vmatpush1.msra.mxu1 %v6092_v39  ;;  %v6131_v1 = vld [vmem:[#allocation10 + $0x338] sm:$0xff]  ;;  %v6130_v39 = vld [vmem:[#allocation10 + $0x330] sm:$0xff] }
 0x841   :  { %6197 = vmatpush1.msra.mxu0 %v6030_v50  ;;  %6271 = vmatprep.subr.mxu1 %v6155_v47 }
 0x842   :  { %6198 = vmatprep.subr.mxu0 %v6029_v11  ;;  %6272 = vmatpush2.msra.mxu1 %v6154_v29 }
 0x843   :  { %6199 = vmatpush1.msra.mxu0 %v6028_v22  ;;  %6273 = vmatprep.subr.mxu1 %v6153_v44  ;;  %v6129_v22 = vld [vmem:[#allocation10 + $0x328] sm:$0xff]  ;;  %v6128_v44 = vld [vmem:[#allocation10 + $0x320] sm:$0xff] }
 0x844   :  { %6200 = vmatprep.subr.mxu0 %v6091_v28  ;;  %6274 = vmatpush2.msra.mxu1 %v6152_v13  ;;  %v6127_v28 = vld [vmem:[#allocation10 + $0x318] sm:$0xff] }
 0x845   :  { %6201 = vmatpush2.msra.mxu0 %v6090_v12  ;;  %6275 = vmatprep.subr.mxu1 %v6151_v25  ;;  %v6126_v12 = vld [vmem:[#allocation10 + $0x310] sm:$0xff]  ;;  %v6125_v25 = vld [vmem:[#allocation10 + $0x308] sm:$0xff] }
 0x846   :  { %6202 = vmatprep.subr.mxu0 %v6089_v10  ;;  %6276 = vmatpush2.msra.mxu1 %v6150_v7  ;;  %v6124_v10 = vld [vmem:[#allocation10 + $0x300] sm:$0xff] }
 0x847   :  { %6203 = vmatpush2.msra.mxu0 %v6088_v42  ;;  %6277 = vmatprep.subr.mxu1 %v6149_v55 }
 0x848   :  { %6204 = vmatprep.subr.mxu0 %v6087_v33  ;;  %6278 = vmatpush2.msra.mxu1 %v6148_v57 }
 0x849   :  { %6205 = vmatpush2.msra.mxu0 %v6086_v24  ;;  %6279 = vmatprep.subr.mxu1 %v6147_v19 }
 0x84a   :  { %6206 = vmatprep.subr.mxu0 %v6085_v41  ;;  %6280 = vmatpush2.msra.mxu1 %v6146_v9  ;;  %v8815_v41 = vld [vmem:[#allocation18_spill] sm:$0xff] }
 0x84b   :  { %6207 = vmatpush2.msra.mxu0 %v6084_v51  ;;  %6281 = vmatprep.subr.mxu1 %v6145_v32  ;;  %v6160_v9 = vsub.s32 0, %v8815_v41  ;;  %v6156_v51 = vld [vmem:[#allocation12] sm:$0x3]  ;;  %v6164_v32 = vsub.s32 1, %v8815_v41 }
 0x84c   :  { %6208 = vmatprep.subr.mxu0 %v6083_v46  ;;  %6282 = vmatpush2.msra.mxu1 %v6144_v61 }
 0x84d   :  { %6209 = vmatpush2.msra.mxu0 %v6082_v20  ;;  %6283 = vmatprep.subr.mxu1 %v6143_v0  ;;  %v6161_v61 = vrot.slane %v6156_v51, %v6160_v9  ;;  %v6165_v20 = vrot.slane %v6156_v51, %v6164_v32 }
 0x84e   :  { %6210 = vmatprep.subr.mxu0 %v6081_v37  ;;  %6284 = vmatpush2.msra.mxu1 %v6142_v30 }
 0x84f   :  { %6211 = vmatpush2.msra.mxu0 %v6080_v27  ;;  %6285 = vmatprep.subr.mxu1 %v6141_v59 }
 0x850   :  { %6212 = vmatprep.subr.mxu0 %v6079_v6  ;;  %6286 = vmatpush2.msra.mxu1 %v6140_v52 }
 0x851   :  { %6213 = vmatpush2.msra.mxu0 %v6078_v17  ;;  %6287 = vmatprep.subr.mxu1 %v6139_v36 }
 0x852   :  { %6214 = vmatprep.subr.mxu0 %v6077_v40  ;;  %6288 = vmatpush2.msra.mxu1 %v6138_v38 }
 0x853   :  { %6215 = vmatpush2.msra.mxu0 %v6076_v23  ;;  %6289 = vmatprep.subr.mxu1 %v6137_v4 }
 0x854   :  { %6216 = vmatprep.subr.mxu0 %v6075_v48  ;;  %6290 = vmatpush2.msra.mxu1 %v6136_v8 }
 0x855   :  { %6217 = vmatpush2.msra.mxu0 %v6074_v35  ;;  %6291 = vmatprep.subr.mxu1 %v6135_v3 }
 0x856   :  { %6218 = vmatprep.subr.mxu0 %v6073_v58  ;;  %6292 = vmatpush2.msra.mxu1 %v6134_v18 }
 0x857   :  { %6219 = vmatpush2.msra.mxu0 %v6072_v2  ;;  %6293 = vmatprep.subr.mxu1 %v6133_v26 }
 0x858   :  { %6220 = vmatprep.subr.mxu0 %v6071_v15  ;;  %6294 = vmatpush2.msra.mxu1 %v6132_v56 }
 0x859   :  { %6221 = vmatpush2.msra.mxu0 %v6070_v63  ;;  %6295 = vmatprep.subr.mxu1 %v6131_v1 }
 0x85a   :  { %6222 = vmatprep.subr.mxu0 %v6069_v45  ;;  %6296 = vmatpush2.msra.mxu1 %v6130_v39 }
 0x85b   :  { %6223 = vmatpush2.msra.mxu0 %v6068_v54  ;;  %6297 = vmatprep.subr.mxu1 %v6129_v22 }
 0x85c   :  { %6224 = vmatprep.subr.mxu0 %v6067_v16  ;;  %6298 = vmatpush2.msra.mxu1 %v6128_v44 }
 0x85d   :  { %6225 = vmatpush2.msra.mxu0 %v6066_v53  ;;  %6299 = vmatprep.subr.mxu1 %v6127_v28 }
 0x85e   :  { %6226 = vmatprep.subr.mxu0 %v6065_v49  ;;  %6300 = vmatpush2.msra.mxu1 %v6126_v12 }
 0x85f   :  { %6227 = vmatpush2.msra.mxu0 %v6064_v5  ;;  %6301 = vmatprep.subr.mxu1 %v6125_v25 }
 0x860   :  { %6228 = vmatprep.subr.mxu0 %v6063_v31  ;;  %6302 = vmatpush2.msra.mxu1 %v6124_v10 }
 0x861   :  { %6229 = vmatpush2.msra.mxu0 %v6062_v14  ;;  %v5804_v34 = vpop.f32.mrf.mxu1 }
 0x862   :  { %6230 = vmatprep.subr.mxu0 %v6061_v62  ;;  %v5997_v47 = vrot.slane %v5804_v34, 7 }
 0x863   :  { %6231 = vmatpush2.msra.mxu0 %v6060_v60  ;;  %v6698_v50 = vpop.f32.mrf.mxu1 }
 0x864   :  { %6233 = vmatmul.mubr.f32.vlgmr.msra.gmra.mxu0 %v8485_v21 }
 0x865   :  { %v5728_v11 = vpop.f32.mrf.mxu0 }
 0x866   :  { %v5998_v29 = vsel %vm2936_vm4, %v5997_v47, %v5728_v11 }
 0x867   :  { %v6691_v13 = vpop.f32.mrf.mxu0 }
 0x8e0   :  { %v5976_v7 = vpop.f32.mrf.mxu1 }
 0x8e1   :  { %v6014_v42 = vrot.slane %v5976_v7, 7 }
 0x8e2   :  { %v6712_v21 = vpop.f32.mrf.mxu1 }
 0x8e4   :  { %v5890_v55 = vpop.f32.mrf.mxu0 }
 0x8e5   :  { %v6015_v33 = vsel %vm2936_vm4, %v6014_v42, %v5890_v55 }
 0x8e6   :  { %v6019_v57 = vrot.slane %v6015_v33, 6  ;;  %v6705_v24 = vpop.f32.mrf.mxu0 }
 0x8e8   :  { %v6027_v19 = vsel %vm5222_vm7, %v5998_v29, %v6019_v57 }
 0x8e9   :  { %6303 = vmatprep.mubr.f32.mxu1 %v6027_v19 }
 0x8ea   :  { %6304 = vmatmul.mubr.f32.vlgmr.msra.gmra.mxu1 %v8735_v43 }
 0x924   :  { %v6234_v46 = vpop.f32.mrf.mxu0 }
 0x925   :  { %v6235_v37 = vadd.f32 %v6234_v46, %v6161_v61 }
 0x926   :  { %v6236_v0 = vpop.f32.mrf.mxu0 }
 0x927   :  { %v6237_v27 = vadd.f32 %v6236_v0, %v6165_v20 }
 0x9aa   :  { %v6305_v30 = vpop.f32.mrf.mxu1 }
 0x9ab   :  { %v6306_v59 = vadd.f32 %v6305_v30, %v6235_v37 }
 0x9ac   :  { %v6307_v6 = vpop.f32.mrf.mxu1 }
 0x9ad   :  { %v6312_v52 = vrot.slane %v6306_v59, 2  ;;  %v6308_v17 = vadd.f32 %v6307_v6, %v6237_v27  ;;  %v6323_v36 = vmul.f32 %v6306_v59, %v6306_v59 }
 0x9af   :  { %v6313_v40 = vrot.slane %v6308_v17, 2  ;;  %v6324_v43 = vmul.f32 %v6308_v17, %v6308_v17  ;;  %v6331_v38 = vsel %vm6330_vm5, %v6323_v36, 0.0  ;;  %v6325_v23 = vsel %vm5222_vm7, %v6323_v36, 0.0 }
 0x9b0   :  { %v6316_v8 = vmul.f32 %v6312_v52, %v6306_v59 }
 0x9b1   :  { %v6332_v4 = vsel %vm6330_vm5, %v6324_v43, 0.0  ;;  %v6326_v48 = vsel %vm5222_vm7, %v6324_v43, 0.0  ;;  %v6317_v35 = vmul.f32 %v6313_v40, %v6308_v17 }
 0x9b2   :  { %v6333_v3 = vadd.f32 %v6332_v4, %v6331_v38  ;;  %v6327_v58 = vadd.f32 %v6326_v48, %v6325_v23  ;;  %v6318_v2 = vsel %vm5222_vm7, %v6316_v8, 0.0 }
 0x9b3   :  { %v6319_v18 = vsel %vm5222_vm7, %v6317_v35, 0.0 }
 0x9b4   :  { %6334 = vadd.xlane.f32.xlu1 %v6333_v3  ;;  %6328 = vadd.xlane.f32.xlu0 %v6327_v58  ;;  %v6320_v15 = vadd.f32 %v6319_v18, %v6318_v2 }
 0x9b8   :  { %6321 = vadd.xlane.f32.xlu0 %v6320_v15 }
 0xa3d   :  { %v6335_v63 = vpop.xlane.xlu1 %6334  ;;  %v6329_v45 = vpop.xlane.xlu0 %6328 }
 0xa3e   :  { %v6338_v54 = vmax.f32 %v6335_v63, 1e-16  ;;  %v6336_v16 = vmax.f32 %v6329_v45, 1e-16 }
 0xa40   :  { %6808 = vrsqrt.f32 %v6338_v54 }
 0xa41   :  { %6810 = vrsqrt.f32 %v6336_v16  ;;  %v6322_v31 = vpop.xlane.xlu0 %6321 }
 0xa4d   :  { %v6809_v53 = vpop.eup %6808 }
 0xa4e   :  { %v6811_v49 = vpop.eup %6810  ;;  %v6342_v5 = vrot.slane %v6809_v53, 2 }
 0xa4f   :  { %v6340_v14 = vmul.f32 %v6811_v49, %v6322_v31 }
 0xa51   :  { %v6344_v62 = vmul.f32 %v6342_v5, %v6340_v14 }
 0xa53   :  { %6346 = vst.msk [vmem:[%s8785_s7] sm:$0x3] %vm6345_vm8, %v6344_v62 }
 0xa54   :  { %6351 = vsyncpa [#allocation3], 1 }
 0xa55   :  { %6352 = vsyncpa [#allocation5], 1 }
 0xa56   :  { %6353 = vsyncpa [#allocation8], 1 }
 0xa57   :  { %6354 = vsyncpa [#allocation11], 1 }

</bundles_post_ra>
